<compile_context>
chip_gen: v7x
topology: tpu7x:2x2x1
jax: 0.10.0
libtpu: 0.0.40
codegen_flags: <defaults>
</compile_context>

<pallas_src>
import math
import functools

import jax
import jax.numpy as jnp
from jax.experimental import pallas as pl
from jax.experimental.pallas import tpu as pltpu

# ----------------------------- configuration --------------------------------
IMG = 16           # img_size
PATCH = 4          # patch_size
HSIZE = 32         # h_size
TOKENS_MLP = 32    # tokens_mlp_dim
CHANNELS_MLP = 64  # channels_mlp_dim
NCLASSES = 10      # n_classes
NBLOCKS = 2        # n_blocks
SIGMA_W = 1.0
SIGMA_B = 0.1
MU = 0.5
ACT = "GELU"       # one of 'ReLU', 'erf', 'GELU' (torch GELU default = exact erf form)
BATCH = 2

NPATCH = (IMG // PATCH) ** 2      # 16
DPATCH = 3 * PATCH * PATCH        # 48
EPS = 1e-5                        # torch.nn.LayerNorm default eps
INV_SQRT2 = 1.0 / math.sqrt(2.0)

# Batch block per grid step.  BBLK=8 gives M >= 128 for every matmul; for large
# batches this can be raised (64-256) while staying far below the 32 MiB scoped
# VMEM limit of v7x (per-step footprint here is well under 1 MiB).
BBLK = 8
LANES = 128                       # padded class dim -> lane-dense output store
ROWS = BBLK * NPATCH              # 128  (rows for stem / channel mixing)
TROWS = BBLK * HSIZE              # 256  (rows for token mixing)

# ---- packed parameter blob layout -------------------------------------------
# vector blob: (NVEC, 128) f32, one parameter per row, zero padded to 128 lanes
V_BSTEM, V_GPH, V_BPH, V_BH = 0, 1, 2, 3
V_BLK = 4          # per block: g1, be1, b1a, b1b, g2, be2, b2a, b2b
V_PER_BLK = 8
NVEC = V_BLK + V_PER_BLK * NBLOCKS

# weight blob: (NWTS, 64, 128) f32, each matrix zero padded into its slab
WROWS = 64
W_STEM, W_HEAD = 0, 1
W_BLK = 2          # per block: w1a, w1b, w2a, w2b
W_PER_BLK = 4
NWTS = W_BLK + W_PER_BLK * NBLOCKS

# ----------------------------- shared math -----------------------------------


def _act(x):
    if ACT == "GELU":
        return 0.5 * x * (1.0 + jax.lax.erf(x * INV_SQRT2))
    elif ACT == "erf":
        return jax.lax.erf(x)
    else:  # ReLU
        return jnp.maximum(x, 0.0)


def _layernorm(x, g, b):
    # torch LayerNorm: biased variance over last dim, eps inside the sqrt.
    mean = jnp.mean(x, axis=-1, keepdims=True)
    xc = x - mean
    var = jnp.mean(xc * xc, axis=-1, keepdims=True)
    return xc * jax.lax.rsqrt(var + EPS) * g + b


# ----------------------------- Pallas kernel ---------------------------------


def mixer_kernel(x_ref, w_ref, v_ref, o_ref):
    f32 = jnp.float32

    # patches block (BBLK, NPATCH, DPATCH) -> rows ordered (b-major, p-minor)
    x = x_ref[...].reshape(ROWS, DPATCH)

    # stem (== strided Conv2d patch embed): (ROWS, Dp) @ (Dp, C) + (1, C)
    wstem = w_ref[W_STEM, :DPATCH, :HSIZE]
    bstem = v_ref[V_BSTEM:V_BSTEM + 1, :HSIZE]
    x = jnp.dot(x, wstem, preferred_element_type=f32) + bstem            # (ROWS, C)

    for blk in range(NBLOCKS):                 # static unroll over MixerBlocks
        vb = V_BLK + blk * V_PER_BLK
        wb = W_BLK + blk * W_PER_BLK
        g1 = v_ref[vb + 0:vb + 1, :HSIZE]
        be1 = v_ref[vb + 1:vb + 2, :HSIZE]
        b1a = v_ref[vb + 2:vb + 3, :TOKENS_MLP]
        b1b = v_ref[vb + 3:vb + 4, :NPATCH]
        g2 = v_ref[vb + 4:vb + 5, :HSIZE]
        be2 = v_ref[vb + 5:vb + 6, :HSIZE]
        b2a = v_ref[vb + 6:vb + 7, :CHANNELS_MLP]
        b2b = v_ref[vb + 7:vb + 8, :HSIZE]
        w1a = w_ref[wb + 0, :NPATCH, :TOKENS_MLP]
        w1b = w_ref[wb + 1, :TOKENS_MLP, :NPATCH]
        w2a = w_ref[wb + 2, :HSIZE, :CHANNELS_MLP]
        w2b = w_ref[wb + 3, :CHANNELS_MLP, :HSIZE]

        # --- token mixing (per-image mix over patches, batched in M) ---
        idd = x
        y = _layernorm(x, g1, be1)                                       # (ROWS, C)
        yt = jnp.swapaxes(y.reshape(BBLK, NPATCH, HSIZE), 1, 2)          # (B, C, P)
        yt = yt.reshape(TROWS, NPATCH)                                   # (256, P)
        z = _act(jnp.dot(yt, w1a, preferred_element_type=f32) + b1a)     # (256, T)
        z = jnp.dot(z, w1b, preferred_element_type=f32) + b1b            # (256, P)
        zt = jnp.swapaxes(z.reshape(BBLK, HSIZE, NPATCH), 1, 2)          # (B, P, C)
        x = zt.reshape(ROWS, HSIZE) + MU * idd

        # --- channel mixing (row-wise, M = 128) ---
        idd = x
        y = _layernorm(x, g2, be2)                                       # (ROWS, C)
        y = _act(jnp.dot(y, w2a, preferred_element_type=f32) + b2a)      # (ROWS, Cm)
        y = jnp.dot(y, w2b, preferred_element_type=f32) + b2b            # (ROWS, C)
        x = y + MU * idd

    # pre-head LayerNorm, mean over patches, classification head.
    # The head weight / bias are zero-padded to 128 classes so the output store
    # is a full-lane (BBLK, 128) write; the wrapper slices the real 10 classes.
    x = _layernorm(x, v_ref[V_GPH:V_GPH + 1, :HSIZE], v_ref[V_BPH:V_BPH + 1, :HSIZE])
    xm = jnp.mean(x.reshape(BBLK, NPATCH, HSIZE), axis=1)                # (BBLK, C)
    wh = w_ref[W_HEAD, :HSIZE, :]                                        # (C, 128)
    bh = v_ref[V_BH:V_BH + 1, :]                                         # (1, 128)
    o_ref[...] = jnp.dot(xm, wh, preferred_element_type=f32) + bh        # (BBLK, 128)


# ----------------------------- host-side glue ---------------------------------


def _extract_patches(x_nchw):
    # (B, 3, H, W) -> (B, n_patches, 3*p*p), flatten order (c, kh, kw) row-major
    # over patch grid, matching Conv2d(stride=kernel_size) + flatten(2) + transpose.
    B = x_nchw.shape[0]
    hp = IMG // PATCH
    p = x_nchw.reshape(B, 3, hp, PATCH, hp, PATCH)
    p = p.transpose(0, 2, 4, 1, 3, 5)
    return p.reshape(B, NPATCH, DPATCH)


def pack_params(params):
    """Pack the 18 logical parameters into 2 padded VMEM blobs."""
    f32 = jnp.float32

    vec = jnp.zeros((NVEC, LANES), f32)

    def put(v, row, val):
        val = val.reshape(-1).astype(f32)
        return v.at[row, :val.shape[0]].set(val)

    wts = jnp.zeros((NWTS, WROWS, LANES), f32)

    def putw(w, idx, mat):
        mat = mat.astype(f32)
        r, c = mat.shape
        return w.at[idx, :r, :c].set(mat)

    vec = put(vec, V_BSTEM, params["bstem"])
    vec = put(vec, V_GPH, params["gph"])
    vec = put(vec, V_BPH, params["bph"])
    vec = put(vec, V_BH, params["bh"])
    wts = putw(wts, W_STEM, params["wstem"])
    wts = putw(wts, W_HEAD, params["wh"])

    for blk in range(NBLOCKS):
        vb = V_BLK + blk * V_PER_BLK
        vec = put(vec, vb + 0, params["g1"][blk])
        vec = put(vec, vb + 1, params["be1"][blk])
        vec = put(vec, vb + 2, params["b1a"][blk])
        vec = put(vec, vb + 3, params["b1b"][blk])
        vec = put(vec, vb + 4, params["g2"][blk])
        vec = put(vec, vb + 5, params["be2"][blk])
        vec = put(vec, vb + 6, params["b2a"][blk])
        vec = put(vec, vb + 7, params["b2b"][blk])
        wb = W_BLK + blk * W_PER_BLK
        wts = putw(wts, wb + 0, params["w1a"][blk])
        wts = putw(wts, wb + 1, params["w1b"][blk])
        wts = putw(wts, wb + 2, params["w2a"][blk])
        wts = putw(wts, wb + 3, params["w2b"][blk])
    return wts, vec


@jax.jit
def mlp_mixer_forward(x_nchw, params):
    B = x_nchw.shape[0]
    patches = _extract_patches(x_nchw).astype(jnp.float32)      # (B, P, Dp)

    bpad = pl.cdiv(B, BBLK) * BBLK
    if bpad != B:  # zero-pad the batch to a multiple of BBLK (rows sliced away below)
        patches = jnp.pad(patches, ((0, bpad - B), (0, 0), (0, 0)))
    steps = bpad // BBLK

    wts, vec = pack_params(params)

    # Advisory cost estimate (real work is tiny; keeps XLA from over-scheduling).
    mac_per_step = (ROWS * DPATCH * HSIZE
                    + NBLOCKS * (2 * TROWS * NPATCH * TOKENS_MLP
                                 + 2 * ROWS * HSIZE * CHANNELS_MLP)
                    + BBLK * HSIZE * LANES)
    cost = pl.CostEstimate(
        flops=int(2 * mac_per_step * steps),
        transcendentals=int(steps * NBLOCKS * (TROWS * TOKENS_MLP + ROWS * CHANNELS_MLP)),
        bytes_accessed=int(4 * (patches.size + steps * (wts.size + vec.size)
                                + bpad * LANES)),
    )

    out = pl.pallas_call(
        mixer_kernel,
        out_shape=jax.ShapeDtypeStruct((bpad, LANES), jnp.float32),
        grid=(steps,),
        in_specs=[
            pl.BlockSpec((BBLK, NPATCH, DPATCH), lambda i: (i, 0, 0)),
            pl.BlockSpec((NWTS, WROWS, LANES), lambda i: (0, 0, 0)),   # weight blob
            pl.BlockSpec((NVEC, LANES), lambda i: (0, 0)),             # vector blob
        ],
        out_specs=pl.BlockSpec((BBLK, LANES), lambda i: (i, 0)),
        compiler_params=pltpu.CompilerParams(dimension_semantics=("parallel",)),
        cost_estimate=cost,
    )(patches, wts, vec)

    return out[:B, :NCLASSES]


# --------------------------- parameter init ----------------------------------


def init_params(key):
    keys = iter(jax.random.split(key, 64))
    f32 = jnp.float32

    def lin(kw, kb, fan_in, fan_out):
        # nn.Linear stored as (out, in) in torch; we store transposed (in, out).
        w = jax.random.normal(kw, (fan_in, fan_out), f32) * (SIGMA_W / math.sqrt(fan_in))
        b = jax.random.normal(kb, (1, fan_out), f32) * SIGMA_B
        return w, b

    p = {}
    # stem conv: kaiming_normal (fan_in, linear) => std = 1/sqrt(3*p*p); bias ~ N(0, 0) = 0
    p["wstem"] = jax.random.normal(next(keys), (DPATCH, HSIZE), f32) / math.sqrt(DPATCH)
    p["bstem"] = jnp.zeros((1, HSIZE), f32)

    stacks = {k: [] for k in ["g1", "be1", "w1a", "b1a", "w1b", "b1b",
                              "g2", "be2", "w2a", "b2a", "w2b", "b2b"]}
    for _ in range(NBLOCKS):
        stacks["g1"].append(jnp.ones((1, HSIZE), f32))
        stacks["be1"].append(jnp.zeros((1, HSIZE), f32))
        w, b = lin(next(keys), next(keys), NPATCH, TOKENS_MLP)
        stacks["w1a"].append(w); stacks["b1a"].append(b)
        w, b = lin(next(keys), next(keys), TOKENS_MLP, NPATCH)
        stacks["w1b"].append(w); stacks["b1b"].append(b)
        stacks["g2"].append(jnp.ones((1, HSIZE), f32))
        stacks["be2"].append(jnp.zeros((1, HSIZE), f32))
        w, b = lin(next(keys), next(keys), HSIZE, CHANNELS_MLP)
        stacks["w2a"].append(w); stacks["b2a"].append(b)
        w, b = lin(next(keys), next(keys), CHANNELS_MLP, HSIZE)
        stacks["w2b"].append(w); stacks["b2b"].append(b)
    for k, v in stacks.items():
        p[k] = jnp.stack(v)

    p["gph"] = jnp.ones((1, HSIZE), f32)
    p["bph"] = jnp.zeros((1, HSIZE), f32)
    p["wh"], p["bh"] = lin(next(keys), next(keys), HSIZE, NCLASSES)
    return p


# --------------------------- pure-JAX reference -------------------------------


def ref_forward(x_nchw, params):
    dot = functools.partial(jnp.matmul, precision=jax.lax.Precision.HIGHEST)
    x = _extract_patches(x_nchw).astype(jnp.float32)
    x = dot(x, params["wstem"]) + params["bstem"]                 # (B, P, C)
    for blk in range(NBLOCKS):
        idd = x
        y = _layernorm(x, params["g1"][blk], params["be1"][blk])
        y = jnp.swapaxes(y, -1, -2)
        y = _act(dot(y, params["w1a"][blk]) + params["b1a"][blk])
        y = dot(y, params["w1b"][blk]) + params["b1b"][blk]
        y = jnp.swapaxes(y, -1, -2)
        x = y + MU * idd
        idd = x
        y = _layernorm(x, params["g2"][blk], params["be2"][blk])
        y = _act(dot(y, params["w2a"][blk]) + params["b2a"][blk])
        y = dot(y, params["w2b"][blk]) + params["b2b"][blk]
        x = y + MU * idd
    x = _layernorm(x, params["gph"], params["bph"])
    x = jnp.mean(x, axis=1)
    return dot(x, params["wh"]) + params["bh"]


# ------------------------------------ main ------------------------------------

if __name__ == "__main__":
    key = jax.random.PRNGKey(0)
    k_x, k_p = jax.random.split(key)
    x = jax.random.normal(k_x, (BATCH, 3, IMG, IMG), jnp.float32)
    params = init_params(k_p)

    out = jax.block_until_ready(mlp_mixer_forward(x, params))
    ref = jax.block_until_ready(ref_forward(x, params))

    assert out.shape == (BATCH, NCLASSES)
    assert bool(jnp.all(jnp.isfinite(out)))
    assert bool(jnp.allclose(out, ref, atol=1e-3, rtol=1e-3)), (out, ref)

    print("KERNEL_OK")
</pallas_src>

<mosaic_0001>
module attributes {stable_mosaic.version = 11 : i64} {
  func.func @mixer_kernel(%arg0: i32, %arg1: memref<8x16x48xf32, #tpu.memory_space<vmem>>, %arg2: memref<10x64x128xf32, #tpu.memory_space<vmem>>, %arg3: memref<20x128xf32, #tpu.memory_space<vmem>>, %arg4: memref<8x128xf32, #tpu.memory_space<vmem>>) attributes {dimension_semantics = [#tpu.dimension_semantics<parallel>], iteration_bounds = array<i64: 1>, scalar_prefetch = 0 : i64, scratch_operands = 0 : i64, tpu.core_type = #tpu.core_type<tc>, window_params = [{transform_indices = @transform_0, window_bounds = array<i64: 8, 16, 48>}, {pipeline_mode = #tpu.pipeline_mode<synchronous>, transform_indices = @transform_1, window_bounds = array<i64: 10, 64, 128>}, {pipeline_mode = #tpu.pipeline_mode<synchronous>, transform_indices = @transform_2, window_bounds = array<i64: 20, 128>}, {transform_indices = @transform_3, window_bounds = array<i64: 8, 128>}]} {
    %c0 = arith.constant 0 : index
    %c0_0 = arith.constant 0 : index
    %c0_1 = arith.constant 0 : index
    %0 = vector.load %arg1[%c0, %c0_0, %c0_1] : memref<8x16x48xf32, #tpu.memory_space<vmem>>, vector<8x16x48xf32>
    %1 = vector.shape_cast %0 : vector<8x16x48xf32> to vector<128x48xf32>
    %c0_2 = arith.constant 0 : index
    %c0_3 = arith.constant 0 : index
    %c0_4 = arith.constant 0 : index
    %2 = vector.load %arg2[%c0_2, %c0_3, %c0_4] : memref<10x64x128xf32, #tpu.memory_space<vmem>>, vector<1x48x32xf32>
    %3 = vector.shape_cast %2 : vector<1x48x32xf32> to vector<48x32xf32>
    %c0_5 = arith.constant 0 : index
    %c0_6 = arith.constant 0 : index
    %4 = vector.load %arg3[%c0_5, %c0_6] : memref<20x128xf32, #tpu.memory_space<vmem>>, vector<1x32xf32>
    %cst = arith.constant dense<0.000000e+00> : vector<128x32xf32>
    %5 = tpu.matmul %1, %3, %cst {dimension_numbers = #tpu.dot_dimension_numbers<[1], [0], [0], [1], [0, 0, 1, 1], [], []>} : vector<128x48xf32>, vector<48x32xf32>, vector<128x32xf32> -> vector<128x32xf32>
    %6 = vector.broadcast %4 : vector<1x32xf32> to vector<128x32xf32>
    %7 = arith.addf %5, %6 : vector<128x32xf32>
    %c4 = arith.constant 4 : index
    %c0_7 = arith.constant 0 : index
    %8 = vector.load %arg3[%c4, %c0_7] : memref<20x128xf32, #tpu.memory_space<vmem>>, vector<1x32xf32>
    %c5 = arith.constant 5 : index
    %c0_8 = arith.constant 0 : index
    %9 = vector.load %arg3[%c5, %c0_8] : memref<20x128xf32, #tpu.memory_space<vmem>>, vector<1x32xf32>
    %c6 = arith.constant 6 : index
    %c0_9 = arith.constant 0 : index
    %10 = vector.load %arg3[%c6, %c0_9] : memref<20x128xf32, #tpu.memory_space<vmem>>, vector<1x32xf32>
    %c7 = arith.constant 7 : index
    %c0_10 = arith.constant 0 : index
    %11 = vector.load %arg3[%c7, %c0_10] : memref<20x128xf32, #tpu.memory_space<vmem>>, vector<1x16xf32>
    %c8 = arith.constant 8 : index
    %c0_11 = arith.constant 0 : index
    %12 = vector.load %arg3[%c8, %c0_11] : memref<20x128xf32, #tpu.memory_space<vmem>>, vector<1x32xf32>
    %c9 = arith.constant 9 : index
    %c0_12 = arith.constant 0 : index
    %13 = vector.load %arg3[%c9, %c0_12] : memref<20x128xf32, #tpu.memory_space<vmem>>, vector<1x32xf32>
    %c10 = arith.constant 10 : index
    %c0_13 = arith.constant 0 : index
    %14 = vector.load %arg3[%c10, %c0_13] : memref<20x128xf32, #tpu.memory_space<vmem>>, vector<1x64xf32>
    %c11 = arith.constant 11 : index
    %c0_14 = arith.constant 0 : index
    %15 = vector.load %arg3[%c11, %c0_14] : memref<20x128xf32, #tpu.memory_space<vmem>>, vector<1x32xf32>
    %c2 = arith.constant 2 : index
    %c0_15 = arith.constant 0 : index
    %c0_16 = arith.constant 0 : index
    %16 = vector.load %arg2[%c2, %c0_15, %c0_16] : memref<10x64x128xf32, #tpu.memory_space<vmem>>, vector<1x16x32xf32>
    %17 = vector.shape_cast %16 : vector<1x16x32xf32> to vector<16x32xf32>
    %c3 = arith.constant 3 : index
    %c0_17 = arith.constant 0 : index
    %c0_18 = arith.constant 0 : index
    %18 = vector.load %arg2[%c3, %c0_17, %c0_18] : memref<10x64x128xf32, #tpu.memory_space<vmem>>, vector<1x32x16xf32>
    %19 = vector.shape_cast %18 : vector<1x32x16xf32> to vector<32x16xf32>
    %c4_19 = arith.constant 4 : index
    %c0_20 = arith.constant 0 : index
    %c0_21 = arith.constant 0 : index
    %20 = vector.load %arg2[%c4_19, %c0_20, %c0_21] : memref<10x64x128xf32, #tpu.memory_space<vmem>>, vector<1x32x64xf32>
    %21 = vector.shape_cast %20 : vector<1x32x64xf32> to vector<32x64xf32>
    %c5_22 = arith.constant 5 : index
    %c0_23 = arith.constant 0 : index
    %c0_24 = arith.constant 0 : index
    %22 = vector.load %arg2[%c5_22, %c0_23, %c0_24] : memref<10x64x128xf32, #tpu.memory_space<vmem>>, vector<1x64x32xf32>
    %23 = vector.shape_cast %22 : vector<1x64x32xf32> to vector<64x32xf32>
    %cst_25 = arith.constant dense<0.000000e+00> : vector<128xf32>
    %24 = vector.multi_reduction <add>, %7, %cst_25 [1] : vector<128x32xf32> to vector<128xf32>
    %25 = vector.shape_cast %24 : vector<128xf32> to vector<128x1xf32>
    %cst_26 = arith.constant 3.200000e+01 : f32
    %26 = vector.broadcast %cst_26 : f32 to vector<128x1xf32>
    %27 = arith.divf %25, %26 : vector<128x1xf32>
    %28 = vector.broadcast %27 : vector<128x1xf32> to vector<128x32xf32>
    %29 = arith.subf %7, %28 : vector<128x32xf32>
    %30 = arith.mulf %29, %29 : vector<128x32xf32>
    %cst_27 = arith.constant dense<0.000000e+00> : vector<128xf32>
    %31 = vector.multi_reduction <add>, %30, %cst_27 [1] : vector<128x32xf32> to vector<128xf32>
    %32 = vector.shape_cast %31 : vector<128xf32> to vector<128x1xf32>
    %cst_28 = arith.constant 3.200000e+01 : f32
    %33 = vector.broadcast %cst_28 : f32 to vector<128x1xf32>
    %34 = arith.divf %32, %33 : vector<128x1xf32>
    %cst_29 = arith.constant 9.99999974E-6 : f32
    %35 = vector.broadcast %cst_29 : f32 to vector<128x1xf32>
    %36 = arith.addf %34, %35 : vector<128x1xf32>
    %37 = math.rsqrt %36 : vector<128x1xf32>
    %38 = vector.broadcast %37 : vector<128x1xf32> to vector<128x32xf32>
    %39 = arith.mulf %29, %38 : vector<128x32xf32>
    %40 = vector.broadcast %8 : vector<1x32xf32> to vector<128x32xf32>
    %41 = arith.mulf %39, %40 : vector<128x32xf32>
    %42 = vector.broadcast %9 : vector<1x32xf32> to vector<128x32xf32>
    %43 = arith.addf %41, %42 : vector<128x32xf32>
    %44 = vector.shape_cast %43 : vector<128x32xf32> to vector<8x16x32xf32>
    %45 = tpu.transpose %44, [0, 2, 1] : vector<8x16x32xf32> -> vector<8x32x16xf32>
    %46 = vector.shape_cast %45 : vector<8x32x16xf32> to vector<256x16xf32>
    %cst_30 = arith.constant dense<0.000000e+00> : vector<256x32xf32>
    %47 = tpu.matmul %46, %17, %cst_30 {dimension_numbers = #tpu.dot_dimension_numbers<[1], [0], [0], [1], [0, 0, 1, 1], [], []>} : vector<256x16xf32>, vector<16x32xf32>, vector<256x32xf32> -> vector<256x32xf32>
    %48 = vector.broadcast %10 : vector<1x32xf32> to vector<256x32xf32>
    %49 = arith.addf %47, %48 : vector<256x32xf32>
    %cst_31 = arith.constant 5.000000e-01 : f32
    %50 = vector.broadcast %cst_31 : f32 to vector<256x32xf32>
    %51 = arith.mulf %50, %49 : vector<256x32xf32>
    %cst_32 = arith.constant 0.707106769 : f32
    %52 = vector.broadcast %cst_32 : f32 to vector<256x32xf32>
    %53 = arith.mulf %49, %52 : vector<256x32xf32>
    %54 = math.erf %53 : vector<256x32xf32>
    %cst_33 = arith.constant 1.000000e+00 : f32
    %55 = vector.broadcast %cst_33 : f32 to vector<256x32xf32>
    %56 = arith.addf %55, %54 : vector<256x32xf32>
    %57 = arith.mulf %51, %56 : vector<256x32xf32>
    %cst_34 = arith.constant dense<0.000000e+00> : vector<256x16xf32>
    %58 = tpu.matmul %57, %19, %cst_34 {dimension_numbers = #tpu.dot_dimension_numbers<[1], [0], [0], [1], [0, 0, 1, 1], [], []>} : vector<256x32xf32>, vector<32x16xf32>, vector<256x16xf32> -> vector<256x16xf32>
    %59 = vector.broadcast %11 : vector<1x16xf32> to vector<256x16xf32>
    %60 = arith.addf %58, %59 : vector<256x16xf32>
    %61 = vector.shape_cast %60 : vector<256x16xf32> to vector<8x32x16xf32>
    %62 = tpu.transpose %61, [0, 2, 1] : vector<8x32x16xf32> -> vector<8x16x32xf32>
    %63 = vector.shape_cast %62 : vector<8x16x32xf32> to vector<128x32xf32>
    %cst_35 = arith.constant 5.000000e-01 : f32
    %64 = vector.broadcast %cst_35 : f32 to vector<128x32xf32>
    %65 = arith.mulf %64, %7 : vector<128x32xf32>
    %66 = arith.addf %63, %65 : vector<128x32xf32>
    %cst_36 = arith.constant dense<0.000000e+00> : vector<128xf32>
    %67 = vector.multi_reduction <add>, %66, %cst_36 [1] : vector<128x32xf32> to vector<128xf32>
    %68 = vector.shape_cast %67 : vector<128xf32> to vector<128x1xf32>
    %cst_37 = arith.constant 3.200000e+01 : f32
    %69 = vector.broadcast %cst_37 : f32 to vector<128x1xf32>
    %70 = arith.divf %68, %69 : vector<128x1xf32>
    %71 = vector.broadcast %70 : vector<128x1xf32> to vector<128x32xf32>
    %72 = arith.subf %66, %71 : vector<128x32xf32>
    %73 = arith.mulf %72, %72 : vector<128x32xf32>
    %cst_38 = arith.constant dense<0.000000e+00> : vector<128xf32>
    %74 = vector.multi_reduction <add>, %73, %cst_38 [1] : vector<128x32xf32> to vector<128xf32>
    %75 = vector.shape_cast %74 : vector<128xf32> to vector<128x1xf32>
    %cst_39 = arith.constant 3.200000e+01 : f32
    %76 = vector.broadcast %cst_39 : f32 to vector<128x1xf32>
    %77 = arith.divf %75, %76 : vector<128x1xf32>
    %cst_40 = arith.constant 9.99999974E-6 : f32
    %78 = vector.broadcast %cst_40 : f32 to vector<128x1xf32>
    %79 = arith.addf %77, %78 : vector<128x1xf32>
    %80 = math.rsqrt %79 : vector<128x1xf32>
    %81 = vector.broadcast %80 : vector<128x1xf32> to vector<128x32xf32>
    %82 = arith.mulf %72, %81 : vector<128x32xf32>
    %83 = vector.broadcast %12 : vector<1x32xf32> to vector<128x32xf32>
    %84 = arith.mulf %82, %83 : vector<128x32xf32>
    %85 = vector.broadcast %13 : vector<1x32xf32> to vector<128x32xf32>
    %86 = arith.addf %84, %85 : vector<128x32xf32>
    %cst_41 = arith.constant dense<0.000000e+00> : vector<128x64xf32>
    %87 = tpu.matmul %86, %21, %cst_41 {dimension_numbers = #tpu.dot_dimension_numbers<[1], [0], [0], [1], [0, 0, 1, 1], [], []>} : vector<128x32xf32>, vector<32x64xf32>, vector<128x64xf32> -> vector<128x64xf32>
    %88 = vector.broadcast %14 : vector<1x64xf32> to vector<128x64xf32>
    %89 = arith.addf %87, %88 : vector<128x64xf32>
    %cst_42 = arith.constant 5.000000e-01 : f32
    %90 = vector.broadcast %cst_42 : f32 to vector<128x64xf32>
    %91 = arith.mulf %90, %89 : vector<128x64xf32>
    %cst_43 = arith.constant 0.707106769 : f32
    %92 = vector.broadcast %cst_43 : f32 to vector<128x64xf32>
    %93 = arith.mulf %89, %92 : vector<128x64xf32>
    %94 = math.erf %93 : vector<128x64xf32>
    %cst_44 = arith.constant 1.000000e+00 : f32
    %95 = vector.broadcast %cst_44 : f32 to vector<128x64xf32>
    %96 = arith.addf %95, %94 : vector<128x64xf32>
    %97 = arith.mulf %91, %96 : vector<128x64xf32>
    %cst_45 = arith.constant dense<0.000000e+00> : vector<128x32xf32>
    %98 = tpu.matmul %97, %23, %cst_45 {dimension_numbers = #tpu.dot_dimension_numbers<[1], [0], [0], [1], [0, 0, 1, 1], [], []>} : vector<128x64xf32>, vector<64x32xf32>, vector<128x32xf32> -> vector<128x32xf32>
    %99 = vector.broadcast %15 : vector<1x32xf32> to vector<128x32xf32>
    %100 = arith.addf %98, %99 : vector<128x32xf32>
    %cst_46 = arith.constant 5.000000e-01 : f32
    %101 = vector.broadcast %cst_46 : f32 to vector<128x32xf32>
    %102 = arith.mulf %101, %66 : vector<128x32xf32>
    %103 = arith.addf %100, %102 : vector<128x32xf32>
    %c12 = arith.constant 12 : index
    %c0_47 = arith.constant 0 : index
    %104 = vector.load %arg3[%c12, %c0_47] : memref<20x128xf32, #tpu.memory_space<vmem>>, vector<1x32xf32>
    %c13 = arith.constant 13 : index
    %c0_48 = arith.constant 0 : index
    %105 = vector.load %arg3[%c13, %c0_48] : memref<20x128xf32, #tpu.memory_space<vmem>>, vector<1x32xf32>
    %c14 = arith.constant 14 : index
    %c0_49 = arith.constant 0 : index
    %106 = vector.load %arg3[%c14, %c0_49] : memref<20x128xf32, #tpu.memory_space<vmem>>, vector<1x32xf32>
    %c15 = arith.constant 15 : index
    %c0_50 = arith.constant 0 : index
    %107 = vector.load %arg3[%c15, %c0_50] : memref<20x128xf32, #tpu.memory_space<vmem>>, vector<1x16xf32>
    %c16 = arith.constant 16 : index
    %c0_51 = arith.constant 0 : index
    %108 = vector.load %arg3[%c16, %c0_51] : memref<20x128xf32, #tpu.memory_space<vmem>>, vector<1x32xf32>
    %c17 = arith.constant 17 : index
    %c0_52 = arith.constant 0 : index
    %109 = vector.load %arg3[%c17, %c0_52] : memref<20x128xf32, #tpu.memory_space<vmem>>, vector<1x32xf32>
    %c18 = arith.constant 18 : index
    %c0_53 = arith.constant 0 : index
    %110 = vector.load %arg3[%c18, %c0_53] : memref<20x128xf32, #tpu.memory_space<vmem>>, vector<1x64xf32>
    %c19 = arith.constant 19 : index
    %c0_54 = arith.constant 0 : index
    %111 = vector.load %arg3[%c19, %c0_54] : memref<20x128xf32, #tpu.memory_space<vmem>>, vector<1x32xf32>
    %c6_55 = arith.constant 6 : index
    %c0_56 = arith.constant 0 : index
    %c0_57 = arith.constant 0 : index
    %112 = vector.load %arg2[%c6_55, %c0_56, %c0_57] : memref<10x64x128xf32, #tpu.memory_space<vmem>>, vector<1x16x32xf32>
    %113 = vector.shape_cast %112 : vector<1x16x32xf32> to vector<16x32xf32>
    %c7_58 = arith.constant 7 : index
    %c0_59 = arith.constant 0 : index
    %c0_60 = arith.constant 0 : index
    %114 = vector.load %arg2[%c7_58, %c0_59, %c0_60] : memref<10x64x128xf32, #tpu.memory_space<vmem>>, vector<1x32x16xf32>
    %115 = vector.shape_cast %114 : vector<1x32x16xf32> to vector<32x16xf32>
    %c8_61 = arith.constant 8 : index
    %c0_62 = arith.constant 0 : index
    %c0_63 = arith.constant 0 : index
    %116 = vector.load %arg2[%c8_61, %c0_62, %c0_63] : memref<10x64x128xf32, #tpu.memory_space<vmem>>, vector<1x32x64xf32>
    %117 = vector.shape_cast %116 : vector<1x32x64xf32> to vector<32x64xf32>
    %c9_64 = arith.constant 9 : index
    %c0_65 = arith.constant 0 : index
    %c0_66 = arith.constant 0 : index
    %118 = vector.load %arg2[%c9_64, %c0_65, %c0_66] : memref<10x64x128xf32, #tpu.memory_space<vmem>>, vector<1x64x32xf32>
    %119 = vector.shape_cast %118 : vector<1x64x32xf32> to vector<64x32xf32>
    %cst_67 = arith.constant dense<0.000000e+00> : vector<128xf32>
    %120 = vector.multi_reduction <add>, %103, %cst_67 [1] : vector<128x32xf32> to vector<128xf32>
    %121 = vector.shape_cast %120 : vector<128xf32> to vector<128x1xf32>
    %cst_68 = arith.constant 3.200000e+01 : f32
    %122 = vector.broadcast %cst_68 : f32 to vector<128x1xf32>
    %123 = arith.divf %121, %122 : vector<128x1xf32>
    %124 = vector.broadcast %123 : vector<128x1xf32> to vector<128x32xf32>
    %125 = arith.subf %103, %124 : vector<128x32xf32>
    %126 = arith.mulf %125, %125 : vector<128x32xf32>
    %cst_69 = arith.constant dense<0.000000e+00> : vector<128xf32>
    %127 = vector.multi_reduction <add>, %126, %cst_69 [1] : vector<128x32xf32> to vector<128xf32>
    %128 = vector.shape_cast %127 : vector<128xf32> to vector<128x1xf32>
    %cst_70 = arith.constant 3.200000e+01 : f32
    %129 = vector.broadcast %cst_70 : f32 to vector<128x1xf32>
    %130 = arith.divf %128, %129 : vector<128x1xf32>
    %cst_71 = arith.constant 9.99999974E-6 : f32
    %131 = vector.broadcast %cst_71 : f32 to vector<128x1xf32>
    %132 = arith.addf %130, %131 : vector<128x1xf32>
    %133 = math.rsqrt %132 : vector<128x1xf32>
    %134 = vector.broadcast %133 : vector<128x1xf32> to vector<128x32xf32>
    %135 = arith.mulf %125, %134 : vector<128x32xf32>
    %136 = vector.broadcast %104 : vector<1x32xf32> to vector<128x32xf32>
    %137 = arith.mulf %135, %136 : vector<128x32xf32>
    %138 = vector.broadcast %105 : vector<1x32xf32> to vector<128x32xf32>
    %139 = arith.addf %137, %138 : vector<128x32xf32>
    %140 = vector.shape_cast %139 : vector<128x32xf32> to vector<8x16x32xf32>
    %141 = tpu.transpose %140, [0, 2, 1] : vector<8x16x32xf32> -> vector<8x32x16xf32>
    %142 = vector.shape_cast %141 : vector<8x32x16xf32> to vector<256x16xf32>
    %cst_72 = arith.constant dense<0.000000e+00> : vector<256x32xf32>
    %143 = tpu.matmul %142, %113, %cst_72 {dimension_numbers = #tpu.dot_dimension_numbers<[1], [0], [0], [1], [0, 0, 1, 1], [], []>} : vector<256x16xf32>, vector<16x32xf32>, vector<256x32xf32> -> vector<256x32xf32>
    %144 = vector.broadcast %106 : vector<1x32xf32> to vector<256x32xf32>
    %145 = arith.addf %143, %144 : vector<256x32xf32>
    %cst_73 = arith.constant 5.000000e-01 : f32
    %146 = vector.broadcast %cst_73 : f32 to vector<256x32xf32>
    %147 = arith.mulf %146, %145 : vector<256x32xf32>
    %cst_74 = arith.constant 0.707106769 : f32
    %148 = vector.broadcast %cst_74 : f32 to vector<256x32xf32>
    %149 = arith.mulf %145, %148 : vector<256x32xf32>
    %150 = math.erf %149 : vector<256x32xf32>
    %cst_75 = arith.constant 1.000000e+00 : f32
    %151 = vector.broadcast %cst_75 : f32 to vector<256x32xf32>
    %152 = arith.addf %151, %150 : vector<256x32xf32>
    %153 = arith.mulf %147, %152 : vector<256x32xf32>
    %cst_76 = arith.constant dense<0.000000e+00> : vector<256x16xf32>
    %154 = tpu.matmul %153, %115, %cst_76 {dimension_numbers = #tpu.dot_dimension_numbers<[1], [0], [0], [1], [0, 0, 1, 1], [], []>} : vector<256x32xf32>, vector<32x16xf32>, vector<256x16xf32> -> vector<256x16xf32>
    %155 = vector.broadcast %107 : vector<1x16xf32> to vector<256x16xf32>
    %156 = arith.addf %154, %155 : vector<256x16xf32>
    %157 = vector.shape_cast %156 : vector<256x16xf32> to vector<8x32x16xf32>
    %158 = tpu.transpose %157, [0, 2, 1] : vector<8x32x16xf32> -> vector<8x16x32xf32>
    %159 = vector.shape_cast %158 : vector<8x16x32xf32> to vector<128x32xf32>
    %cst_77 = arith.constant 5.000000e-01 : f32
    %160 = vector.broadcast %cst_77 : f32 to vector<128x32xf32>
    %161 = arith.mulf %160, %103 : vector<128x32xf32>
    %162 = arith.addf %159, %161 : vector<128x32xf32>
    %cst_78 = arith.constant dense<0.000000e+00> : vector<128xf32>
    %163 = vector.multi_reduction <add>, %162, %cst_78 [1] : vector<128x32xf32> to vector<128xf32>
    %164 = vector.shape_cast %163 : vector<128xf32> to vector<128x1xf32>
    %cst_79 = arith.constant 3.200000e+01 : f32
    %165 = vector.broadcast %cst_79 : f32 to vector<128x1xf32>
    %166 = arith.divf %164, %165 : vector<128x1xf32>
    %167 = vector.broadcast %166 : vector<128x1xf32> to vector<128x32xf32>
    %168 = arith.subf %162, %167 : vector<128x32xf32>
    %169 = arith.mulf %168, %168 : vector<128x32xf32>
    %cst_80 = arith.constant dense<0.000000e+00> : vector<128xf32>
    %170 = vector.multi_reduction <add>, %169, %cst_80 [1] : vector<128x32xf32> to vector<128xf32>
    %171 = vector.shape_cast %170 : vector<128xf32> to vector<128x1xf32>
    %cst_81 = arith.constant 3.200000e+01 : f32
    %172 = vector.broadcast %cst_81 : f32 to vector<128x1xf32>
    %173 = arith.divf %171, %172 : vector<128x1xf32>
    %cst_82 = arith.constant 9.99999974E-6 : f32
    %174 = vector.broadcast %cst_82 : f32 to vector<128x1xf32>
    %175 = arith.addf %173, %174 : vector<128x1xf32>
    %176 = math.rsqrt %175 : vector<128x1xf32>
    %177 = vector.broadcast %176 : vector<128x1xf32> to vector<128x32xf32>
    %178 = arith.mulf %168, %177 : vector<128x32xf32>
    %179 = vector.broadcast %108 : vector<1x32xf32> to vector<128x32xf32>
    %180 = arith.mulf %178, %179 : vector<128x32xf32>
    %181 = vector.broadcast %109 : vector<1x32xf32> to vector<128x32xf32>
    %182 = arith.addf %180, %181 : vector<128x32xf32>
    %cst_83 = arith.constant dense<0.000000e+00> : vector<128x64xf32>
    %183 = tpu.matmul %182, %117, %cst_83 {dimension_numbers = #tpu.dot_dimension_numbers<[1], [0], [0], [1], [0, 0, 1, 1], [], []>} : vector<128x32xf32>, vector<32x64xf32>, vector<128x64xf32> -> vector<128x64xf32>
    %184 = vector.broadcast %110 : vector<1x64xf32> to vector<128x64xf32>
    %185 = arith.addf %183, %184 : vector<128x64xf32>
    %cst_84 = arith.constant 5.000000e-01 : f32
    %186 = vector.broadcast %cst_84 : f32 to vector<128x64xf32>
    %187 = arith.mulf %186, %185 : vector<128x64xf32>
    %cst_85 = arith.constant 0.707106769 : f32
    %188 = vector.broadcast %cst_85 : f32 to vector<128x64xf32>
    %189 = arith.mulf %185, %188 : vector<128x64xf32>
    %190 = math.erf %189 : vector<128x64xf32>
    %cst_86 = arith.constant 1.000000e+00 : f32
    %191 = vector.broadcast %cst_86 : f32 to vector<128x64xf32>
    %192 = arith.addf %191, %190 : vector<128x64xf32>
    %193 = arith.mulf %187, %192 : vector<128x64xf32>
    %cst_87 = arith.constant dense<0.000000e+00> : vector<128x32xf32>
    %194 = tpu.matmul %193, %119, %cst_87 {dimension_numbers = #tpu.dot_dimension_numbers<[1], [0], [0], [1], [0, 0, 1, 1], [], []>} : vector<128x64xf32>, vector<64x32xf32>, vector<128x32xf32> -> vector<128x32xf32>
    %195 = vector.broadcast %111 : vector<1x32xf32> to vector<128x32xf32>
    %196 = arith.addf %194, %195 : vector<128x32xf32>
    %cst_88 = arith.constant 5.000000e-01 : f32
    %197 = vector.broadcast %cst_88 : f32 to vector<128x32xf32>
    %198 = arith.mulf %197, %162 : vector<128x32xf32>
    %199 = arith.addf %196, %198 : vector<128x32xf32>
    %c1 = arith.constant 1 : index
    %c0_89 = arith.constant 0 : index
    %200 = vector.load %arg3[%c1, %c0_89] : memref<20x128xf32, #tpu.memory_space<vmem>>, vector<1x32xf32>
    %c2_90 = arith.constant 2 : index
    %c0_91 = arith.constant 0 : index
    %201 = vector.load %arg3[%c2_90, %c0_91] : memref<20x128xf32, #tpu.memory_space<vmem>>, vector<1x32xf32>
    %cst_92 = arith.constant dense<0.000000e+00> : vector<128xf32>
    %202 = vector.multi_reduction <add>, %199, %cst_92 [1] : vector<128x32xf32> to vector<128xf32>
    %203 = vector.shape_cast %202 : vector<128xf32> to vector<128x1xf32>
    %cst_93 = arith.constant 3.200000e+01 : f32
    %204 = vector.broadcast %cst_93 : f32 to vector<128x1xf32>
    %205 = arith.divf %203, %204 : vector<128x1xf32>
    %206 = vector.broadcast %205 : vector<128x1xf32> to vector<128x32xf32>
    %207 = arith.subf %199, %206 : vector<128x32xf32>
    %208 = arith.mulf %207, %207 : vector<128x32xf32>
    %cst_94 = arith.constant dense<0.000000e+00> : vector<128xf32>
    %209 = vector.multi_reduction <add>, %208, %cst_94 [1] : vector<128x32xf32> to vector<128xf32>
    %210 = vector.shape_cast %209 : vector<128xf32> to vector<128x1xf32>
    %cst_95 = arith.constant 3.200000e+01 : f32
    %211 = vector.broadcast %cst_95 : f32 to vector<128x1xf32>
    %212 = arith.divf %210, %211 : vector<128x1xf32>
    %cst_96 = arith.constant 9.99999974E-6 : f32
    %213 = vector.broadcast %cst_96 : f32 to vector<128x1xf32>
    %214 = arith.addf %212, %213 : vector<128x1xf32>
    %215 = math.rsqrt %214 : vector<128x1xf32>
    %216 = vector.broadcast %215 : vector<128x1xf32> to vector<128x32xf32>
    %217 = arith.mulf %207, %216 : vector<128x32xf32>
    %218 = vector.broadcast %200 : vector<1x32xf32> to vector<128x32xf32>
    %219 = arith.mulf %217, %218 : vector<128x32xf32>
    %220 = vector.broadcast %201 : vector<1x32xf32> to vector<128x32xf32>
    %221 = arith.addf %219, %220 : vector<128x32xf32>
    %222 = vector.shape_cast %221 : vector<128x32xf32> to vector<8x16x32xf32>
    %cst_97 = arith.constant dense<0.000000e+00> : vector<8x32xf32>
    %223 = vector.multi_reduction <add>, %222, %cst_97 [1] : vector<8x16x32xf32> to vector<8x32xf32>
    %cst_98 = arith.constant 1.600000e+01 : f32
    %224 = vector.broadcast %cst_98 : f32 to vector<8x32xf32>
    %225 = arith.divf %223, %224 : vector<8x32xf32>
    %c1_99 = arith.constant 1 : index
    %c0_100 = arith.constant 0 : index
    %c0_101 = arith.constant 0 : index
    %226 = vector.load %arg2[%c1_99, %c0_100, %c0_101] : memref<10x64x128xf32, #tpu.memory_space<vmem>>, vector<1x32x128xf32>
    %227 = vector.shape_cast %226 : vector<1x32x128xf32> to vector<32x128xf32>
    %c3_102 = arith.constant 3 : index
    %c0_103 = arith.constant 0 : index
    %228 = vector.load %arg3[%c3_102, %c0_103] : memref<20x128xf32, #tpu.memory_space<vmem>>, vector<1x128xf32>
    %cst_104 = arith.constant dense<0.000000e+00> : vector<8x128xf32>
    %229 = tpu.matmul %225, %227, %cst_104 {dimension_numbers = #tpu.dot_dimension_numbers<[1], [0], [0], [1], [0, 0, 1, 1], [], []>} : vector<8x32xf32>, vector<32x128xf32>, vector<8x128xf32> -> vector<8x128xf32>
    %230 = vector.broadcast %228 : vector<1x128xf32> to vector<8x128xf32>
    %231 = arith.addf %229, %230 : vector<8x128xf32>
    %c0_105 = arith.constant 0 : index
    %c0_106 = arith.constant 0 : index
    %232 = vector.load %arg4[%c0_105, %c0_106] : memref<8x128xf32, #tpu.memory_space<vmem>>, vector<8x128xf32>
    tpu.vector_store %arg4[%c0_105, %c0_106], %231 {strides = array<i32>} : memref<8x128xf32, #tpu.memory_space<vmem>>, vector<8x128xf32>,
    return
  }
  func.func @transform_0(%arg0: i32) -> (i32, i32, i32) {
    %c0_i32 = arith.constant 0 : i32
    %c0_i32_0 = arith.constant 0 : i32
    %c0_i32_1 = arith.constant 0 : i32
    return %arg0, %c0_i32, %c0_i32_0 : i32, i32, i32
  }
  func.func @transform_1(%arg0: i32) -> (i32, i32, i32) {
    %c0_i32 = arith.constant 0 : i32
    %c0_i32_0 = arith.constant 0 : i32
    %c0_i32_1 = arith.constant 0 : i32
    %c0_i32_2 = arith.constant 0 : i32
    return %c0_i32, %c0_i32_0, %c0_i32_1 : i32, i32, i32
  }
  func.func @transform_2(%arg0: i32) -> (i32, i32) {
    %c0_i32 = arith.constant 0 : i32
    %c0_i32_0 = arith.constant 0 : i32
    %c0_i32_1 = arith.constant 0 : i32
    return %c0_i32, %c0_i32_0 : i32, i32
  }
  func.func @transform_3(%arg0: i32) -> (i32, i32) {
    %c0_i32 = arith.constant 0 : i32
    %c0_i32_0 = arith.constant 0 : i32
    return %arg0, %c0_i32 : i32, i32
  }
}

</mosaic_0001>

<bundles_post_ra>
// kernel: mlp_mixer_forward.1
= control target key start
LH: loop header
LB: loop body
LE: loop exit
PB: predicated region body
PF: predicated region fallthrough
CT: control target
= control target key end

     0   :  { %vm41_vm0 = vcmask 392192   ;;  %vm265_vm1 = vcmask 261120   ;;  %vm775_vm2 = vcmask 130048   ;;  %vm2399_vm3 = vcmask 523264   ;;  %s8670_s1 = inlined_call_operand.vmem [shape: f32[10,64,128], index: 1, kind: input, shape index: {}]   ;;  %s8671_s0 = inlined_call_operand.vmem [shape: f32[8,16,48], index: 0, kind: input, shape index: {}]   ;;  %s8672_s2 = inlined_call_operand.vmem [shape: f32[20,128], index: 2, kind: input, shape index: {}]   ;;  %s8673_s3 = inlined_call_operand.vmem [shape: f32[8,128], index: 3, kind: output, shape index: {}]  }
   0x1   :  { %v30_v0 = vld [vmem:[%s8670_s1] sm:$0xff]  ;;  %v31_v1 = vld [vmem:[%s8670_s1 + $0x8] sm:$0xff]  ;;  %v32_v2 = vld [vmem:[%s8670_s1 + $0x10] sm:$0xff]  ;;  %vm6830_vm4 = vmmov 0   ;;  %vm5360_vm5 = vcmask 1041409   ;;  %vm5362_vm6 = vcmask 1042434  }
   0x2   :  { %v6382_v3 = vpack.c.bf16 %v31_v1, %v30_v0  ;;  %v33_v4 = vld [vmem:[%s8670_s1 + $0x18] sm:$0xff]  ;;  %v34_v6 = vld [vmem:[%s8670_s1 + $0x20] sm:$0xff]  ;;  %v35_v7 = vld [vmem:[%s8670_s1 + $0x28] sm:$0xff]  ;;  %vm5364_vm7 = vcmask 1043459   ;;  %vm5366_vm8 = vcmask 1044484   ;;  %vm5368_vm9 = vcmask 1045509  }
   0x3   :  { %v6386_v5 = vpack.c.bf16 %v33_v4, %v32_v2  ;;  %v14_v8 = vld [vmem:[%s8671_s0] sm:$0xff]  ;;  %v6390_v9 = vpack.c.bf16 %v35_v7, %v34_v6  ;;  %v15_v10 = vld [vmem:[%s8671_s0 + $0x8] sm:$0xff]  ;;  %v16_v11 = vld [vmem:[%s8671_s0 + $0x10] sm:$0xff]  ;;  %vm5370_vm10 = vcmask 1046534   ;;  %vm5372_vm11 = vcmask 1047559  }
   0x4   :  { %6383 = vmatprep.subr.bf16.mxu0 %v6382_v3  ;;  %5987 = vmatprep.mubr.msk.f32.mxu0 %vm41_vm0, %v14_v8  ;;  %v17_v12 = vld [vmem:[%s8671_s0 + $0x18] sm:$0xff]  ;;  %v18_v13 = vld [vmem:[%s8671_s0 + $0x20] sm:$0xff]  ;;  %v19_v14 = vld [vmem:[%s8671_s0 + $0x28] sm:$0xff] }
   0x5   :  { %6385 = vmatpush3.bf16.msra.mxu0 %v6382_v3  ;;  %v20_v15 = vld [vmem:[%s8671_s0 + $0x30] sm:$0xff]  ;;  %v21_v16 = vld [vmem:[%s8671_s0 + $0x38] sm:$0xff]  ;;  %v22_v17 = vld [vmem:[%s8671_s0 + $0x40] sm:$0xff] }
   0x6   :  { %6387 = vmatprep.subr.bf16.mxu0 %v6386_v5  ;;  %v23_v18 = vld [vmem:[%s8671_s0 + $0x48] sm:$0xff]  ;;  %v24_v19 = vld [vmem:[%s8671_s0 + $0x50] sm:$0xff]  ;;  %v25_v20 = vld [vmem:[%s8671_s0 + $0x58] sm:$0xff] }
   0x7   :  { %v26_v21 = vld [vmem:[%s8671_s0 + $0x60] sm:$0xff]  ;;  %v27_v22 = vld [vmem:[%s8671_s0 + $0x68] sm:$0xff]  ;;  %v28_v23 = vld [vmem:[%s8671_s0 + $0x70] sm:$0xff] }
   0x8   :  { %v29_v24 = vld [vmem:[%s8671_s0 + $0x78] sm:$0xff]  ;;  %v5451_v25 = vld [vmem:[%s8672_s2] ss:$0 sm:$0xff] }
   0x9   :  { %6389 = vmatpush3.bf16.msra.mxu0 %v6386_v5 }
   0xa   :  { %6391 = vmatprep.subr.bf16.mxu0 %v6390_v9 }
   0xd   :  { %6393 = vmatpush3.bf16.msra.mxu0 %v6390_v9 }
  0x10   :  { %5988 = vmatmul.mubr.msk.f32.vlgmr.msra.gmra.mrb[0].mxu0 %vm41_vm0, %v15_v10 }
  0x11   :  { %5990 = vmatprep.mubr.msk.f32.mxu0 %vm41_vm0, %v16_v11 }
  0x14   :  { %5991 = vmatmul.mubr.msk.f32.gmra.mrb[2].mxu0 %vm41_vm0, %v17_v12 }
  0x15   :  { %5993 = vmatprep.mubr.msk.f32.mxu0 %vm41_vm0, %v18_v13 }
  0x18   :  { %5994 = vmatmul.mubr.msk.f32.gmra.mrb[4].mxu0 %vm41_vm0, %v19_v14 }
  0x19   :  { %5996 = vmatprep.mubr.msk.f32.mxu0 %vm41_vm0, %v20_v15 }
  0x1c   :  { %5997 = vmatmul.mubr.msk.f32.gmra.mrb[6].mxu0 %vm41_vm0, %v21_v16 }
  0x1d   :  { %5999 = vmatprep.mubr.msk.f32.mxu0 %vm41_vm0, %v22_v17 }
  0x20   :  { %6000 = vmatmul.mubr.msk.f32.gmra.mrb[8].mxu0 %vm41_vm0, %v23_v18 }
  0x21   :  { %6002 = vmatprep.mubr.msk.f32.mxu0 %vm41_vm0, %v24_v19 }
  0x24   :  { %6003 = vmatmul.mubr.msk.f32.gmra.mrb[10].mxu0 %vm41_vm0, %v25_v20 }
  0x25   :  { %6005 = vmatprep.mubr.msk.f32.mxu0 %vm41_vm0, %v26_v21 }
  0x28   :  { %6006 = vmatmul.mubr.msk.f32.gmra.mrb[12].mxu0 %vm41_vm0, %v27_v22 }
  0x29   :  { %6008 = vmatprep.mubr.msk.f32.mxu0 %vm41_vm0, %v28_v23 }
  0x2c   :  { %6009 = vmatmul.mubr.msk.f32.gmra.mrb[14].mxu0 %vm41_vm0, %v29_v24 }
  0xe3   :  { %v5989_v26 = vpop.f32.mrb[0].mxu0 }
  0xe4   :  { %v156_v27 = vpop.f32.mrb[1].mxu0  ;;  %v6939_v29 = vadd.f32 %v5989_v26, %v5451_v25 }
  0xe5   :  { %v6937_v28 = vadd.f32 %v5451_v25, %v156_v27 }
  0xe6   :  { %v269_v37 = vsel %vm265_vm1, %v6939_v29, 0.0 }
  0xe7   :  { %v5992_v30 = vpop.f32.mrb[2].mxu0  ;;  %v266_v31 = vsel %vm265_vm1, %v6937_v28, 0.0 }
  0xe8   :  { %v166_v32 = vpop.f32.mrb[3].mxu0  ;;  %267 = vadd.xlane.f32.xlu0 %v266_v31  ;;  %v6943_v33 = vadd.f32 %v5992_v30, %v5451_v25 }
  0xe9   :  { %v6945_v34 = vadd.f32 %v5451_v25, %v166_v32 }
  0xea   :  { %v275_v41 = vsel %vm265_vm1, %v6943_v33, 0.0 }
  0xeb   :  { %v5995_v35 = vpop.f32.mrb[4].mxu0  ;;  %v272_v36 = vsel %vm265_vm1, %v6945_v34, 0.0 }
  0xec   :  { %v176_v38 = vpop.f32.mrb[5].mxu0  ;;  %273 = vadd.xlane.f32.xlu1 %v272_v36  ;;  %270 = vadd.xlane.f32.xlu0 %v269_v37  ;;  %v6951_v39 = vadd.f32 %v5995_v35, %v5451_v25 }
  0xed   :  { %v6953_v40 = vadd.f32 %v5451_v25, %v176_v38 }
  0xee   :  { %v281_v47 = vsel %vm265_vm1, %v6951_v39, 0.0 }
  0xef   :  { %v5998_v42 = vpop.f32.mrb[6].mxu0  ;;  %v278_v43 = vsel %vm265_vm1, %v6953_v40, 0.0 }
  0xf0   :  { %v186_v44 = vpop.f32.mrb[7].mxu0  ;;  %276 = vadd.xlane.f32.xlu1 %v275_v41  ;;  %279 = vadd.xlane.f32.xlu0 %v278_v43  ;;  %v6959_v45 = vadd.f32 %v5998_v42, %v5451_v25 }
  0xf1   :  { %v6961_v46 = vadd.f32 %v5451_v25, %v186_v44 }
  0xf2   :  { %v287_v53 = vsel %vm265_vm1, %v6959_v45, 0.0 }
  0xf3   :  { %v6001_v48 = vpop.f32.mrb[8].mxu0  ;;  %v284_v49 = vsel %vm265_vm1, %v6961_v46, 0.0 }
  0xf4   :  { %v196_v50 = vpop.f32.mrb[9].mxu0  ;;  %282 = vadd.xlane.f32.xlu1 %v281_v47  ;;  %285 = vadd.xlane.f32.xlu0 %v284_v49  ;;  %v6967_v51 = vadd.f32 %v6001_v48, %v5451_v25 }
  0xf5   :  { %v6969_v52 = vadd.f32 %v5451_v25, %v196_v50 }
  0xf6   :  { %v293_v59 = vsel %vm265_vm1, %v6967_v51, 0.0 }
  0xf7   :  { %v6004_v54 = vpop.f32.mrb[10].mxu0  ;;  %v290_v55 = vsel %vm265_vm1, %v6969_v52, 0.0 }
  0xf8   :  { %v206_v56 = vpop.f32.mrb[11].mxu0  ;;  %288 = vadd.xlane.f32.xlu1 %v287_v53  ;;  %291 = vadd.xlane.f32.xlu0 %v290_v55  ;;  %v6975_v57 = vadd.f32 %v6004_v54, %v5451_v25 }
  0xf9   :  { %v6977_v58 = vadd.f32 %v5451_v25, %v206_v56 }
  0xfa   :  { %v299_v1 = vsel %vm265_vm1, %v6975_v57, 0.0 }
  0xfb   :  { %v6007_v60 = vpop.f32.mrb[12].mxu0  ;;  %v296_v61 = vsel %vm265_vm1, %v6977_v58, 0.0 }
  0xfc   :  { %v216_v62 = vpop.f32.mrb[13].mxu0  ;;  %294 = vadd.xlane.f32.xlu1 %v293_v59  ;;  %297 = vadd.xlane.f32.xlu0 %v296_v61  ;;  %v6983_v63 = vadd.f32 %v6007_v60, %v5451_v25 }
  0xfd   :  { %v6985_v0 = vadd.f32 %v5451_v25, %v216_v62 }
  0xfe   :  { %v305_v7 = vsel %vm265_vm1, %v6983_v63, 0.0 }
  0xff   :  { %v6010_v2 = vpop.f32.mrb[14].mxu0  ;;  %v302_v3 = vsel %vm265_vm1, %v6985_v0, 0.0 }
 0x100   :  { %v226_v4 = vpop.f32.mrb[15].mxu0  ;;  %300 = vadd.xlane.f32.xlu1 %v299_v1  ;;  %303 = vadd.xlane.f32.xlu0 %v302_v3  ;;  %v6991_v5 = vadd.f32 %v6010_v2, %v5451_v25 }
 0x101   :  { %v6993_v6 = vadd.f32 %v5451_v25, %v226_v4 }
 0x102   :  { %v311_v9 = vsel %vm265_vm1, %v6991_v5, 0.0 }
 0x103   :  { %v308_v8 = vsel %vm265_vm1, %v6993_v6, 0.0 }
 0x104   :  { %306 = vadd.xlane.f32.xlu1 %v305_v7  ;;  %309 = vadd.xlane.f32.xlu0 %v308_v8 }
 0x108   :  { %312 = vadd.xlane.f32.xlu1 %v311_v9 }
 0x175   :  { %v268_v10 = vpop.xlane.xlu0 %267 }
 0x176   :  { %v315_v11 = vmul.f32 0.03125, %v268_v10 }
 0x178   :  { %v7002_v12 = vsub.f32 %v6937_v28, %v315_v11 }
 0x179   :  { %v274_v13 = vpop.xlane.xlu1 %273  ;;  %v271_v14 = vpop.xlane.xlu0 %270 }
 0x17a   :  { %v317_v15 = vmul.f32 0.03125, %v274_v13  ;;  %v316_v16 = vmul.f32 0.03125, %v271_v14  ;;  %v347_v17 = vmul.f32 %v7002_v12, %v7002_v12 }
 0x17c   :  { %v7007_v18 = vsub.f32 %v6945_v34, %v317_v15  ;;  %v7010_v19 = vsub.f32 %v6939_v29, %v316_v16  ;;  %v363_v20 = vsel %vm265_vm1, %v347_v17, 0.0 }
 0x17d   :  { %v277_v21 = vpop.xlane.xlu1 %276  ;;  %364 = vadd.xlane.f32.xlu0 %v363_v20  ;;  %v280_v22 = vpop.xlane.xlu0 %279 }
 0x17e   :  { %v318_v23 = vmul.f32 0.03125, %v277_v21  ;;  %v319_v24 = vmul.f32 0.03125, %v280_v22  ;;  %v349_v25 = vmul.f32 %v7007_v18, %v7007_v18  ;;  %v348_v26 = vmul.f32 %v7010_v19, %v7010_v19 }
 0x180   :  { %v7018_v27 = vsub.f32 %v6943_v33, %v318_v23  ;;  %v7021_v30 = vsub.f32 %v6953_v40, %v319_v24  ;;  %v369_v31 = vsel %vm265_vm1, %v349_v25, 0.0  ;;  %v366_v32 = vsel %vm265_vm1, %v348_v26, 0.0 }
 0x181   :  { %v283_v35 = vpop.xlane.xlu1 %282  ;;  %370 = vadd.xlane.f32.xlu0 %v369_v31  ;;  %367 = vadd.xlane.f32.xlu1 %v366_v32  ;;  %v286_v36 = vpop.xlane.xlu0 %285 }
 0x182   :  { %v320_v37 = vmul.f32 0.03125, %v283_v35  ;;  %v321_v38 = vmul.f32 0.03125, %v286_v36  ;;  %v350_v41 = vmul.f32 %v7018_v27, %v7018_v27  ;;  %v351_v42 = vmul.f32 %v7021_v30, %v7021_v30 }
 0x184   :  { %v7030_v43 = vsub.f32 %v6951_v39, %v320_v37  ;;  %v7033_v44 = vsub.f32 %v6961_v46, %v321_v38  ;;  %v372_v47 = vsel %vm265_vm1, %v350_v41, 0.0  ;;  %v375_v48 = vsel %vm265_vm1, %v351_v42, 0.0 }
 0x185   :  { %v289_v49 = vpop.xlane.xlu1 %288  ;;  %373 = vadd.xlane.f32.xlu1 %v372_v47  ;;  %376 = vadd.xlane.f32.xlu0 %v375_v48  ;;  %v292_v50 = vpop.xlane.xlu0 %291 }
 0x186   :  { %v322_v53 = vmul.f32 0.03125, %v289_v49  ;;  %v323_v54 = vmul.f32 0.03125, %v292_v50  ;;  %v352_v55 = vmul.f32 %v7030_v43, %v7030_v43  ;;  %v353_v56 = vmul.f32 %v7033_v44, %v7033_v44 }
 0x188   :  { %v7042_v59 = vsub.f32 %v6959_v45, %v322_v53  ;;  %v7045_v60 = vsub.f32 %v6969_v52, %v323_v54  ;;  %v378_v61 = vsel %vm265_vm1, %v352_v55, 0.0  ;;  %v381_v62 = vsel %vm265_vm1, %v353_v56, 0.0 }
 0x189   :  { %v295_v1 = vpop.xlane.xlu1 %294  ;;  %379 = vadd.xlane.f32.xlu1 %v378_v61  ;;  %382 = vadd.xlane.f32.xlu0 %v381_v62  ;;  %v298_v2 = vpop.xlane.xlu0 %297 }
 0x18a   :  { %v324_v3 = vmul.f32 0.03125, %v295_v1  ;;  %v325_v4 = vmul.f32 0.03125, %v298_v2  ;;  %v354_v7 = vmul.f32 %v7042_v59, %v7042_v59  ;;  %v355_v8 = vmul.f32 %v7045_v60, %v7045_v60  ;;  %v5468_v1 = vld [vmem:[%s8670_s1 + $0x80] sm:$0xff]  ;;  %v5469_v2 = vld [vmem:[%s8670_s1 + $0x88] sm:$0xff] }
 0x18c   :  { %v7054_v9 = vsub.f32 %v6967_v51, %v324_v3  ;;  %v7057_v10 = vsub.f32 %v6977_v58, %v325_v4  ;;  %v384_v11 = vsel %vm265_vm1, %v354_v7, 0.0  ;;  %v387_v13 = vsel %vm265_vm1, %v355_v8, 0.0 }
 0x18d   :  { %v301_v14 = vpop.xlane.xlu1 %300  ;;  %385 = vadd.xlane.f32.xlu1 %v384_v11  ;;  %388 = vadd.xlane.f32.xlu0 %v387_v13  ;;  %v304_v15 = vpop.xlane.xlu0 %303  ;;  %v6394_v3 = vpack.c.bf16 %v5469_v2, %v5468_v1 }
 0x18e   :  { %v326_v16 = vmul.f32 0.03125, %v301_v14  ;;  %v327_v17 = vmul.f32 0.03125, %v304_v15  ;;  %v356_v20 = vmul.f32 %v7054_v9, %v7054_v9  ;;  %v357_v21 = vmul.f32 %v7057_v10, %v7057_v10 }
 0x18f   :  { %6395 = vmatprep.subr.bf16.mxu0 %v6394_v3  ;;  %6472 = vmatprep.subr.bf16.mxu1 %v6394_v3 }
 0x190   :  { %v7066_v22 = vsub.f32 %v6975_v57, %v326_v16  ;;  %v7069_v23 = vsub.f32 %v6985_v0, %v327_v17  ;;  %v390_v24 = vsel %vm265_vm1, %v356_v20, 0.0  ;;  %v393_v25 = vsel %vm265_vm1, %v357_v21, 0.0  ;;  %6397 = vmatpush3.bf16.msra.mxu0 %v6394_v3  ;;  %6473 = vmatpush3.bf16.msra.mxu1 %v6394_v3 }
 0x191   :  { %v307_v26 = vpop.xlane.xlu1 %306  ;;  %391 = vadd.xlane.f32.xlu1 %v390_v24  ;;  %394 = vadd.xlane.f32.xlu0 %v393_v25  ;;  %v310_v31 = vpop.xlane.xlu0 %309 }
 0x192   :  { %v328_v32 = vmul.f32 0.03125, %v307_v26  ;;  %v329_v35 = vmul.f32 0.03125, %v310_v31  ;;  %v358_v36 = vmul.f32 %v7066_v22, %v7066_v22  ;;  %v359_v37 = vmul.f32 %v7069_v23, %v7069_v23 }
 0x194   :  { %v7078_v38 = vsub.f32 %v6983_v63, %v328_v32  ;;  %v7081_v41 = vsub.f32 %v6993_v6, %v329_v35  ;;  %v396_v42 = vsel %vm265_vm1, %v358_v36, 0.0  ;;  %v399_v47 = vsel %vm265_vm1, %v359_v37, 0.0 }
 0x195   :  { %v313_v48 = vpop.xlane.xlu1 %312  ;;  %397 = vadd.xlane.f32.xlu1 %v396_v42  ;;  %400 = vadd.xlane.f32.xlu0 %v399_v47 }
 0x196   :  { %v330_v49 = vmul.f32 0.03125, %v313_v48  ;;  %v360_v50 = vmul.f32 %v7078_v38, %v7078_v38  ;;  %v361_v53 = vmul.f32 %v7081_v41, %v7081_v41 }
 0x198   :  { %v7090_v54 = vsub.f32 %v6991_v5, %v330_v49  ;;  %v402_v55 = vsel %vm265_vm1, %v360_v50, 0.0  ;;  %v405_v56 = vsel %vm265_vm1, %v361_v53, 0.0  ;;  %v7106_v49 = vld [vmem:[%s8672_s2 + $0x4] ss:$0 sm:$0xff] }
 0x199   :  { %403 = vadd.xlane.f32.xlu1 %v402_v55  ;;  %406 = vadd.xlane.f32.xlu0 %v405_v56 }
 0x19a   :  { %v362_v61 = vmul.f32 %v7090_v54, %v7090_v54 }
 0x19c   :  { %v408_v62 = vsel %vm265_vm1, %v362_v61, 0.0 }
 0x19d   :  { %409 = vadd.xlane.f32.xlu1 %v408_v62  ;;  %v7112_v62 = vld [vmem:[%s8672_s2 + $0x5] ss:$0 sm:$0xff] }
 0x20a   :  { %v365_v4 = vpop.xlane.xlu0 %364 }
 0x20b   :  { %v411_v7 = vmul.f32 0.03125, %v365_v4 }
 0x20d   :  { %v427_v8 = vadd.f32 1e-05, %v411_v7 }
 0x20e   :  { %v368_v11 = vpop.xlane.xlu1 %367  ;;  %v371_v13 = vpop.xlane.xlu0 %370 }
 0x20f   :  { %6477 = vrsqrt.f32 %v427_v8  ;;  %v412_v14 = vmul.f32 0.03125, %v368_v11  ;;  %v413_v15 = vmul.f32 0.03125, %v371_v13 }
 0x211   :  { %v428_v16 = vadd.f32 1e-05, %v412_v14  ;;  %v429_v17 = vadd.f32 1e-05, %v413_v15 }
 0x212   :  { %v374_v20 = vpop.xlane.xlu1 %373  ;;  %v377_v21 = vpop.xlane.xlu0 %376 }
 0x213   :  { %6479 = vrsqrt.f32 %v428_v16  ;;  %v414_v24 = vmul.f32 0.03125, %v374_v20  ;;  %v415_v25 = vmul.f32 0.03125, %v377_v21 }
 0x214   :  { %6481 = vrsqrt.f32 %v429_v17 }
 0x215   :  { %v430_v26 = vadd.f32 1e-05, %v414_v24  ;;  %v431_v31 = vadd.f32 1e-05, %v415_v25 }
 0x216   :  { %v380_v32 = vpop.xlane.xlu1 %379  ;;  %v383_v35 = vpop.xlane.xlu0 %382 }
 0x217   :  { %6483 = vrsqrt.f32 %v430_v26  ;;  %v416_v36 = vmul.f32 0.03125, %v380_v32  ;;  %v417_v37 = vmul.f32 0.03125, %v383_v35 }
 0x218   :  { %6485 = vrsqrt.f32 %v431_v31 }
 0x219   :  { %v6478_v42 = vpop.eup %6477  ;;  %v432_v47 = vadd.f32 1e-05, %v416_v36  ;;  %v433_v48 = vadd.f32 1e-05, %v417_v37 }
 0x21a   :  { %v386_v50 = vpop.xlane.xlu1 %385  ;;  %v389_v53 = vpop.xlane.xlu0 %388  ;;  %v459_v55 = vmul.f32 %v6478_v42, %v7002_v12 }
 0x21b   :  { %6487 = vrsqrt.f32 %v432_v47  ;;  %v418_v56 = vmul.f32 0.03125, %v386_v50  ;;  %v419_v61 = vmul.f32 0.03125, %v389_v53 }
 0x21c   :  { %6489 = vrsqrt.f32 %v433_v48  ;;  %v479_v1 = vmul.f32 %v7106_v49, %v459_v55 }
 0x21d   :  { %v6480_v2 = vpop.eup %6479  ;;  %v434_v3 = vadd.f32 1e-05, %v418_v56  ;;  %v435_v13 = vadd.f32 1e-05, %v419_v61 }
 0x21e   :  { %v6482_v4 = vpop.eup %6481  ;;  %v392_v7 = vpop.xlane.xlu1 %391  ;;  %v499_v11 = vadd.f32 %v7112_v62, %v479_v1  ;;  %v460_v12 = vmul.f32 %v6480_v2, %v7010_v19 }
 0x21f   :  { %v395_v8 = vpop.xlane.xlu0 %394  ;;  %6491 = vrsqrt.f32 %v434_v3  ;;  %v420_v14 = vmul.f32 0.03125, %v392_v7  ;;  %v461_v15 = vmul.f32 %v6482_v4, %v7007_v18 }
 0x220   :  { %v421_v16 = vmul.f32 0.03125, %v395_v8  ;;  %515 = vxpose.xlu0.b32.start [1/2] (short) (narrow) %v499_v11, 32  ;;  %v480_v17 = vmul.f32 %v7106_v49, %v460_v12  ;;  %6493 = vrsqrt.f32 %v435_v13 }
 0x221   :  { %v6484_v20 = vpop.eup %6483  ;;  %v481_v21 = vmul.f32 %v7106_v49, %v461_v15  ;;  %v436_v19 = vadd.f32 1e-05, %v420_v14 }
 0x222   :  { %v6486_v24 = vpop.eup %6485  ;;  %v398_v25 = vpop.xlane.xlu1 %397  ;;  %v500_v26 = vadd.f32 %v7112_v62, %v480_v17  ;;  %v462_v31 = vmul.f32 %v6484_v20, %v7018_v27  ;;  %v437_v35 = vadd.f32 1e-05, %v421_v16 }
 0x223   :  { %v501_v32 = vadd.f32 %v7112_v62, %v481_v21  ;;  %v422_v36 = vmul.f32 0.03125, %v398_v25  ;;  %v401_v18 = vpop.xlane.xlu0 %400  ;;  %v463_v42 = vmul.f32 %v6486_v24, %v7021_v30  ;;  %6495 = vrsqrt.f32 %v436_v19 }
 0x224   :  { %516 = vxpose.xlu0.b32.end [2/2] (short) (narrow) %v500_v26, 32  ;;  %v482_v37 = vmul.f32 %v7106_v49, %v462_v31  ;;  %v423_v53 = vmul.f32 0.03125, %v401_v18  ;;  %6497 = vrsqrt.f32 %v437_v35 }
 0x225   :  { %v6488_v47 = vpop.eup %6487  ;;  %547 = vxpose.xlu1.b32.start [1/2] (short) (narrow) %v501_v32, 32  ;;  %v483_v27 = vmul.f32 %v7106_v49, %v463_v42  ;;  %v438_v56 = vadd.f32 1e-05, %v422_v36 }
 0x226   :  { %v6490_v48 = vpop.eup %6489  ;;  %v502_v50 = vadd.f32 %v7112_v62, %v482_v37  ;;  %v464_v55 = vmul.f32 %v6488_v47, %v7030_v43  ;;  %v404_v61 = vpop.xlane.xlu1 %403  ;;  %v439_v30 = vadd.f32 1e-05, %v423_v53 }
 0x227   :  { %v465_v1 = vmul.f32 %v6490_v48, %v7033_v44  ;;  %v407_v3 = vpop.xlane.xlu0 %406  ;;  %v503_v4 = vadd.f32 %v7112_v62, %v483_v27  ;;  %6499 = vrsqrt.f32 %v438_v56  ;;  %v424_v8 = vmul.f32 0.03125, %v404_v61 }
 0x228   :  { %v484_v7 = vmul.f32 %v7106_v49, %v464_v55  ;;  %v425_v13 = vmul.f32 0.03125, %v407_v3  ;;  %6501 = vrsqrt.f32 %v439_v30 }
 0x229   :  { %v6492_v2 = vpop.eup %6491  ;;  %548 = vxpose.xlu1.b32.end [2/2] (short) (narrow) %v502_v50, 32  ;;  %v485_v11 = vmul.f32 %v7106_v49, %v465_v1  ;;  %v440_v15 = vadd.f32 1e-05, %v424_v8 }
 0x22a   :  { %v466_v12 = vmul.f32 %v6492_v2, %v7042_v59  ;;  %v6494_v43 = vpop.eup %6493  ;;  %v410_v14 = vpop.xlane.xlu1 %409  ;;  %v504_v44 = vadd.f32 %v7112_v62, %v484_v7  ;;  %v441_v24 = vadd.f32 1e-05, %v425_v13 }
 0x22b   :  { %v505_v16 = vadd.f32 %v7112_v62, %v485_v11  ;;  %v467_v20 = vmul.f32 %v6494_v43, %v7045_v60  ;;  %v426_v25 = vmul.f32 0.03125, %v410_v14  ;;  %6503 = vrsqrt.f32 %v440_v15 }
 0x22c   :  { %v486_v17 = vmul.f32 %v7106_v49, %v466_v12  ;;  %6505 = vrsqrt.f32 %v441_v24 }
 0x22d   :  { %579 = vxpose.xlu0.b32.start [1/2] (short) (narrow) %v503_v4, 32  ;;  %v6496_v21 = vpop.eup %6495  ;;  %v487_v31 = vmul.f32 %v7106_v49, %v467_v20  ;;  %v442_v32 = vadd.f32 1e-05, %v426_v25 }
 0x22e   :  { %v6498_v26 = vpop.eup %6497  ;;  %v506_v59 = vadd.f32 %v7112_v62, %v486_v17  ;;  %v468_v19 = vmul.f32 %v6496_v21, %v7054_v9 }
 0x22f   :  { %v469_v35 = vmul.f32 %v6498_v26, %v7057_v10  ;;  %v507_v60 = vadd.f32 %v7112_v62, %v487_v31  ;;  %6507 = vrsqrt.f32 %v442_v32 }
 0x230   :  { %v488_v18 = vmul.f32 %v7106_v49, %v468_v19 }
 0x231   :  { %580 = vxpose.xlu0.b32.end [2/2] (short) (narrow) %v504_v44, 32  ;;  %v6500_v36 = vpop.eup %6499  ;;  %v489_v42 = vmul.f32 %v7106_v49, %v469_v35 }
 0x232   :  { %611 = vxpose.xlu1.b32.start [1/2] (short) (narrow) %v505_v16, 32  ;;  %v6502_v37 = vpop.eup %6501  ;;  %v470_v47 = vmul.f32 %v6500_v36, %v7066_v22  ;;  %v508_v48 = vadd.f32 %v7112_v62, %v488_v18 }
 0x233   :  { %v509_v9 = vadd.f32 %v7112_v62, %v489_v42  ;;  %v471_v10 = vmul.f32 %v6502_v37, %v7069_v23 }
 0x234   :  { %v490_v50 = vmul.f32 %v7106_v49, %v470_v47 }
 0x235   :  { %v6504_v53 = vpop.eup %6503  ;;  %v491_v56 = vmul.f32 %v7106_v49, %v471_v10  ;;  %v5470_v10 = vld [vmem:[%s8670_s1 + $0xc0] sm:$0xff] }
 0x236   :  { %612 = vxpose.xlu1.b32.end [2/2] (short) (narrow) %v506_v59, 32  ;;  %v6506_v27 = vpop.eup %6505  ;;  %v510_v55 = vadd.f32 %v7112_v62, %v490_v50  ;;  %v472_v61 = vmul.f32 %v6504_v53, %v7078_v38  ;;  %v5471_v53 = vld [vmem:[%s8670_s1 + $0xc8] sm:$0xff] }
 0x237   :  { %v473_v22 = vmul.f32 %v6506_v27, %v7081_v41  ;;  %v511_v2 = vadd.f32 %v7112_v62, %v491_v56  ;;  %v6398_v27 = vpack.c.bf16 %v5471_v53, %v5470_v10  ;;  %v5473_v56 = vld [vmem:[%s8670_s1 + $0xd8] sm:$0xff] }
 0x238   :  { %v492_v3 = vmul.f32 %v7106_v49, %v472_v61 }
 0x239   :  { %v6508_v1 = vpop.eup %6507  ;;  %v493_v23 = vmul.f32 %v7106_v49, %v473_v22  ;;  %6399 = vmatprep.subr.bf16.mxu0 %v6398_v27  ;;  %v7208_v22 = vld [vmem:[%s8672_s2 + $0x6] ss:$0 sm:$0xff] }
 0x23a   :  { %643 = vxpose.xlu0.b32.start [1/2] (short) (narrow) %v507_v60, 32  ;;  %v474_v30 = vmul.f32 %v6508_v1, %v7090_v54  ;;  %v512_v4 = vadd.f32 %v7112_v62, %v492_v3 }
 0x23b   :  { %v513_v7 = vadd.f32 %v7112_v62, %v493_v23 }
 0x23c   :  { %v494_v8 = vmul.f32 %v7106_v49, %v474_v30 }
 0x23e   :  { %644 = vxpose.xlu0.b32.end [2/2] (short) (narrow) %v508_v48, 32  ;;  %v514_v38 = vadd.f32 %v7112_v62, %v494_v8 }
 0x23f   :  { %675 = vxpose.xlu1.b32.start [1/2] (short) (narrow) %v509_v9, 32 }
 0x243   :  { %676 = vxpose.xlu1.b32.end [2/2] (short) (narrow) %v510_v55, 32  ;;  %v5472_v55 = vld [vmem:[%s8670_s1 + $0xd0] sm:$0xff] }
 0x244   :  { %v6402_v61 = vpack.c.bf16 %v5473_v56, %v5472_v55 }
 0x247   :  { %707 = vxpose.xlu0.b32.start [1/2] (short) (narrow) %v511_v2, 32 }
 0x24b   :  { %708 = vxpose.xlu0.b32.end [2/2] (short) (narrow) %v512_v4, 32 }
 0x24c   :  { %739 = vxpose.xlu1.b32.start [1/2] (short) (narrow) %v513_v7, 32 }
 0x250   :  { %740 = vxpose.xlu1.b32.end [2/2] (short) (narrow) %v514_v38, 32 }
 0x2a0   :  { %v531_v41 = vpop.trf.xlu0 }
 0x2a1   :  { %6015 = vmatprep.mubr.msk.f32.mxu0 %vm775_vm2, %v531_v41 }
 0x2a4   :  { %v532_v11 = vpop.trf.xlu0 }
 0x2a5   :  { %v563_v12 = vpop.trf.xlu1  ;;  %6016 = vmatmul.mubr.msk.f32.vlgmr.msra.gmra.mrb[16].mxu0 %vm775_vm2, %v532_v11 }
 0x2a6   :  { %6021 = vmatprep.mubr.msk.f32.mxu1 %vm775_vm2, %v563_v12  ;;  %6401 = vmatpush3.bf16.msra.mxu0 %v6398_v27 }
 0x2a7   :  { %6403 = vmatprep.subr.bf16.mxu0 %v6402_v61 }
 0x2a8   :  { %v533_v54 = vpop.trf.xlu0 }
 0x2a9   :  { %v564_v43 = vpop.trf.xlu1  ;;  %6018 = vmatprep.mubr.msk.f32.mxu0 %vm775_vm2, %v533_v54 }
 0x2aa   :  { %6022 = vmatmul.mubr.msk.f32.vlgmr.msra.gmra.mrb[0].mxu1 %vm775_vm2, %v564_v43  ;;  %6405 = vmatpush3.bf16.msra.mxu0 %v6402_v61 }
 0x2ac   :  { %v534_v49 = vpop.trf.xlu0 }
 0x2ad   :  { %v565_v13 = vpop.trf.xlu1  ;;  %6019 = vmatmul.mubr.msk.f32.gmra.mrb[18].mxu0 %vm775_vm2, %v534_v49 }
 0x2ae   :  { %6024 = vmatprep.mubr.msk.f32.mxu1 %vm775_vm2, %v565_v13 }
 0x2b0   :  { %v595_v62 = vpop.trf.xlu0 }
 0x2b1   :  { %v566_v14 = vpop.trf.xlu1 }
 0x2b2   :  { %6025 = vmatmul.mubr.msk.f32.gmra.mrb[2].mxu1 %vm775_vm2, %v566_v14 }
 0x2b3   :  { %6027 = vmatprep.mubr.msk.f32.mxu1 %vm775_vm2, %v595_v62 }
 0x2b4   :  { %v596_v44 = vpop.trf.xlu0 }
 0x2b5   :  { %v627_v15 = vpop.trf.xlu1 }
 0x2b6   :  { %6028 = vmatmul.mubr.msk.f32.gmra.mrb[4].mxu1 %vm775_vm2, %v596_v44 }
 0x2b8   :  { %v597_v16 = vpop.trf.xlu0 }
 0x2b9   :  { %v628_v17 = vpop.trf.xlu1  ;;  %6030 = vmatprep.mubr.msk.f32.mxu1 %vm775_vm2, %v597_v16 }
 0x2bc   :  { %v598_v20 = vpop.trf.xlu0 }
 0x2bd   :  { %6031 = vmatmul.mubr.msk.f32.gmra.mrb[6].mxu1 %vm775_vm2, %v598_v20  ;;  %v629_v21 = vpop.trf.xlu1 }
 0x2be   :  { %6033 = vmatprep.mubr.msk.f32.mxu1 %vm775_vm2, %v627_v15 }
 0x2c0   :  { %v659_v24 = vpop.trf.xlu0 }
 0x2c1   :  { %6034 = vmatmul.mubr.msk.f32.gmra.mrb[8].mxu1 %vm775_vm2, %v628_v17  ;;  %v630_v25 = vpop.trf.xlu1 }
 0x2c2   :  { %6036 = vmatprep.mubr.msk.f32.mxu1 %vm775_vm2, %v629_v21 }
 0x2c4   :  { %v660_v26 = vpop.trf.xlu0 }
 0x2c5   :  { %6037 = vmatmul.mubr.msk.f32.gmra.mrb[10].mxu1 %vm775_vm2, %v630_v25  ;;  %v691_v59 = vpop.trf.xlu1 }
 0x2c6   :  { %6039 = vmatprep.mubr.msk.f32.mxu1 %vm775_vm2, %v659_v24 }
 0x2c8   :  { %v661_v31 = vpop.trf.xlu0 }
 0x2c9   :  { %6040 = vmatmul.mubr.msk.f32.gmra.mrb[12].mxu1 %vm775_vm2, %v660_v26  ;;  %v692_v19 = vpop.trf.xlu1 }
 0x2ca   :  { %6042 = vmatprep.mubr.msk.f32.mxu1 %vm775_vm2, %v661_v31 }
 0x2cc   :  { %v662_v32 = vpop.trf.xlu0 }
 0x2cd   :  { %6043 = vmatmul.mubr.msk.f32.gmra.mrb[14].mxu1 %vm775_vm2, %v662_v32  ;;  %v693_v35 = vpop.trf.xlu1 }
 0x2ce   :  { %6045 = vmatprep.mubr.msk.f32.mxu1 %vm775_vm2, %v691_v59 }
 0x2d0   :  { %v723_v36 = vpop.trf.xlu0 }
 0x2d1   :  { %6046 = vmatmul.mubr.msk.f32.gmra.mrb[16].mxu1 %vm775_vm2, %v692_v19  ;;  %v694_v60 = vpop.trf.xlu1 }
 0x2d2   :  { %6048 = vmatprep.mubr.msk.f32.mxu1 %vm775_vm2, %v693_v35 }
 0x2d4   :  { %v724_v18 = vpop.trf.xlu0 }
 0x2d5   :  { %6049 = vmatmul.mubr.msk.f32.gmra.mrb[18].mxu1 %vm775_vm2, %v694_v60  ;;  %v755_v37 = vpop.trf.xlu1 }
 0x2d6   :  { %6051 = vmatprep.mubr.msk.f32.mxu1 %vm775_vm2, %v723_v36 }
 0x2d8   :  { %v725_v42 = vpop.trf.xlu0 }
 0x2d9   :  { %6052 = vmatmul.mubr.msk.f32.gmra.mrb[20].mxu1 %vm775_vm2, %v724_v18  ;;  %v756_v47 = vpop.trf.xlu1 }
 0x2da   :  { %6054 = vmatprep.mubr.msk.f32.mxu1 %vm775_vm2, %v725_v42 }
 0x2dc   :  { %v726_v48 = vpop.trf.xlu0 }
 0x2dd   :  { %6055 = vmatmul.mubr.msk.f32.gmra.mrb[22].mxu1 %vm775_vm2, %v726_v48  ;;  %v757_v9 = vpop.trf.xlu1 }
 0x2de   :  { %6057 = vmatprep.mubr.msk.f32.mxu1 %vm775_vm2, %v755_v37 }
 0x2e1   :  { %6058 = vmatmul.mubr.msk.f32.gmra.mrb[24].mxu1 %vm775_vm2, %v756_v47  ;;  %v758_v50 = vpop.trf.xlu1 }
 0x2e2   :  { %6060 = vmatprep.mubr.msk.f32.mxu1 %vm775_vm2, %v757_v9 }
 0x2e5   :  { %6061 = vmatmul.mubr.msk.f32.gmra.mrb[26].mxu1 %vm775_vm2, %v758_v50 }
 0x378   :  { %v6017_v1 = vpop.f32.mrb[16].mxu0 }
 0x379   :  { %v944_v2 = vadd.f32 %v6017_v1, %v7208_v22  ;;  %v938_v3 = vpop.f32.mrb[17].mxu0 }
 0x37a   :  { %v939_v23 = vadd.f32 %v7208_v22, %v938_v3 }
 0x37b   :  { %v1130_v30 = vmul.f32 0.70710677, %v944_v2  ;;  %v1098_v32 = vmul.f32 0.5, %v944_v2 }
 0x37c   :  { %v1129_v4 = vmul.f32 0.70710677, %v939_v23  ;;  %v1097_v26 = vmul.f32 0.5, %v939_v23 }
 0x37d   :  { %6509 = verf.f32 %v1130_v30  ;;  %v6023_v7 = vpop.f32.mrb[0].mxu1 }
 0x37e   :  { %6511 = verf.f32 %v1129_v4  ;;  %v958_v8 = vpop.f32.mrb[1].mxu1  ;;  %v7213_v38 = vadd.f32 %v6023_v7, %v7208_v22 }
 0x37f   :  { %v959_v41 = vadd.f32 %v7208_v22, %v958_v8 }
 0x380   :  { %v6020_v11 = vpop.f32.mrb[18].mxu0  ;;  %v1134_v13 = vmul.f32 0.70710677, %v7213_v38 }
 0x381   :  { %v1133_v12 = vmul.f32 0.70710677, %v959_v41  ;;  %v954_v54 = vadd.f32 %v6020_v11, %v7208_v22  ;;  %v948_v43 = vpop.f32.mrb[19].mxu0  ;;  %v1101_v30 = vmul.f32 0.5, %v959_v41 }
 0x382   :  { %v949_v49 = vadd.f32 %v7208_v22, %v948_v43 }
 0x383   :  { %v1132_v62 = vmul.f32 0.70710677, %v954_v54  ;;  %6513 = verf.f32 %v1133_v12  ;;  %v1100_v3 = vmul.f32 0.5, %v954_v54  ;;  %v1102_v54 = vmul.f32 0.5, %v7213_v38 }
 0x384   :  { %v1131_v14 = vmul.f32 0.70710677, %v949_v49  ;;  %v1099_v56 = vmul.f32 0.5, %v949_v49 }
 0x385   :  { %6515 = verf.f32 %v1132_v62  ;;  %v6026_v44 = vpop.f32.mrb[2].mxu1 }
 0x386   :  { %6517 = verf.f32 %v1131_v14  ;;  %v7220_v15 = vadd.f32 %v6026_v44, %v7208_v22  ;;  %v968_v16 = vpop.f32.mrb[3].mxu1 }
 0x387   :  { %v6510_v17 = vpop.eup %6509  ;;  %6519 = verf.f32 %v1134_v13  ;;  %v969_v20 = vadd.f32 %v7208_v22, %v968_v16 }
 0x388   :  { %v6512_v21 = vpop.eup %6511  ;;  %v1194_v24 = vadd.f32 1.0, %v6510_v17  ;;  %v1136_v25 = vmul.f32 0.70710677, %v7220_v15 }
 0x389   :  { %v1193_v59 = vadd.f32 1.0, %v6512_v21  ;;  %v1135_v31 = vmul.f32 0.70710677, %v969_v20  ;;  %v6029_v19 = vpop.f32.mrb[4].mxu1  ;;  %v1103_v17 = vmul.f32 0.5, %v969_v20 }
 0x38a   :  { %6521 = verf.f32 %v1136_v25  ;;  %v7225_v35 = vadd.f32 %v6029_v19, %v7208_v22  ;;  %v978_v36 = vpop.f32.mrb[5].mxu1  ;;  %v1226_v37 = vmul.f32 %v1194_v24, %v1098_v32 }
 0x38b   :  { %v1225_v60 = vmul.f32 %v1193_v59, %v1097_v26  ;;  %6523 = verf.f32 %v1135_v31  ;;  %v979_v18 = vadd.f32 %v7208_v22, %v978_v36 }
 0x38c   :  { %v1138_v42 = vmul.f32 0.70710677, %v7225_v35 }
 0x38d   :  { %v1137_v47 = vmul.f32 0.70710677, %v979_v18  ;;  %6071 = vmatprep.mubr.msk.f32.mxu0 %vm265_vm1, %v1225_v60  ;;  %v6514_v48 = vpop.eup %6513  ;;  %v1105_v36 = vmul.f32 0.5, %v979_v18 }
 0x38e   :  { %6525 = verf.f32 %v1138_v42  ;;  %6072 = vmatmul.mubr.msk.f32.vlgmr.msra.gmra.mrb[20].mxu0 %vm265_vm1, %v1226_v37  ;;  %v1197_v55 = vadd.f32 1.0, %v6514_v48  ;;  %v1104_v37 = vmul.f32 0.5, %v7220_v15 }
 0x38f   :  { %v6516_v9 = vpop.eup %6515  ;;  %6527 = verf.f32 %v1137_v47 }
 0x390   :  { %v6518_v50 = vpop.eup %6517  ;;  %v1196_v10 = vadd.f32 1.0, %v6516_v9  ;;  %v6032_v53 = vpop.f32.mrb[6].mxu1  ;;  %v1229_v14 = vmul.f32 %v1197_v55, %v1101_v30  ;;  %v1106_v9 = vmul.f32 0.5, %v7225_v35 }
 0x391   :  { %v6520_v27 = vpop.eup %6519  ;;  %v1195_v61 = vadd.f32 1.0, %v6518_v50  ;;  %v994_v1 = vadd.f32 %v6032_v53, %v7208_v22  ;;  %v988_v2 = vpop.f32.mrb[7].mxu1 }
 0x392   :  { %v989_v23 = vadd.f32 %v7208_v22, %v988_v2  ;;  %v1198_v11 = vadd.f32 1.0, %v6520_v27  ;;  %v1228_v12 = vmul.f32 %v1196_v10, %v1100_v3 }
 0x393   :  { %v1227_v4 = vmul.f32 %v1195_v61, %v1099_v56  ;;  %v1140_v7 = vmul.f32 0.70710677, %v994_v1  ;;  %v1108_v55 = vmul.f32 0.5, %v994_v1 }
 0x394   :  { %v6522_v8 = vpop.eup %6521  ;;  %v1139_v43 = vmul.f32 0.70710677, %v989_v23  ;;  %v6035_v13 = vpop.f32.mrb[8].mxu1  ;;  %v1230_v25 = vmul.f32 %v1198_v11, %v1102_v54  ;;  %v1107_v2 = vmul.f32 0.5, %v989_v23 }
 0x395   :  { %v6524_v62 = vpop.eup %6523  ;;  %6529 = verf.f32 %v1140_v7  ;;  %v1004_v49 = vadd.f32 %v6035_v13, %v7208_v22  ;;  %v998_v44 = vpop.f32.mrb[9].mxu1  ;;  %6074 = vmatprep.mubr.msk.f32.mxu0 %vm265_vm1, %v1227_v4  ;;  %v1200_v26 = vadd.f32 1.0, %v6522_v8 }
 0x396   :  { %v1199_v16 = vadd.f32 1.0, %v6524_v62  ;;  %6531 = verf.f32 %v1139_v43  ;;  %v999_v41 = vadd.f32 %v7208_v22, %v998_v44  ;;  %6075 = vmatmul.mubr.msk.f32.gmra.mrb[22].mxu0 %vm265_vm1, %v1228_v12 }
 0x397   :  { %v1142_v21 = vmul.f32 0.70710677, %v1004_v49  ;;  %6077 = vmatprep.mubr.msk.f32.mxu0 %vm265_vm1, %v1229_v14  ;;  %v1232_v48 = vmul.f32 %v1200_v26, %v1104_v37  ;;  %v1110_v13 = vmul.f32 0.5, %v1004_v49 }
 0x398   :  { %v6526_v24 = vpop.eup %6525  ;;  %v1141_v59 = vmul.f32 0.70710677, %v999_v41  ;;  %v6038_v31 = vpop.f32.mrb[10].mxu1  ;;  %v1231_v32 = vmul.f32 %v1199_v16, %v1103_v17  ;;  %v1109_v44 = vmul.f32 0.5, %v999_v41 }
 0x399   :  { %v6528_v19 = vpop.eup %6527  ;;  %6533 = verf.f32 %v1142_v21  ;;  %v1014_v38 = vadd.f32 %v6038_v31, %v7208_v22  ;;  %v1008_v60 = vpop.f32.mrb[11].mxu1  ;;  %v1202_v50 = vadd.f32 1.0, %v6526_v24 }
 0x39a   :  { %v1201_v42 = vadd.f32 1.0, %v6528_v19  ;;  %6535 = verf.f32 %v1141_v59  ;;  %v1009_v20 = vadd.f32 %v7208_v22, %v1008_v60  ;;  %6078 = vmatmul.mubr.msk.f32.gmra.mrb[24].mxu0 %vm265_vm1, %v1230_v25 }
 0x39b   :  { %v1144_v47 = vmul.f32 0.70710677, %v1014_v38  ;;  %6080 = vmatprep.mubr.msk.f32.mxu0 %vm265_vm1, %v1231_v32  ;;  %v1234_v30 = vmul.f32 %v1202_v50, %v1106_v9  ;;  %v1112_v31 = vmul.f32 0.5, %v1014_v38 }
 0x39c   :  { %v1143_v18 = vmul.f32 0.70710677, %v1009_v20  ;;  %v6041_v10 = vpop.f32.mrb[12].mxu1  ;;  %v1233_v53 = vmul.f32 %v1201_v42, %v1105_v36  ;;  %v1111_v36 = vmul.f32 0.5, %v1009_v20 }
 0x39d   :  { %6537 = verf.f32 %v1144_v47  ;;  %v1024_v27 = vadd.f32 %v6041_v10, %v7208_v22  ;;  %v1018_v15 = vpop.f32.mrb[13].mxu1 }
 0x39e   :  { %6539 = verf.f32 %v1143_v18  ;;  %v1019_v56 = vadd.f32 %v7208_v22, %v1018_v15  ;;  %6081 = vmatmul.mubr.msk.f32.gmra.mrb[26].mxu0 %vm265_vm1, %v1232_v48 }
 0x39f   :  { %v6530_v61 = vpop.eup %6529  ;;  %v1146_v3 = vmul.f32 0.70710677, %v1024_v27  ;;  %6083 = vmatprep.mubr.msk.f32.mxu0 %vm265_vm1, %v1233_v53  ;;  %v1114_v10 = vmul.f32 0.5, %v1024_v27 }
 0x3a0   :  { %v6532_v35 = vpop.eup %6531  ;;  %v1204_v4 = vadd.f32 1.0, %v6530_v61  ;;  %v1145_v7 = vmul.f32 0.70710677, %v1019_v56  ;;  %v6044_v8 = vpop.f32.mrb[14].mxu1 }
 0x3a1   :  { %v1203_v11 = vadd.f32 1.0, %v6532_v35  ;;  %6541 = verf.f32 %v1146_v3  ;;  %v1034_v12 = vadd.f32 %v6044_v8, %v7208_v22  ;;  %v1028_v1 = vpop.f32.mrb[15].mxu1 }
 0x3a2   :  { %v1236_v43 = vmul.f32 %v1204_v4, %v1108_v55  ;;  %6543 = verf.f32 %v1145_v7  ;;  %6084 = vmatmul.mubr.msk.f32.gmra.mrb[28].mxu0 %vm265_vm1, %v1234_v30  ;;  %v1029_v23 = vadd.f32 %v7208_v22, %v1028_v1  ;;  %v1113_v55 = vmul.f32 0.5, %v1019_v56 }
 0x3a3   :  { %v6534_v62 = vpop.eup %6533  ;;  %v1235_v14 = vmul.f32 %v1203_v11, %v1107_v2  ;;  %v1148_v54 = vmul.f32 0.70710677, %v1034_v12  ;;  %v1116_v11 = vmul.f32 0.5, %v1034_v12 }
 0x3a4   :  { %v6536_v16 = vpop.eup %6535  ;;  %v1206_v17 = vadd.f32 1.0, %v6534_v62  ;;  %v1147_v21 = vmul.f32 0.70710677, %v1029_v23  ;;  %v6047_v24 = vpop.f32.mrb[16].mxu1 }
 0x3a5   :  { %v1205_v25 = vadd.f32 1.0, %v6536_v16  ;;  %6545 = verf.f32 %v1148_v54  ;;  %6086 = vmatprep.mubr.msk.f32.mxu0 %vm265_vm1, %v1235_v14  ;;  %v1044_v26 = vadd.f32 %v6047_v24, %v7208_v22  ;;  %v1038_v49 = vpop.f32.mrb[17].mxu1 }
 0x3a6   :  { %v1238_v59 = vmul.f32 %v1206_v17, %v1110_v13  ;;  %6547 = verf.f32 %v1147_v21  ;;  %6087 = vmatmul.mubr.msk.f32.gmra.mrb[30].mxu0 %vm265_vm1, %v1236_v43  ;;  %v1039_v19 = vadd.f32 %v7208_v22, %v1038_v49  ;;  %v1115_v13 = vmul.f32 0.5, %v1029_v23 }
 0x3a7   :  { %v6538_v41 = vpop.eup %6537  ;;  %v1237_v32 = vmul.f32 %v1205_v25, %v1109_v44  ;;  %v1150_v60 = vmul.f32 0.70710677, %v1044_v26  ;;  %v1118_v25 = vmul.f32 0.5, %v1044_v26 }
 0x3a8   :  { %v6540_v37 = vpop.eup %6539  ;;  %v1208_v42 = vadd.f32 1.0, %v6538_v41  ;;  %v1149_v47 = vmul.f32 0.70710677, %v1039_v19  ;;  %v6050_v48 = vpop.f32.mrb[18].mxu1 }
 0x3a9   :  { %v1207_v9 = vadd.f32 1.0, %v6540_v37  ;;  %6089 = vmatprep.mubr.msk.f32.mxu0 %vm265_vm1, %v1237_v32  ;;  %6549 = verf.f32 %v1150_v60  ;;  %v1054_v50 = vadd.f32 %v6050_v48, %v7208_v22  ;;  %v1048_v38 = vpop.f32.mrb[19].mxu1 }
 0x3aa   :  { %v1240_v18 = vmul.f32 %v1208_v42, %v1112_v31  ;;  %6090 = vmatmul.mubr.msk.f32.gmra.mrb[32].mxu0 %vm265_vm1, %v1238_v59  ;;  %6551 = verf.f32 %v1149_v47  ;;  %v1049_v53 = vadd.f32 %v7208_v22, %v1048_v38  ;;  %v1117_v31 = vmul.f32 0.5, %v1039_v19 }
 0x3ab   :  { %v6542_v20 = vpop.eup %6541  ;;  %v1239_v15 = vmul.f32 %v1207_v9, %v1111_v36  ;;  %v1152_v61 = vmul.f32 0.70710677, %v1054_v50  ;;  %v1120_v9 = vmul.f32 0.5, %v1054_v50 }
 0x3ac   :  { %v6544_v2 = vpop.eup %6543  ;;  %v1210_v3 = vadd.f32 1.0, %v6542_v20  ;;  %v1151_v35 = vmul.f32 0.70710677, %v1049_v53  ;;  %v6053_v30 = vpop.f32.mrb[20].mxu1 }
 0x3ad   :  { %v1209_v4 = vadd.f32 1.0, %v6544_v2  ;;  %6092 = vmatprep.mubr.msk.f32.mxu0 %vm265_vm1, %v1239_v15  ;;  %6553 = verf.f32 %v1152_v61  ;;  %v1064_v7 = vadd.f32 %v6053_v30, %v7208_v22  ;;  %v1058_v27 = vpop.f32.mrb[21].mxu1 }
 0x3ae   :  { %v1242_v8 = vmul.f32 %v1210_v3, %v1114_v10  ;;  %6093 = vmatmul.mubr.msk.f32.gmra.mrb[34].mxu0 %vm265_vm1, %v1240_v18  ;;  %6555 = verf.f32 %v1151_v35  ;;  %v1059_v1 = vadd.f32 %v7208_v22, %v1058_v27  ;;  %v1119_v10 = vmul.f32 0.5, %v1049_v53 }
 0x3af   :  { %v6546_v56 = vpop.eup %6545  ;;  %v1241_v43 = vmul.f32 %v1209_v4, %v1113_v55  ;;  %v1154_v62 = vmul.f32 0.70710677, %v1064_v7  ;;  %v1122_v4 = vmul.f32 0.5, %v1064_v7 }
 0x3b0   :  { %v6548_v14 = vpop.eup %6547  ;;  %v1212_v44 = vadd.f32 1.0, %v6546_v56  ;;  %v1153_v54 = vmul.f32 0.70710677, %v1059_v1  ;;  %v6056_v16 = vpop.f32.mrb[22].mxu1 }
 0x3b1   :  { %v1211_v17 = vadd.f32 1.0, %v6548_v14  ;;  %6095 = vmatprep.mubr.msk.f32.mxu0 %vm265_vm1, %v1241_v43  ;;  %6557 = verf.f32 %v1154_v62  ;;  %v1074_v21 = vadd.f32 %v6056_v16, %v7208_v22  ;;  %v1068_v12 = vpop.f32.mrb[23].mxu1 }
 0x3b2   :  { %v1244_v24 = vmul.f32 %v1212_v44, %v1116_v11  ;;  %6096 = vmatmul.mubr.msk.f32.gmra.mrb[36].mxu0 %vm265_vm1, %v1242_v8  ;;  %6559 = verf.f32 %v1153_v54  ;;  %v1069_v49 = vadd.f32 %v7208_v22, %v1068_v12  ;;  %v1121_v11 = vmul.f32 0.5, %v1059_v1 }
 0x3b3   :  { %v6550_v23 = vpop.eup %6549  ;;  %v1243_v59 = vmul.f32 %v1211_v17, %v1115_v13  ;;  %v1156_v41 = vmul.f32 0.70710677, %v1074_v21  ;;  %v1124_v54 = vmul.f32 0.5, %v1074_v21 }
 0x3b4   :  { %v6552_v32 = vpop.eup %6551  ;;  %v1214_v36 = vadd.f32 1.0, %v6550_v23  ;;  %v1155_v60 = vmul.f32 0.70710677, %v1069_v49  ;;  %v6059_v37 = vpop.f32.mrb[24].mxu1  ;;  %v1123_v17 = vmul.f32 0.5, %v1069_v49 }
 0x3b5   :  { %v1213_v42 = vadd.f32 1.0, %v6552_v32  ;;  %6098 = vmatprep.mubr.msk.f32.mxu0 %vm265_vm1, %v1243_v59  ;;  %6561 = verf.f32 %v1156_v41  ;;  %v1084_v47 = vadd.f32 %v6059_v37, %v7208_v22  ;;  %v1078_v26 = vpop.f32.mrb[25].mxu1 }
 0x3b6   :  { %v1246_v48 = vmul.f32 %v1214_v36, %v1118_v25  ;;  %6099 = vmatmul.mubr.msk.f32.gmra.mrb[38].mxu0 %vm265_vm1, %v1244_v24  ;;  %6563 = verf.f32 %v1155_v60  ;;  %v1079_v38 = vadd.f32 %v7208_v22, %v1078_v26 }
 0x3b7   :  { %v6554_v19 = vpop.eup %6553  ;;  %v1245_v18 = vmul.f32 %v1213_v42, %v1117_v31  ;;  %v1158_v20 = vmul.f32 0.70710677, %v1084_v47  ;;  %v1126_v25 = vmul.f32 0.5, %v1084_v47 }
 0x3b8   :  { %v6556_v15 = vpop.eup %6555  ;;  %v1216_v55 = vadd.f32 1.0, %v6554_v19  ;;  %v1157_v61 = vmul.f32 0.70710677, %v1079_v38  ;;  %v6062_v2 = vpop.f32.mrb[26].mxu1  ;;  %v1125_v31 = vmul.f32 0.5, %v1079_v38 }
 0x3b9   :  { %v1215_v3 = vadd.f32 1.0, %v6556_v15  ;;  %6101 = vmatprep.mubr.msk.f32.mxu0 %vm265_vm1, %v1245_v18  ;;  %6565 = verf.f32 %v1158_v20  ;;  %v1094_v35 = vadd.f32 %v6062_v2, %v7208_v22  ;;  %v1088_v50 = vpop.f32.mrb[27].mxu1  ;;  %v7289_v19 = vld [vmem:[%s8672_s2 + $0x7] ss:$0 sm:$0xff] }
 0x3ba   :  { %v1248_v30 = vmul.f32 %v1216_v55, %v1120_v9  ;;  %6102 = vmatmul.mubr.msk.f32.gmra.mrb[40].mxu0 %vm265_vm1, %v1246_v48  ;;  %6567 = verf.f32 %v1157_v61  ;;  %v1089_v27 = vadd.f32 %v7208_v22, %v1088_v50 }
 0x3bb   :  { %v6558_v53 = vpop.eup %6557  ;;  %v1247_v8 = vmul.f32 %v1215_v3, %v1119_v10  ;;  %v1160_v56 = vmul.f32 0.70710677, %v1094_v35  ;;  %v1128_v60 = vmul.f32 0.5, %v1094_v35 }
 0x3bc   :  { %v6560_v43 = vpop.eup %6559  ;;  %v1218_v13 = vadd.f32 1.0, %v6558_v53  ;;  %v1159_v62 = vmul.f32 0.70710677, %v1089_v27  ;;  %v1127_v42 = vmul.f32 0.5, %v1089_v27 }
 0x3bd   :  { %6104 = vmatprep.mubr.msk.f32.mxu0 %vm265_vm1, %v1247_v8  ;;  %v1217_v14 = vadd.f32 1.0, %v6560_v43  ;;  %6569 = verf.f32 %v1160_v56 }
 0x3be   :  { %6105 = vmatmul.mubr.msk.f32.gmra.mrb[42].mxu0 %vm265_vm1, %v1248_v30  ;;  %v1250_v44 = vmul.f32 %v1218_v13, %v1122_v4  ;;  %6571 = verf.f32 %v1159_v62 }
 0x3bf   :  { %v6562_v7 = vpop.eup %6561  ;;  %v1249_v16 = vmul.f32 %v1217_v14, %v1121_v11 }
 0x3c0   :  { %v6564_v22 = vpop.eup %6563  ;;  %v1220_v12 = vadd.f32 1.0, %v6562_v7 }
 0x3c1   :  { %v1219_v24 = vadd.f32 1.0, %v6564_v22  ;;  %6107 = vmatprep.mubr.msk.f32.mxu0 %vm265_vm1, %v1249_v16 }
 0x3c2   :  { %v1252_v1 = vmul.f32 %v1220_v12, %v1124_v54  ;;  %6108 = vmatmul.mubr.msk.f32.gmra.mrb[44].mxu0 %vm265_vm1, %v1250_v44 }
 0x3c3   :  { %v6566_v23 = vpop.eup %6565  ;;  %v1251_v59 = vmul.f32 %v1219_v24, %v1123_v17 }
 0x3c4   :  { %v6568_v41 = vpop.eup %6567  ;;  %v1222_v32 = vadd.f32 1.0, %v6566_v23 }
 0x3c5   :  { %v1221_v36 = vadd.f32 1.0, %v6568_v41  ;;  %6110 = vmatprep.mubr.msk.f32.mxu0 %vm265_vm1, %v1251_v59 }
 0x3c6   :  { %v1254_v21 = vmul.f32 %v1222_v32, %v1126_v25  ;;  %6111 = vmatmul.mubr.msk.f32.gmra.mrb[46].mxu0 %vm265_vm1, %v1252_v1 }
 0x3c7   :  { %v6570_v49 = vpop.eup %6569  ;;  %v1253_v37 = vmul.f32 %v1221_v36, %v1125_v31 }
 0x3c8   :  { %v6572_v26 = vpop.eup %6571  ;;  %v1224_v48 = vadd.f32 1.0, %v6570_v49 }
 0x3c9   :  { %v1223_v47 = vadd.f32 1.0, %v6572_v26  ;;  %6113 = vmatprep.mubr.msk.f32.mxu0 %vm265_vm1, %v1253_v37 }
 0x3ca   :  { %v1256_v9 = vmul.f32 %v1224_v48, %v1128_v60  ;;  %6114 = vmatmul.mubr.msk.f32.gmra.mrb[48].mxu0 %vm265_vm1, %v1254_v21 }
 0x3cb   :  { %v1255_v38 = vmul.f32 %v1223_v47, %v1127_v42 }
 0x3cd   :  { %6116 = vmatprep.mubr.msk.f32.mxu0 %vm265_vm1, %v1255_v38 }
 0x3ce   :  { %6117 = vmatmul.mubr.msk.f32.gmra.mrb[50].mxu0 %vm265_vm1, %v1256_v9 }
 0x461   :  { %v6073_v18 = vpop.f32.mrb[20].mxu0 }
 0x462   :  { %v1423_v10 = vpop.f32.mrb[21].mxu0  ;;  %v1429_v15 = vadd.f32 %v6073_v18, %v7289_v19 }
 0x463   :  { %v1424_v20 = vadd.f32 %v7289_v19, %v1423_v10 }
 0x465   :  { %1582 = vxpose.xlu0.b32.start [1/4] (short) (narrow) %v1424_v20, 16 }
 0x469   :  { %1583 = vxpose.xlu0.b32.cont [2/4] (short) (narrow) %v1429_v15, 16  ;;  %v6076_v55 = vpop.f32.mrb[22].mxu0 }
 0x46a   :  { %v1433_v61 = vpop.f32.mrb[23].mxu0  ;;  %v1439_v50 = vadd.f32 %v6076_v55, %v7289_v19 }
 0x46b   :  { %v1434_v2 = vadd.f32 %v7289_v19, %v1433_v61 }
 0x46d   :  { %v6079_v3 = vpop.f32.mrb[24].mxu0  ;;  %1584 = vxpose.xlu0.b32.cont [3/4] (short) (narrow) %v1434_v2, 16 }
 0x46e   :  { %v1443_v35 = vpop.f32.mrb[25].mxu0  ;;  %v1449_v53 = vadd.f32 %v6079_v3, %v7289_v19 }
 0x46f   :  { %v1444_v30 = vadd.f32 %v7289_v19, %v1443_v35 }
 0x471   :  { %v6082_v4 = vpop.f32.mrb[26].mxu0  ;;  %1614 = vxpose.xlu1.b32.start [1/4] (short) (narrow) %v1444_v30, 16  ;;  %1585 = vxpose.xlu0.b32.end [4/4] (short) (narrow) %v1439_v50, 16  ;;  %v1838_v50 = vmul.f32 0.5, %v6937_v28 }
 0x472   :  { %v1453_v27 = vpop.f32.mrb[27].mxu0  ;;  %v1459_v14 = vadd.f32 %v6082_v4, %v7289_v19 }
 0x473   :  { %v1454_v56 = vadd.f32 %v7289_v19, %v1453_v27 }
 0x475   :  { %1615 = vxpose.xlu1.b32.cont [2/4] (short) (narrow) %v1449_v53, 16  ;;  %v6085_v8 = vpop.f32.mrb[28].mxu0  ;;  %v1839_v53 = vmul.f32 0.5, %v6939_v29 }
 0x476   :  { %v1463_v11 = vpop.f32.mrb[29].mxu0  ;;  %v1469_v44 = vadd.f32 %v6085_v8, %v7289_v19 }
 0x477   :  { %v1464_v43 = vadd.f32 %v7289_v19, %v1463_v11 }
 0x479   :  { %1616 = vxpose.xlu1.b32.cont [3/4] (short) (narrow) %v1454_v56, 16  ;;  %1646 = vxpose.xlu0.b32.start [1/4] (short) (narrow) %v1464_v43, 16  ;;  %v6088_v13 = vpop.f32.mrb[30].mxu0  ;;  %v1840_v43 = vmul.f32 0.5, %v6945_v34 }
 0x47a   :  { %v1473_v62 = vpop.f32.mrb[31].mxu0  ;;  %v1479_v1 = vadd.f32 %v6088_v13, %v7289_v19 }
 0x47b   :  { %v1474_v16 = vadd.f32 %v7289_v19, %v1473_v62  ;;  %v1841_v62 = vmul.f32 0.5, %v6943_v33 }
 0x47d   :  { %1617 = vxpose.xlu1.b32.end [4/4] (short) (narrow) %v1459_v14, 16  ;;  %1647 = vxpose.xlu0.b32.cont [2/4] (short) (narrow) %v1469_v44, 16  ;;  %v6091_v54 = vpop.f32.mrb[32].mxu0 }
 0x47e   :  { %v1483_v7 = vpop.f32.mrb[33].mxu0  ;;  %v1489_v22 = vadd.f32 %v6091_v54, %v7289_v19 }
 0x47f   :  { %v1484_v17 = vadd.f32 %v7289_v19, %v1483_v7  ;;  %v1842_v7 = vmul.f32 0.5, %v6953_v40 }
 0x481   :  { %1678 = vxpose.xlu1.b32.start [1/4] (short) (narrow) %v1484_v17, 16  ;;  %1648 = vxpose.xlu0.b32.cont [3/4] (short) (narrow) %v1474_v16, 16  ;;  %v6094_v12 = vpop.f32.mrb[34].mxu0 }
 0x482   :  { %v1493_v24 = vpop.f32.mrb[35].mxu0  ;;  %v1499_v41 = vadd.f32 %v6094_v12, %v7289_v19 }
 0x483   :  { %v1494_v25 = vadd.f32 %v7289_v19, %v1493_v24 }
 0x485   :  { %1679 = vxpose.xlu1.b32.cont [2/4] (short) (narrow) %v1489_v22, 16  ;;  %1649 = vxpose.xlu0.b32.end [4/4] (short) (narrow) %v1479_v1, 16  ;;  %v6097_v23 = vpop.f32.mrb[36].mxu0 }
 0x486   :  { %v1503_v59 = vpop.f32.mrb[37].mxu0  ;;  %v1509_v32 = vadd.f32 %v6097_v23, %v7289_v19 }
 0x487   :  { %v1504_v31 = vadd.f32 %v7289_v19, %v1503_v59 }
 0x489   :  { %1680 = vxpose.xlu1.b32.cont [3/4] (short) (narrow) %v1494_v25, 16  ;;  %1710 = vxpose.xlu0.b32.start [1/4] (short) (narrow) %v1504_v31, 16  ;;  %v6100_v36 = vpop.f32.mrb[38].mxu0 }
 0x48a   :  { %v1513_v21 = vpop.f32.mrb[39].mxu0  ;;  %v1519_v42 = vadd.f32 %v6100_v36, %v7289_v19 }
 0x48b   :  { %v1514_v60 = vadd.f32 %v7289_v19, %v1513_v21 }
 0x48d   :  { %1681 = vxpose.xlu1.b32.end [4/4] (short) (narrow) %v1499_v41, 16  ;;  %1711 = vxpose.xlu0.b32.cont [2/4] (short) (narrow) %v1509_v32, 16  ;;  %v6103_v49 = vpop.f32.mrb[40].mxu0  ;;  %v1843_v41 = vmul.f32 0.5, %v6951_v39 }
 0x48e   :  { %v1523_v37 = vpop.f32.mrb[41].mxu0  ;;  %v1529_v18 = vadd.f32 %v6103_v49, %v7289_v19 }
 0x48f   :  { %v1524_v47 = vadd.f32 %v7289_v19, %v1523_v37 }
 0x491   :  { %1712 = vxpose.xlu0.b32.cont [3/4] (short) (narrow) %v1514_v60, 16  ;;  %v6106_v26 = vpop.f32.mrb[42].mxu0  ;;  %v1845_v60 = vmul.f32 0.5, %v6959_v45  ;;  %v1847_v45 = vmul.f32 0.5, %v6967_v51  ;;  %v1849_v51 = vmul.f32 0.5, %v6975_v57 }
 0x492   :  { %v1533_v48 = vpop.f32.mrb[43].mxu0  ;;  %v1539_v2 = vadd.f32 %v6106_v26, %v7289_v19 }
 0x493   :  { %v1534_v15 = vadd.f32 %v7289_v19, %v1533_v48 }
 0x495   :  { %1713 = vxpose.xlu0.b32.end [4/4] (short) (narrow) %v1519_v42, 16  ;;  %v6109_v9 = vpop.f32.mrb[44].mxu0  ;;  %v1846_v42 = vmul.f32 0.5, %v6969_v52  ;;  %v1848_v52 = vmul.f32 0.5, %v6977_v58 }
 0x496   :  { %v1543_v38 = vpop.f32.mrb[45].mxu0  ;;  %v1549_v12 = vadd.f32 %v6109_v9, %v7289_v19 }
 0x497   :  { %v1544_v33 = vadd.f32 %v7289_v19, %v1543_v38 }
 0x499   :  { %1742 = vxpose.xlu0.b32.start [1/4] (short) (narrow) %v1524_v47, 16  ;;  %v6112_v10 = vpop.f32.mrb[46].mxu0 }
 0x49a   :  { %v1553_v20 = vpop.f32.mrb[47].mxu0  ;;  %v1559_v25 = vadd.f32 %v6112_v10, %v7289_v19 }
 0x49b   :  { %v1554_v40 = vadd.f32 %v7289_v19, %v1553_v20 }
 0x49d   :  { %1743 = vxpose.xlu0.b32.cont [2/4] (short) (narrow) %v1529_v18, 16  ;;  %v6115_v55 = vpop.f32.mrb[48].mxu0 }
 0x49e   :  { %v1563_v61 = vpop.f32.mrb[49].mxu0  ;;  %v1569_v24 = vadd.f32 %v6115_v55, %v7289_v19 }
 0x49f   :  { %v1564_v22 = vadd.f32 %v7289_v19, %v1563_v61 }
 0x4a1   :  { %1744 = vxpose.xlu0.b32.cont [3/4] (short) (narrow) %v1534_v15, 16  ;;  %v6118_v3 = vpop.f32.mrb[50].mxu0 }
 0x4a2   :  { %v1573_v35 = vpop.f32.mrb[51].mxu0  ;;  %v1579_v23 = vadd.f32 %v6118_v3, %v7289_v19 }
 0x4a3   :  { %v1574_v1 = vadd.f32 %v7289_v19, %v1573_v35  ;;  %v1844_v19 = vmul.f32 0.5, %v6961_v46 }
 0x4a5   :  { %1745 = vxpose.xlu0.b32.end [4/4] (short) (narrow) %v1539_v2, 16 }
 0x4e5   :  { %v1598_v30 = vpop.trf.xlu0 }
 0x4e6   :  { %v7316_v4 = vadd.f32 %v1838_v50, %v1598_v30 }
 0x4e8   :  { %v1870_v27 = vsel %vm265_vm1, %v7316_v4, 0.0 }
 0x4e9   :  { %1871 = vadd.xlane.f32.xlu1 %v1870_v27  ;;  %v1599_v8 = vpop.trf.xlu0 }
 0x4ea   :  { %v7321_v11 = vadd.f32 %v1839_v53, %v1599_v8 }
 0x4ec   :  { %v1873_v56 = vsel %vm265_vm1, %v7321_v11, 0.0 }
 0x4ed   :  { %1874 = vadd.xlane.f32.xlu0 %v1873_v56 }
 0x4f1   :  { %v1630_v13 = vpop.trf.xlu1 }
 0x4f2   :  { %v7326_v28 = vadd.f32 %v1840_v43, %v1630_v13 }
 0x4f4   :  { %v1876_v14 = vsel %vm265_vm1, %v7326_v28, 0.0 }
 0x4f5   :  { %v1631_v44 = vpop.trf.xlu1  ;;  %1877 = vadd.xlane.f32.xlu1 %v1876_v14 }
 0x4f6   :  { %v7331_v29 = vadd.f32 %v1841_v62, %v1631_v44 }
 0x4f8   :  { %v1879_v54 = vsel %vm265_vm1, %v7331_v29, 0.0 }
 0x4f9   :  { %1880 = vadd.xlane.f32.xlu0 %v1879_v54  ;;  %v1662_v16 = vpop.trf.xlu0 }
 0x4fa   :  { %v7336_v34 = vadd.f32 %v1842_v7, %v1662_v16  ;;  %v1850_v16 = vmul.f32 0.5, %v6985_v0 }
 0x4fc   :  { %v1882_v17 = vsel %vm265_vm1, %v7336_v34, 0.0 }
 0x4fd   :  { %1883 = vadd.xlane.f32.xlu0 %v1882_v17  ;;  %v1663_v31 = vpop.trf.xlu0 }
 0x4fe   :  { %v7349_v32 = vadd.f32 %v1843_v41, %v1663_v31  ;;  %v1853_v41 = vmul.f32 0.5, %v6991_v5 }
 0x500   :  { %v1885_v37 = vsel %vm265_vm1, %v7349_v32, 0.0 }
 0x501   :  { %v1694_v59 = vpop.trf.xlu1 }
 0x502   :  { %v7358_v48 = vadd.f32 %v1844_v19, %v1694_v59 }
 0x504   :  { %v1888_v18 = vsel %vm265_vm1, %v7358_v48, 0.0 }
 0x505   :  { %v1695_v36 = vpop.trf.xlu1 }
 0x506   :  { %v7352_v49 = vadd.f32 %v1845_v60, %v1695_v36 }
 0x508   :  { %v1891_v47 = vsel %vm265_vm1, %v7352_v49, 0.0 }
 0x509   :  { %v1726_v21 = vpop.trf.xlu0 }
 0x50a   :  { %v7360_v39 = vadd.f32 %v1846_v42, %v1726_v21 }
 0x50c   :  { %v1894_v46 = vsel %vm265_vm1, %v7360_v39, 0.0 }
 0x50d   :  { %v1727_v26 = vpop.trf.xlu0 }
 0x50e   :  { %v7365_v38 = vadd.f32 %v1847_v45, %v1727_v26  ;;  %v5475_v45 = vld [vmem:[%s8670_s1 + $0x108] sm:$0xff] }
 0x510   :  { %v1897_v20 = vsel %vm265_vm1, %v7365_v38, 0.0 }
 0x519   :  { %v1758_v9 = vpop.trf.xlu0 }
 0x51a   :  { %v7372_v10 = vadd.f32 %v1848_v52, %v1758_v9 }
 0x51c   :  { %v1900_v61 = vsel %vm265_vm1, %v7372_v10, 0.0 }
 0x51d   :  { %v1759_v15 = vpop.trf.xlu0 }
 0x51e   :  { %v7377_v55 = vadd.f32 %v1849_v51, %v1759_v15 }
 0x520   :  { %v1903_v2 = vsel %vm265_vm1, %v7377_v55, 0.0 }
 0x528   :  { %1774 = vxpose.xlu1.b32.start [1/4] (short) (narrow) %v1544_v33, 16 }
 0x52a   :  { %1806 = vxpose.xlu0.b32.start [1/4] (short) (narrow) %v1564_v22, 16 }
 0x52c   :  { %1775 = vxpose.xlu1.b32.cont [2/4] (short) (narrow) %v1549_v12, 16  ;;  %v1851_v12 = vmul.f32 0.5, %v6983_v63 }
 0x52e   :  { %1807 = vxpose.xlu0.b32.cont [2/4] (short) (narrow) %v1569_v24, 16 }
 0x530   :  { %1776 = vxpose.xlu1.b32.cont [3/4] (short) (narrow) %v1554_v40, 16 }
 0x532   :  { %1808 = vxpose.xlu0.b32.cont [3/4] (short) (narrow) %v1574_v1, 16  ;;  %v1852_v1 = vmul.f32 0.5, %v6993_v6 }
 0x534   :  { %1777 = vxpose.xlu1.b32.end [4/4] (short) (narrow) %v1559_v25, 16 }
 0x536   :  { %1809 = vxpose.xlu0.b32.end [4/4] (short) (narrow) %v1579_v23, 16 }
 0x55b   :  { %1886 = vadd.xlane.f32.xlu1 %v1885_v37 }
 0x55f   :  { %1892 = vadd.xlane.f32.xlu1 %v1891_v47  ;;  %v5474_v47 = vld [vmem:[%s8670_s1 + $0x100] sm:$0xff] }
 0x560   :  { %v6406_v9 = vpack.c.bf16 %v5475_v45, %v5474_v47 }
 0x562   :  { %6407 = vmatprep.subr.bf16.mxu1 %v6406_v9 }
 0x563   :  { %1889 = vadd.xlane.f32.xlu0 %v1888_v18  ;;  %1895 = vadd.xlane.f32.xlu1 %v1894_v46  ;;  %v5476_v18 = vld [vmem:[%s8670_s1 + $0x110] sm:$0xff]  ;;  %v5477_v46 = vld [vmem:[%s8670_s1 + $0x118] sm:$0xff] }
 0x564   :  { %6409 = vmatpush3.bf16.msra.mxu1 %v6406_v9  ;;  %v6410_v52 = vpack.c.bf16 %v5477_v46, %v5476_v18  ;;  %v7490_v9 = vld [vmem:[%s8672_s2 + $0x8] ss:$0 sm:$0xff]  ;;  %v7496_v46 = vld [vmem:[%s8672_s2 + $0x9] ss:$0 sm:$0xff] }
 0x566   :  { %6411 = vmatprep.subr.bf16.mxu1 %v6410_v52 }
 0x567   :  { %1898 = vadd.xlane.f32.xlu1 %v1897_v20 }
 0x568   :  { %6413 = vmatpush3.bf16.msra.mxu1 %v6410_v52 }
 0x56b   :  { %1901 = vadd.xlane.f32.xlu1 %v1900_v61 }
 0x56f   :  { %1904 = vadd.xlane.f32.xlu1 %v1903_v2 }
 0x576   :  { %v1872_v58 = vpop.xlane.xlu1 %1871 }
 0x577   :  { %v1918_v3 = vmul.f32 0.03125, %v1872_v58 }
 0x579   :  { %v7384_v35 = vsub.f32 %v7316_v4, %v1918_v3 }
 0x57a   :  { %v1875_v30 = vpop.xlane.xlu0 %1874 }
 0x57b   :  { %v1950_v50 = vmul.f32 %v7384_v35, %v7384_v35  ;;  %v1919_v23 = vmul.f32 0.03125, %v1875_v30 }
 0x57d   :  { %v1966_v57 = vsel %vm265_vm1, %v1950_v50, 0.0  ;;  %v7416_v63 = vsub.f32 %v7321_v11, %v1919_v23 }
 0x57e   :  { %1967 = vadd.xlane.f32.xlu0 %v1966_v57 }
 0x57f   :  { %v1951_v19 = vmul.f32 %v7416_v63, %v7416_v63 }
 0x581   :  { %v1969_v5 = vsel %vm265_vm1, %v1951_v19, 0.0 }
 0x582   :  { %v1878_v27 = vpop.xlane.xlu1 %1877 }
 0x583   :  { %v1920_v53 = vmul.f32 0.03125, %v1878_v27 }
 0x585   :  { %v7390_v8 = vsub.f32 %v7326_v28, %v1920_v53 }
 0x586   :  { %v1881_v56 = vpop.xlane.xlu0 %1880 }
 0x587   :  { %v1952_v43 = vmul.f32 %v7390_v8, %v7390_v8  ;;  %v1921_v36 = vmul.f32 0.03125, %v1881_v56 }
 0x589   :  { %v1972_v13 = vsel %vm265_vm1, %v1952_v43, 0.0  ;;  %v7423_v60 = vsub.f32 %v7331_v29, %v1921_v36 }
 0x58a   :  { %1973 = vadd.xlane.f32.xlu0 %v1972_v13  ;;  %v1884_v62 = vpop.xlane.xlu0 %1883 }
 0x58b   :  { %v1922_v14 = vmul.f32 0.03125, %v1884_v62  ;;  %v1953_v42 = vmul.f32 %v7423_v60, %v7423_v60 }
 0x58d   :  { %v7396_v44 = vsub.f32 %v7336_v34, %v1922_v14  ;;  %v1975_v26 = vsel %vm265_vm1, %v1953_v42, 0.0 }
 0x58f   :  { %v1954_v54 = vmul.f32 %v7396_v44, %v7396_v44 }
 0x591   :  { %v1978_v7 = vsel %vm265_vm1, %v1954_v54, 0.0 }
 0x592   :  { %1979 = vadd.xlane.f32.xlu0 %v1978_v7 }
 0x5a8   :  { %v1790_v17 = vpop.trf.xlu1 }
 0x5a9   :  { %v7402_v33 = vadd.f32 %v1850_v16, %v1790_v17 }
 0x5aa   :  { %v1822_v22 = vpop.trf.xlu0 }
 0x5ab   :  { %v1906_v24 = vsel %vm265_vm1, %v7402_v33, 0.0  ;;  %v7410_v59 = vadd.f32 %v1852_v1, %v1822_v22 }
 0x5ac   :  { %v1791_v40 = vpop.trf.xlu1  ;;  %1907 = vadd.xlane.f32.xlu1 %v1906_v24 }
 0x5ad   :  { %v7408_v25 = vadd.f32 %v1851_v12, %v1791_v40  ;;  %v1912_v6 = vsel %vm265_vm1, %v7410_v59, 0.0 }
 0x5ae   :  { %v1823_v31 = vpop.trf.xlu0 }
 0x5af   :  { %v1909_v0 = vsel %vm265_vm1, %v7408_v25, 0.0  ;;  %v7418_v21 = vadd.f32 %v1853_v41, %v1823_v31 }
 0x5b0   :  { %1910 = vadd.xlane.f32.xlu1 %v1909_v0 }
 0x5b1   :  { %v1915_v37 = vsel %vm265_vm1, %v7418_v21, 0.0 }
 0x5b4   :  { %1913 = vadd.xlane.f32.xlu1 %v1912_v6 }
 0x5b8   :  { %1916 = vadd.xlane.f32.xlu1 %v1915_v37 }
 0x5bc   :  { %1970 = vadd.xlane.f32.xlu1 %v1969_v5 }
 0x5c0   :  { %1976 = vadd.xlane.f32.xlu1 %v1975_v26 }
 0x5e8   :  { %v1887_v20 = vpop.xlane.xlu1 %1886 }
 0x5e9   :  { %v1923_v15 = vmul.f32 0.03125, %v1887_v20 }
 0x5eb   :  { %v7446_v51 = vsub.f32 %v7349_v32, %v1923_v15 }
 0x5ec   :  { %v1893_v61 = vpop.xlane.xlu1 %1892 }
 0x5ed   :  { %v1925_v2 = vmul.f32 0.03125, %v1893_v61  ;;  %v1955_v58 = vmul.f32 %v7446_v51, %v7446_v51 }
 0x5ef   :  { %v7451_v3 = vsub.f32 %v7352_v49, %v1925_v2  ;;  %v1981_v50 = vsel %vm265_vm1, %v1955_v58, 0.0 }
 0x5f0   :  { %v1896_v57 = vpop.xlane.xlu1 %1895  ;;  %1982 = vadd.xlane.f32.xlu1 %v1981_v50  ;;  %v1890_v30 = vpop.xlane.xlu0 %1889 }
 0x5f1   :  { %v1926_v27 = vmul.f32 0.03125, %v1896_v57  ;;  %v1924_v53 = vmul.f32 0.03125, %v1890_v30  ;;  %v1957_v56 = vmul.f32 %v7451_v3, %v7451_v3 }
 0x5f3   :  { %v7457_v43 = vsub.f32 %v7360_v39, %v1926_v27  ;;  %v7460_v13 = vsub.f32 %v7358_v48, %v1924_v53  ;;  %v1987_v62 = vsel %vm265_vm1, %v1957_v56, 0.0 }
 0x5f4   :  { %v1899_v14 = vpop.xlane.xlu1 %1898  ;;  %1988 = vadd.xlane.f32.xlu1 %v1987_v62 }
 0x5f5   :  { %v1927_v54 = vmul.f32 0.03125, %v1899_v14  ;;  %v1956_v7 = vmul.f32 %v7460_v13, %v7460_v13  ;;  %v1958_v22 = vmul.f32 %v7457_v43, %v7457_v43 }
 0x5f7   :  { %v7466_v16 = vsub.f32 %v7365_v38, %v1927_v54  ;;  %v1984_v17 = vsel %vm265_vm1, %v1956_v7, 0.0  ;;  %v1990_v0 = vsel %vm265_vm1, %v1958_v22, 0.0 }
 0x5f8   :  { %v1902_v12 = vpop.xlane.xlu1 %1901  ;;  %1985 = vadd.xlane.f32.xlu0 %v1984_v17 }
 0x5f9   :  { %v1928_v24 = vmul.f32 0.03125, %v1902_v12  ;;  %v1959_v40 = vmul.f32 %v7466_v16, %v7466_v16 }
 0x5fb   :  { %v7474_v1 = vsub.f32 %v7372_v10, %v1928_v24  ;;  %v1993_v23 = vsel %vm265_vm1, %v1959_v40, 0.0 }
 0x5fc   :  { %v1905_v31 = vpop.xlane.xlu1 %1904  ;;  %1994 = vadd.xlane.f32.xlu1 %v1993_v23  ;;  %1991 = vadd.xlane.f32.xlu0 %v1990_v0 }
 0x5fd   :  { %v1929_v41 = vmul.f32 0.03125, %v1905_v31  ;;  %v1960_v36 = vmul.f32 %v7474_v1, %v7474_v1 }
 0x5ff   :  { %v7481_v6 = vsub.f32 %v7377_v55, %v1929_v41  ;;  %v1996_v37 = vsel %vm265_vm1, %v1960_v36, 0.0 }
 0x600   :  { %1997 = vadd.xlane.f32.xlu0 %v1996_v37 }
 0x601   :  { %v1961_v19 = vmul.f32 %v7481_v6, %v7481_v6 }
 0x603   :  { %v1999_v5 = vsel %vm265_vm1, %v1961_v19, 0.0 }
 0x604   :  { %2000 = vadd.xlane.f32.xlu1 %v1999_v5 }
 0x60b   :  { %v1968_v42 = vpop.xlane.xlu0 %1967 }
 0x60c   :  { %v2014_v26 = vmul.f32 0.03125, %v1968_v42 }
 0x60e   :  { %v2030_v47 = vadd.f32 1e-05, %v2014_v26 }
 0x610   :  { %6573 = vrsqrt.f32 %v2030_v47 }
 0x617   :  { %v1974_v50 = vpop.xlane.xlu0 %1973 }
 0x618   :  { %v2016_v53 = vmul.f32 0.03125, %v1974_v50 }
 0x61a   :  { %v6574_v45 = vpop.eup %6573  ;;  %v2032_v22 = vadd.f32 1e-05, %v2016_v53 }
 0x61b   :  { %v2062_v18 = vmul.f32 %v6574_v45, %v7384_v35 }
 0x61c   :  { %6575 = vrsqrt.f32 %v2032_v22 }
 0x61d   :  { %v2082_v52 = vmul.f32 %v7490_v9, %v2062_v18 }
 0x61f   :  { %v2102_v20 = vadd.f32 %v7496_v46, %v2082_v52  ;;  %v1980_v62 = vpop.xlane.xlu0 %1979 }
 0x620   :  { %v2018_v12 = vmul.f32 0.03125, %v1980_v62 }
 0x621   :  { %6127 = vmatprep.mubr.msk.f32.mxu1 %vm265_vm1, %v2102_v20 }
 0x622   :  { %v2034_v41 = vadd.f32 1e-05, %v2018_v12 }
 0x624   :  { %6577 = vrsqrt.f32 %v2034_v41 }
 0x626   :  { %v6576_v18 = vpop.eup %6575 }
 0x627   :  { %v2064_v52 = vmul.f32 %v6576_v18, %v7390_v8 }
 0x62e   :  { %v6578_v20 = vpop.eup %6577 }
 0x62f   :  { %v2066_v50 = vmul.f32 %v6578_v20, %v7396_v44 }
 0x631   :  { %v2086_v62 = vmul.f32 %v7490_v9, %v2066_v50 }
 0x633   :  { %v2106_v44 = vadd.f32 %v7496_v46, %v2086_v62 }
 0x639   :  { %v1908_v15 = vpop.xlane.xlu1 %1907 }
 0x63a   :  { %v1930_v61 = vmul.f32 0.03125, %v1908_v15 }
 0x63c   :  { %v7502_v2 = vsub.f32 %v7402_v33, %v1930_v61 }
 0x63d   :  { %v1911_v58 = vpop.xlane.xlu1 %1910 }
 0x63e   :  { %v1931_v57 = vmul.f32 0.03125, %v1911_v58  ;;  %v1962_v35 = vmul.f32 %v7502_v2, %v7502_v2  ;;  %v2084_v58 = vmul.f32 %v7490_v9, %v2064_v52 }
 0x640   :  { %v7507_v30 = vsub.f32 %v7408_v25, %v1931_v57  ;;  %v2002_v27 = vsel %vm265_vm1, %v1962_v35, 0.0 }
 0x641   :  { %v1914_v56 = vpop.xlane.xlu1 %1913  ;;  %2003 = vadd.xlane.f32.xlu0 %v2002_v27 }
 0x642   :  { %v1932_v14 = vmul.f32 0.03125, %v1914_v56  ;;  %v1963_v54 = vmul.f32 %v7507_v30, %v7507_v30  ;;  %v2104_v56 = vadd.f32 %v7496_v46, %v2084_v58 }
 0x644   :  { %v7513_v7 = vsub.f32 %v7410_v59, %v1932_v14  ;;  %v2005_v17 = vsel %vm265_vm1, %v1963_v54, 0.0 }
 0x645   :  { %2006 = vadd.xlane.f32.xlu1 %v2005_v17  ;;  %v1917_v24 = vpop.xlane.xlu1 %1916 }
 0x646   :  { %v1933_v40 = vmul.f32 0.03125, %v1917_v24  ;;  %v1964_v23 = vmul.f32 %v7513_v7, %v7513_v7 }
 0x648   :  { %v7519_v0 = vsub.f32 %v7418_v21, %v1933_v40  ;;  %v2008_v31 = vsel %vm265_vm1, %v1964_v23, 0.0 }
 0x649   :  { %v1971_v36 = vpop.xlane.xlu1 %1970  ;;  %2009 = vadd.xlane.f32.xlu0 %v2008_v31 }
 0x64a   :  { %v2015_v37 = vmul.f32 0.03125, %v1971_v36  ;;  %v1965_v19 = vmul.f32 %v7519_v0, %v7519_v0 }
 0x64c   :  { %v2031_v5 = vadd.f32 1e-05, %v2015_v37  ;;  %v2011_v42 = vsel %vm265_vm1, %v1965_v19, 0.0 }
 0x64d   :  { %2012 = vadd.xlane.f32.xlu1 %v2011_v42  ;;  %v1977_v26 = vpop.xlane.xlu1 %1976 }
 0x64e   :  { %6579 = vrsqrt.f32 %v2031_v5  ;;  %v2017_v47 = vmul.f32 0.03125, %v1977_v26 }
 0x650   :  { %v2033_v45 = vadd.f32 1e-05, %v2017_v47 }
 0x652   :  { %6581 = vrsqrt.f32 %v2033_v45 }
 0x658   :  { %v6580_v15 = vpop.eup %6579 }
 0x659   :  { %v2063_v61 = vmul.f32 %v6580_v15, %v7416_v63 }
 0x65b   :  { %v2083_v57 = vmul.f32 %v7490_v9, %v2063_v61 }
 0x65c   :  { %v6582_v35 = vpop.eup %6581 }
 0x65d   :  { %v2103_v27 = vadd.f32 %v7496_v46, %v2083_v57  ;;  %v2065_v53 = vmul.f32 %v6582_v35, %v7423_v60 }
 0x65f   :  { %6128 = vmatmul.mubr.msk.f32.vlgmr.msra.gmra.mrb[28].mxu1 %vm265_vm1, %v2103_v27  ;;  %v2085_v8 = vmul.f32 %v7490_v9, %v2065_v53 }
 0x660   :  { %6130 = vmatprep.mubr.msk.f32.mxu1 %vm265_vm1, %v2104_v56 }
 0x661   :  { %v2105_v63 = vadd.f32 %v7496_v46, %v2085_v8 }
 0x663   :  { %6131 = vmatmul.mubr.msk.f32.gmra.mrb[30].mxu1 %vm265_vm1, %v2105_v63 }
 0x664   :  { %6133 = vmatprep.mubr.msk.f32.mxu1 %vm265_vm1, %v2106_v44 }
 0x67d   :  { %v1983_v14 = vpop.xlane.xlu1 %1982 }
 0x67e   :  { %v2019_v60 = vmul.f32 0.03125, %v1983_v14 }
 0x680   :  { %v2035_v54 = vadd.f32 1e-05, %v2019_v60 }
 0x681   :  { %v1989_v17 = vpop.xlane.xlu1 %1988 }
 0x682   :  { %6583 = vrsqrt.f32 %v2035_v54  ;;  %v2021_v22 = vmul.f32 0.03125, %v1989_v17 }
 0x684   :  { %v2037_v12 = vadd.f32 1e-05, %v2021_v22 }
 0x685   :  { %v1986_v24 = vpop.xlane.xlu0 %1985 }
 0x686   :  { %6585 = vrsqrt.f32 %v2037_v12  ;;  %v2020_v40 = vmul.f32 0.03125, %v1986_v24 }
 0x688   :  { %v2036_v23 = vadd.f32 1e-05, %v2020_v40 }
 0x689   :  { %v1995_v31 = vpop.xlane.xlu1 %1994  ;;  %v1992_v41 = vpop.xlane.xlu0 %1991 }
 0x68a   :  { %6587 = vrsqrt.f32 %v2036_v23  ;;  %v2023_v36 = vmul.f32 0.03125, %v1995_v31  ;;  %v2022_v37 = vmul.f32 0.03125, %v1992_v41  ;;  %v5479_v31 = vld [vmem:[%s8670_s1 + $0x148] sm:$0xff] }
 0x68c   :  { %v6584_v19 = vpop.eup %6583  ;;  %v2039_v5 = vadd.f32 1e-05, %v2023_v36  ;;  %v2038_v42 = vadd.f32 1e-05, %v2022_v37  ;;  %v5481_v36 = vld [vmem:[%s8670_s1 + $0x158] sm:$0xff] }
 0x68d   :  { %v1998_v26 = vpop.xlane.xlu0 %1997  ;;  %v2067_v47 = vmul.f32 %v6584_v19, %v7446_v51  ;;  %v5482_v19 = vld [vmem:[%s8670_s1 + $0x160] sm:$0xff] }
 0x68e   :  { %6589 = vrsqrt.f32 %v2039_v5  ;;  %v2024_v45 = vmul.f32 0.03125, %v1998_v26  ;;  %v5483_v5 = vld [vmem:[%s8670_s1 + $0x168] sm:$0xff]  ;;  %v5484_v26 = vld [vmem:[%s8670_s1 + $0x170] sm:$0xff] }
 0x68f   :  { %6591 = vrsqrt.f32 %v2038_v42  ;;  %v2087_v18 = vmul.f32 %v7490_v9, %v2067_v47  ;;  %v6422_v42 = vpack.c.bf16 %v5483_v5, %v5482_v19  ;;  %v5485_v47 = vld [vmem:[%s8670_s1 + $0x178] sm:$0xff] }
 0x690   :  { %v6586_v52 = vpop.eup %6585  ;;  %v2040_v20 = vadd.f32 1e-05, %v2024_v45  ;;  %v6426_v45 = vpack.c.bf16 %v5485_v47, %v5484_v26 }
 0x691   :  { %v2001_v15 = vpop.xlane.xlu1 %2000  ;;  %v2107_v61 = vadd.f32 %v7496_v46, %v2087_v18  ;;  %v2069_v50 = vmul.f32 %v6586_v52, %v7451_v3 }
 0x692   :  { %6593 = vrsqrt.f32 %v2040_v20  ;;  %v2025_v58 = vmul.f32 0.03125, %v2001_v15 }
 0x693   :  { %6134 = vmatmul.mubr.msk.f32.gmra.mrb[32].mxu1 %vm265_vm1, %v2107_v61  ;;  %v2089_v27 = vmul.f32 %v7490_v9, %v2069_v50 }
 0x694   :  { %v6588_v57 = vpop.eup %6587  ;;  %v2041_v35 = vadd.f32 1e-05, %v2025_v58 }
 0x695   :  { %v2068_v51 = vmul.f32 %v6588_v57, %v7460_v13  ;;  %v2109_v44 = vadd.f32 %v7496_v46, %v2089_v27 }
 0x696   :  { %6595 = vrsqrt.f32 %v2041_v35 }
 0x697   :  { %v2088_v53 = vmul.f32 %v7490_v9, %v2068_v51 }
 0x698   :  { %v6590_v56 = vpop.eup %6589 }
 0x699   :  { %v6592_v62 = vpop.eup %6591  ;;  %v2108_v8 = vadd.f32 %v7496_v46, %v2088_v53  ;;  %v2071_v63 = vmul.f32 %v6590_v56, %v7466_v16 }
 0x69a   :  { %v2070_v3 = vmul.f32 %v6592_v62, %v7457_v43 }
 0x69b   :  { %6136 = vmatprep.mubr.msk.f32.mxu1 %vm265_vm1, %v2108_v8  ;;  %v2091_v14 = vmul.f32 %v7490_v9, %v2071_v63 }
 0x69c   :  { %v6594_v13 = vpop.eup %6593  ;;  %6137 = vmatmul.mubr.msk.f32.gmra.mrb[34].mxu1 %vm265_vm1, %v2109_v44  ;;  %v2090_v60 = vmul.f32 %v7490_v9, %v2070_v3 }
 0x69d   :  { %v2111_v54 = vadd.f32 %v7496_v46, %v2091_v14  ;;  %v2072_v17 = vmul.f32 %v6594_v13, %v7474_v1  ;;  %v5478_v1 = vld [vmem:[%s8670_s1 + $0x140] sm:$0xff] }
 0x69e   :  { %v2110_v22 = vadd.f32 %v7496_v46, %v2090_v60  ;;  %v6414_v41 = vpack.c.bf16 %v5479_v31, %v5478_v1 }
 0x69f   :  { %v2092_v16 = vmul.f32 %v7490_v9, %v2072_v17 }
 0x6a0   :  { %v6596_v12 = vpop.eup %6595  ;;  %6139 = vmatprep.mubr.msk.f32.mxu1 %vm265_vm1, %v2110_v22  ;;  %6415 = vmatprep.subr.bf16.mxu1 %v6414_v41 }
 0x6a1   :  { %6140 = vmatmul.mubr.msk.f32.gmra.mrb[36].mxu1 %vm265_vm1, %v2111_v54  ;;  %v2112_v43 = vadd.f32 %v7496_v46, %v2092_v16  ;;  %v2073_v24 = vmul.f32 %v6596_v12, %v7481_v6  ;;  %v5480_v6 = vld [vmem:[%s8670_s1 + $0x150] sm:$0xff] }
 0x6a2   :  { %6417 = vmatpush3.bf16.msra.mxu1 %v6414_v41  ;;  %v6418_v37 = vpack.c.bf16 %v5481_v36, %v5480_v6 }
 0x6a3   :  { %6142 = vmatprep.mubr.msk.f32.mxu1 %vm265_vm1, %v2112_v43  ;;  %v2093_v40 = vmul.f32 %v7490_v9, %v2073_v24 }
 0x6a4   :  { %6419 = vmatprep.subr.bf16.mxu1 %v6418_v37 }
 0x6a5   :  { %v2113_v23 = vadd.f32 %v7496_v46, %v2093_v40 }
 0x6a6   :  { %6421 = vmatpush3.bf16.msra.mxu1 %v6418_v37 }
 0x6a7   :  { %6143 = vmatmul.mubr.msk.f32.gmra.mrb[38].mxu1 %vm265_vm1, %v2113_v23  ;;  %6423 = vmatprep.subr.bf16.mxu1 %v6422_v42 }
 0x6aa   :  { %6425 = vmatpush3.bf16.msra.mxu1 %v6422_v42 }
 0x6ab   :  { %6427 = vmatprep.subr.bf16.mxu1 %v6426_v45 }
 0x6ae   :  { %6429 = vmatpush3.bf16.msra.mxu1 %v6426_v45 }
 0x6ce   :  { %v2004_v18 = vpop.xlane.xlu0 %2003 }
 0x6cf   :  { %v2026_v52 = vmul.f32 0.03125, %v2004_v18 }
 0x6d1   :  { %v2042_v20 = vadd.f32 1e-05, %v2026_v52 }
 0x6d2   :  { %v2007_v15 = vpop.xlane.xlu1 %2006 }
 0x6d3   :  { %6597 = vrsqrt.f32 %v2042_v20  ;;  %v2027_v61 = vmul.f32 0.03125, %v2007_v15 }
 0x6d5   :  { %v2043_v58 = vadd.f32 1e-05, %v2027_v61 }
 0x6d6   :  { %v2010_v50 = vpop.xlane.xlu0 %2009 }
 0x6d7   :  { %6599 = vrsqrt.f32 %v2043_v58  ;;  %v2028_v57 = vmul.f32 0.03125, %v2010_v50 }
 0x6d9   :  { %v2044_v35 = vadd.f32 1e-05, %v2028_v57 }
 0x6da   :  { %v2013_v51 = vpop.xlane.xlu1 %2012 }
 0x6db   :  { %6601 = vrsqrt.f32 %v2044_v35  ;;  %v2029_v27 = vmul.f32 0.03125, %v2013_v51 }
 0x6dd   :  { %v6598_v53 = vpop.eup %6597  ;;  %v2045_v56 = vadd.f32 1e-05, %v2029_v27 }
 0x6de   :  { %v2074_v62 = vmul.f32 %v6598_v53, %v7502_v2 }
 0x6df   :  { %6603 = vrsqrt.f32 %v2045_v56 }
 0x6e0   :  { %v2094_v8 = vmul.f32 %v7490_v9, %v2074_v62 }
 0x6e1   :  { %v6600_v63 = vpop.eup %6599 }
 0x6e2   :  { %v2114_v44 = vadd.f32 %v7496_v46, %v2094_v8  ;;  %v2075_v3 = vmul.f32 %v6600_v63, %v7507_v30 }
 0x6e4   :  { %6145 = vmatprep.mubr.msk.f32.mxu1 %vm265_vm1, %v2114_v44  ;;  %v2095_v14 = vmul.f32 %v7490_v9, %v2075_v3 }
 0x6e5   :  { %v6602_v13 = vpop.eup %6601 }
 0x6e6   :  { %v2115_v60 = vadd.f32 %v7496_v46, %v2095_v14  ;;  %v2076_v54 = vmul.f32 %v6602_v13, %v7513_v7  ;;  %v7612_v7 = vld [vmem:[%s8672_s2 + $0xa] ss:$0 sm:$0xff] }
 0x6e8   :  { %6146 = vmatmul.mubr.msk.f32.gmra.mrb[40].mxu1 %vm265_vm1, %v2115_v60  ;;  %v2096_v2 = vmul.f32 %v7490_v9, %v2076_v54 }
 0x6e9   :  { %v6604_v17 = vpop.eup %6603 }
 0x6ea   :  { %v2116_v22 = vadd.f32 %v7496_v46, %v2096_v2  ;;  %v2077_v16 = vmul.f32 %v6604_v17, %v7519_v0 }
 0x6ec   :  { %6148 = vmatprep.mubr.msk.f32.mxu1 %vm265_vm1, %v2116_v22  ;;  %v2097_v30 = vmul.f32 %v7490_v9, %v2077_v16 }
 0x6ee   :  { %v2117_v12 = vadd.f32 %v7496_v46, %v2097_v30 }
 0x6f0   :  { %6149 = vmatmul.mubr.msk.f32.gmra.mrb[42].mxu1 %vm265_vm1, %v2117_v12 }
 0x732   :  { %v6129_v43 = vpop.f32.mrb[28].mxu1 }
 0x733   :  { %v2242_v24 = vadd.f32 %v6129_v43, %v7612_v7  ;;  %v2236_v40 = vpop.f32.mrb[29].mxu1 }
 0x734   :  { %v2237_v23 = vadd.f32 %v7612_v7, %v2236_v40 }
 0x735   :  { %v2332_v0 = vmul.f32 0.70710677, %v2242_v24  ;;  %v2316_v47 = vmul.f32 0.5, %v2242_v24 }
 0x736   :  { %v2331_v1 = vmul.f32 0.70710677, %v2237_v23  ;;  %v6132_v31 = vpop.f32.mrb[30].mxu1  ;;  %v2315_v42 = vmul.f32 0.5, %v2237_v23 }
 0x737   :  { %6605 = verf.f32 %v2332_v0  ;;  %v2252_v9 = vadd.f32 %v6132_v31, %v7612_v7  ;;  %v2246_v46 = vpop.f32.mrb[31].mxu1 }
 0x738   :  { %6607 = verf.f32 %v2331_v1  ;;  %v2247_v41 = vadd.f32 %v7612_v7, %v2246_v46 }
 0x739   :  { %v2334_v6 = vmul.f32 0.70710677, %v2252_v9  ;;  %v2318_v50 = vmul.f32 0.5, %v2252_v9 }
 0x73a   :  { %v2333_v36 = vmul.f32 0.70710677, %v2247_v41  ;;  %v2317_v61 = vmul.f32 0.5, %v2247_v41 }
 0x73b   :  { %6609 = verf.f32 %v2334_v6 }
 0x73c   :  { %6611 = verf.f32 %v2333_v36 }
 0x741   :  { %v6606_v37 = vpop.eup %6605 }
 0x742   :  { %v6608_v19 = vpop.eup %6607  ;;  %v2364_v5 = vadd.f32 1.0, %v6606_v37 }
 0x743   :  { %v2363_v26 = vadd.f32 1.0, %v6608_v19 }
 0x744   :  { %v2380_v20 = vmul.f32 %v2364_v5, %v2316_v47 }
 0x745   :  { %v6610_v45 = vpop.eup %6609  ;;  %v2379_v18 = vmul.f32 %v2363_v26, %v2315_v42 }
 0x746   :  { %v6612_v52 = vpop.eup %6611  ;;  %v2366_v15 = vadd.f32 1.0, %v6610_v45 }
 0x747   :  { %v2365_v58 = vadd.f32 1.0, %v6612_v52  ;;  %6167 = vmatprep.mubr.msk.f32.mxu1 %vm2399_vm3, %v2379_v18 }
 0x748   :  { %6168 = vmatmul.mubr.msk.f32.vlgmr.msra.gmra.mrb[44].mxu1 %vm2399_vm3, %v2380_v20  ;;  %v2382_v35 = vmul.f32 %v2366_v15, %v2318_v50 }
 0x749   :  { %v2381_v57 = vmul.f32 %v2365_v58, %v2317_v61 }
 0x74b   :  { %6170 = vmatprep.mubr.msk.f32.mxu1 %vm2399_vm3, %v2381_v57 }
 0x74c   :  { %6171 = vmatmul.mubr.msk.f32.gmra.mrb[46].mxu1 %vm2399_vm3, %v2382_v35 }
 0x766   :  { %v6135_v51 = vpop.f32.mrb[32].mxu1 }
 0x767   :  { %v2262_v27 = vadd.f32 %v6135_v51, %v7612_v7  ;;  %v2256_v53 = vpop.f32.mrb[33].mxu1 }
 0x768   :  { %v2257_v56 = vadd.f32 %v7612_v7, %v2256_v53 }
 0x769   :  { %v2336_v62 = vmul.f32 0.70710677, %v2262_v27  ;;  %v2320_v23 = vmul.f32 0.5, %v2262_v27 }
 0x76a   :  { %v2335_v8 = vmul.f32 0.70710677, %v2257_v56  ;;  %v2319_v43 = vmul.f32 0.5, %v2257_v56 }
 0x76b   :  { %6613 = verf.f32 %v2336_v62 }
 0x76c   :  { %6615 = verf.f32 %v2335_v8 }
 0x76f   :  { %v6138_v63 = vpop.f32.mrb[34].mxu1 }
 0x770   :  { %v2272_v44 = vadd.f32 %v6138_v63, %v7612_v7  ;;  %v2266_v3 = vpop.f32.mrb[35].mxu1 }
 0x771   :  { %v2267_v14 = vadd.f32 %v7612_v7, %v2266_v3 }
 0x772   :  { %v2338_v13 = vmul.f32 0.70710677, %v2272_v44  ;;  %v2322_v45 = vmul.f32 0.5, %v2272_v44 }
 0x773   :  { %v2337_v60 = vmul.f32 0.70710677, %v2267_v14  ;;  %v2321_v26 = vmul.f32 0.5, %v2267_v14 }
 0x774   :  { %6617 = verf.f32 %v2338_v13  ;;  %v6141_v54 = vpop.f32.mrb[36].mxu1 }
 0x775   :  { %v6614_v2 = vpop.eup %6613  ;;  %6619 = verf.f32 %v2337_v60  ;;  %v2282_v17 = vadd.f32 %v6141_v54, %v7612_v7  ;;  %v2276_v22 = vpop.f32.mrb[37].mxu1 }
 0x776   :  { %v6616_v16 = vpop.eup %6615  ;;  %v2368_v30 = vadd.f32 1.0, %v6614_v2  ;;  %v2277_v12 = vadd.f32 %v7612_v7, %v2276_v22 }
 0x777   :  { %v2367_v24 = vadd.f32 1.0, %v6616_v16  ;;  %v2340_v40 = vmul.f32 0.70710677, %v2282_v17  ;;  %v2324_v57 = vmul.f32 0.5, %v2282_v17 }
 0x778   :  { %v2339_v0 = vmul.f32 0.70710677, %v2277_v12  ;;  %v2384_v31 = vmul.f32 %v2368_v30, %v2320_v23  ;;  %v2323_v58 = vmul.f32 0.5, %v2277_v12 }
 0x779   :  { %v2383_v1 = vmul.f32 %v2367_v24, %v2319_v43  ;;  %6621 = verf.f32 %v2340_v40 }
 0x77a   :  { %6623 = verf.f32 %v2339_v0  ;;  %v6144_v9 = vpop.f32.mrb[38].mxu1 }
 0x77b   :  { %v2292_v46 = vadd.f32 %v6144_v9, %v7612_v7  ;;  %v2286_v41 = vpop.f32.mrb[39].mxu1  ;;  %6173 = vmatprep.mubr.msk.f32.mxu1 %vm2399_vm3, %v2383_v1 }
 0x77c   :  { %v2287_v6 = vadd.f32 %v7612_v7, %v2286_v41  ;;  %6174 = vmatmul.mubr.msk.f32.gmra.mrb[48].mxu1 %vm2399_vm3, %v2384_v31 }
 0x77d   :  { %v2342_v36 = vmul.f32 0.70710677, %v2292_v46  ;;  %v2326_v63 = vmul.f32 0.5, %v2292_v46 }
 0x77e   :  { %v6618_v37 = vpop.eup %6617  ;;  %v2341_v19 = vmul.f32 0.70710677, %v2287_v6  ;;  %v2325_v62 = vmul.f32 0.5, %v2287_v6 }
 0x77f   :  { %v6620_v5 = vpop.eup %6619  ;;  %v2370_v42 = vadd.f32 1.0, %v6618_v37  ;;  %6625 = verf.f32 %v2342_v36 }
 0x780   :  { %v2369_v47 = vadd.f32 1.0, %v6620_v5  ;;  %6627 = verf.f32 %v2341_v19 }
 0x781   :  { %v2386_v20 = vmul.f32 %v2370_v42, %v2322_v45 }
 0x782   :  { %v2385_v18 = vmul.f32 %v2369_v47, %v2321_v26  ;;  %v7649_v47 = vld [vmem:[%s8672_s2 + $0xb] ss:$0 sm:$0xff] }
 0x783   :  { %v6622_v52 = vpop.eup %6621 }
 0x784   :  { %v6624_v15 = vpop.eup %6623  ;;  %v2372_v61 = vadd.f32 1.0, %v6622_v52  ;;  %6176 = vmatprep.mubr.msk.f32.mxu1 %vm2399_vm3, %v2385_v18  ;;  %v2594_v52 = vmul.f32 0.5, %v7321_v11 }
 0x785   :  { %v2371_v50 = vadd.f32 1.0, %v6624_v15  ;;  %6177 = vmatmul.mubr.msk.f32.gmra.mrb[50].mxu1 %vm2399_vm3, %v2386_v20 }
 0x786   :  { %v2388_v51 = vmul.f32 %v2372_v61, %v2324_v57  ;;  %v2593_v61 = vmul.f32 0.5, %v7316_v4 }
 0x787   :  { %v2387_v35 = vmul.f32 %v2371_v50, %v2323_v58 }
 0x789   :  { %v6626_v27 = vpop.eup %6625  ;;  %6179 = vmatprep.mubr.msk.f32.mxu1 %vm2399_vm3, %v2387_v35 }
 0x78a   :  { %v6628_v53 = vpop.eup %6627  ;;  %v2374_v56 = vadd.f32 1.0, %v6626_v27  ;;  %6180 = vmatmul.mubr.msk.f32.gmra.mrb[52].mxu1 %vm2399_vm3, %v2388_v51  ;;  %v2596_v51 = vmul.f32 0.5, %v7331_v29 }
 0x78b   :  { %v2373_v8 = vadd.f32 1.0, %v6628_v53 }
 0x78c   :  { %v2390_v3 = vmul.f32 %v2374_v56, %v2326_v63  ;;  %v2595_v56 = vmul.f32 0.5, %v7326_v28 }
 0x78d   :  { %v2389_v44 = vmul.f32 %v2373_v8, %v2325_v62 }
 0x78f   :  { %6182 = vmatprep.mubr.msk.f32.mxu1 %vm2399_vm3, %v2389_v44 }
 0x790   :  { %6183 = vmatmul.mubr.msk.f32.gmra.mrb[54].mxu1 %vm2399_vm3, %v2390_v3  ;;  %v2598_v3 = vmul.f32 0.5, %v7349_v32 }
 0x7bb   :  { %v6147_v14 = vpop.f32.mrb[40].mxu1 }
 0x7bc   :  { %v2302_v13 = vadd.f32 %v6147_v14, %v7612_v7  ;;  %v2296_v60 = vpop.f32.mrb[41].mxu1 }
 0x7bd   :  { %v2297_v54 = vadd.f32 %v7612_v7, %v2296_v60  ;;  %v2597_v60 = vmul.f32 0.5, %v7336_v34 }
 0x7be   :  { %v2344_v2 = vmul.f32 0.70710677, %v2302_v13  ;;  %v2328_v9 = vmul.f32 0.5, %v2302_v13 }
 0x7bf   :  { %v2343_v17 = vmul.f32 0.70710677, %v2297_v54  ;;  %v2327_v1 = vmul.f32 0.5, %v2297_v54 }
 0x7c0   :  { %6629 = verf.f32 %v2344_v2 }
 0x7c1   :  { %6631 = verf.f32 %v2343_v17 }
 0x7c3   :  { %v6150_v22 = vpop.f32.mrb[42].mxu1 }
 0x7c4   :  { %v2312_v16 = vadd.f32 %v6150_v22, %v7612_v7  ;;  %v2306_v30 = vpop.f32.mrb[43].mxu1 }
 0x7c5   :  { %v2307_v12 = vadd.f32 %v7612_v7, %v2306_v30  ;;  %v2600_v30 = vmul.f32 0.5, %v7352_v49 }
 0x7c6   :  { %v2346_v43 = vmul.f32 0.70710677, %v2312_v16  ;;  %v2330_v5 = vmul.f32 0.5, %v2312_v16 }
 0x7c7   :  { %v2345_v24 = vmul.f32 0.70710677, %v2307_v12  ;;  %v2329_v7 = vmul.f32 0.5, %v2307_v12 }
 0x7c8   :  { %6633 = verf.f32 %v2346_v43  ;;  %v2599_v43 = vmul.f32 0.5, %v7358_v48  ;;  %v2601_v48 = vmul.f32 0.5, %v7360_v39 }
 0x7c9   :  { %6635 = verf.f32 %v2345_v24 }
 0x7ca   :  { %v6630_v40 = vpop.eup %6629 }
 0x7cb   :  { %v6632_v23 = vpop.eup %6631  ;;  %v2376_v0 = vadd.f32 1.0, %v6630_v40 }
 0x7cc   :  { %v2375_v31 = vadd.f32 1.0, %v6632_v23 }
 0x7cd   :  { %v2392_v41 = vmul.f32 %v2376_v0, %v2328_v9 }
 0x7ce   :  { %v2391_v46 = vmul.f32 %v2375_v31, %v2327_v1  ;;  %v2602_v31 = vmul.f32 0.5, %v7365_v38 }
 0x7d0   :  { %6185 = vmatprep.mubr.msk.f32.mxu1 %vm2399_vm3, %v2391_v46 }
 0x7d1   :  { %6186 = vmatmul.mubr.msk.f32.gmra.mrb[56].mxu1 %vm2399_vm3, %v2392_v41 }
 0x7d2   :  { %v6634_v6 = vpop.eup %6633 }
 0x7d3   :  { %v6636_v36 = vpop.eup %6635  ;;  %v2378_v37 = vadd.f32 1.0, %v6634_v6 }
 0x7d4   :  { %v2377_v19 = vadd.f32 1.0, %v6636_v36 }
 0x7d5   :  { %v2394_v26 = vmul.f32 %v2378_v37, %v2330_v5 }
 0x7d6   :  { %v2393_v42 = vmul.f32 %v2377_v19, %v2329_v7  ;;  %v2604_v19 = vmul.f32 0.5, %v7377_v55 }
 0x7d8   :  { %6188 = vmatprep.mubr.msk.f32.mxu1 %vm2399_vm3, %v2393_v42  ;;  %v2603_v42 = vmul.f32 0.5, %v7372_v10 }
 0x7d9   :  { %6189 = vmatmul.mubr.msk.f32.gmra.mrb[58].mxu1 %vm2399_vm3, %v2394_v26 }
 0x81b   :  { %v6169_v45 = vpop.f32.mrb[44].mxu1 }
 0x81c   :  { %v2520_v18 = vadd.f32 %v6169_v45, %v7649_v47  ;;  %v2514_v20 = vpop.f32.mrb[45].mxu1 }
 0x81d   :  { %v2515_v15 = vadd.f32 %v7649_v47, %v2514_v20 }
 0x81e   :  { %v7655_v58 = vadd.f32 %v2594_v52, %v2520_v18 }
 0x81f   :  { %v7657_v50 = vadd.f32 %v2593_v61, %v2515_v15  ;;  %v6172_v57 = vpop.f32.mrb[46].mxu1  ;;  %v2606_v15 = vmul.f32 0.5, %v7408_v25 }
 0x820   :  { %v2530_v35 = vadd.f32 %v6172_v57, %v7649_v47  ;;  %v2524_v27 = vpop.f32.mrb[47].mxu1  ;;  %v2658_v53 = vsel %vm265_vm1, %v7655_v58, 0.0  ;;  %v2605_v57 = vmul.f32 0.5, %v7402_v33 }
 0x821   :  { %v2525_v11 = vadd.f32 %v7649_v47, %v2524_v27  ;;  %2659 = vadd.xlane.f32.xlu1 %v2658_v53  ;;  %v2655_v4 = vsel %vm265_vm1, %v7657_v50, 0.0 }
 0x822   :  { %v7667_v62 = vadd.f32 %v2596_v51, %v2530_v35  ;;  %2656 = vadd.xlane.f32.xlu0 %v2655_v4 }
 0x823   :  { %v7669_v8 = vadd.f32 %v2595_v56, %v2525_v11  ;;  %v2608_v56 = vmul.f32 0.5, %v7418_v21 }
 0x824   :  { %v2664_v29 = vsel %vm265_vm1, %v7667_v62, 0.0 }
 0x825   :  { %2665 = vadd.xlane.f32.xlu1 %v2664_v29  ;;  %v2661_v63 = vsel %vm265_vm1, %v7669_v8, 0.0  ;;  %v2607_v29 = vmul.f32 0.5, %v7410_v59 }
 0x826   :  { %2662 = vadd.xlane.f32.xlu0 %v2661_v63 }
 0x84f   :  { %v6175_v44 = vpop.f32.mrb[48].mxu1 }
 0x850   :  { %v2540_v28 = vadd.f32 %v6175_v44, %v7649_v47  ;;  %v2534_v14 = vpop.f32.mrb[49].mxu1 }
 0x851   :  { %v2535_v13 = vadd.f32 %v7649_v47, %v2534_v14 }
 0x852   :  { %v7679_v54 = vadd.f32 %v2598_v3, %v2540_v28 }
 0x853   :  { %v7681_v2 = vadd.f32 %v2597_v60, %v2535_v13 }
 0x854   :  { %v2670_v17 = vsel %vm265_vm1, %v7679_v54, 0.0 }
 0x855   :  { %2671 = vadd.xlane.f32.xlu1 %v2670_v17  ;;  %v2667_v22 = vsel %vm265_vm1, %v7681_v2, 0.0 }
 0x856   :  { %2668 = vadd.xlane.f32.xlu0 %v2667_v22 }
 0x858   :  { %v6178_v16 = vpop.f32.mrb[50].mxu1 }
 0x859   :  { %v2550_v32 = vadd.f32 %v6178_v16, %v7649_v47  ;;  %v2544_v12 = vpop.f32.mrb[51].mxu1 }
 0x85a   :  { %v2545_v34 = vadd.f32 %v7649_v47, %v2544_v12 }
 0x85b   :  { %v7691_v24 = vadd.f32 %v2600_v30, %v2550_v32 }
 0x85c   :  { %v7693_v40 = vadd.f32 %v2599_v43, %v2545_v34 }
 0x85d   :  { %v6181_v23 = vpop.f32.mrb[52].mxu1  ;;  %v2676_v0 = vsel %vm265_vm1, %v7691_v24, 0.0 }
 0x85e   :  { %v2560_v1 = vadd.f32 %v6181_v23, %v7649_v47  ;;  %v2554_v9 = vpop.f32.mrb[53].mxu1  ;;  %2677 = vadd.xlane.f32.xlu1 %v2676_v0  ;;  %v2673_v49 = vsel %vm265_vm1, %v7693_v40, 0.0 }
 0x85f   :  { %v2555_v46 = vadd.f32 %v7649_v47, %v2554_v9  ;;  %2674 = vadd.xlane.f32.xlu0 %v2673_v49 }
 0x860   :  { %v7703_v41 = vadd.f32 %v2602_v31, %v2560_v1 }
 0x861   :  { %v7705_v6 = vadd.f32 %v2601_v48, %v2555_v46 }
 0x862   :  { %v2682_v36 = vsel %vm265_vm1, %v7703_v41, 0.0 }
 0x863   :  { %2683 = vadd.xlane.f32.xlu1 %v2682_v36  ;;  %v6184_v37 = vpop.f32.mrb[54].mxu1  ;;  %v2679_v38 = vsel %vm265_vm1, %v7705_v6, 0.0 }
 0x864   :  { %v2570_v7 = vadd.f32 %v6184_v37, %v7649_v47  ;;  %2680 = vadd.xlane.f32.xlu0 %v2679_v38  ;;  %v2564_v5 = vpop.f32.mrb[55].mxu1 }
 0x865   :  { %v2565_v39 = vadd.f32 %v7649_v47, %v2564_v5 }
 0x866   :  { %v7715_v26 = vadd.f32 %v2604_v19, %v2570_v7 }
 0x867   :  { %v7717_v45 = vadd.f32 %v2603_v42, %v2565_v39 }
 0x868   :  { %v2688_v18 = vsel %vm265_vm1, %v7715_v26, 0.0 }
 0x869   :  { %2689 = vadd.xlane.f32.xlu1 %v2688_v18  ;;  %v2685_v52 = vsel %vm265_vm1, %v7717_v45, 0.0 }
 0x86a   :  { %2686 = vadd.xlane.f32.xlu0 %v2685_v52 }
 0x8a4   :  { %v6187_v20 = vpop.f32.mrb[56].mxu1 }
 0x8a5   :  { %v2580_v55 = vadd.f32 %v6187_v20, %v7649_v47  ;;  %v2574_v61 = vpop.f32.mrb[57].mxu1 }
 0x8a6   :  { %v2575_v10 = vadd.f32 %v7649_v47, %v2574_v61 }
 0x8a7   :  { %v7727_v35 = vadd.f32 %v2606_v15, %v2580_v55 }
 0x8a8   :  { %v7729_v51 = vadd.f32 %v2605_v57, %v2575_v10 }
 0x8a9   :  { %v2694_v27 = vsel %vm265_vm1, %v7727_v35, 0.0 }
 0x8aa   :  { %2695 = vadd.xlane.f32.xlu1 %v2694_v27  ;;  %v2691_v53 = vsel %vm265_vm1, %v7729_v51, 0.0 }
 0x8ab   :  { %2692 = vadd.xlane.f32.xlu0 %v2691_v53 }
 0x8ac   :  { %v6190_v11 = vpop.f32.mrb[58].mxu1 }
 0x8ad   :  { %v2590_v25 = vadd.f32 %v6190_v11, %v7649_v47  ;;  %v2584_v4 = vpop.f32.mrb[59].mxu1 }
 0x8ae   :  { %v2585_v33 = vadd.f32 %v7649_v47, %v2584_v4  ;;  %v2660_v63 = vpop.xlane.xlu1 %2659 }
 0x8af   :  { %v7739_v44 = vadd.f32 %v2608_v56, %v2590_v25  ;;  %v2704_v28 = vmul.f32 0.03125, %v2660_v63  ;;  %v2657_v3 = vpop.xlane.xlu0 %2656 }
 0x8b0   :  { %v7741_v14 = vadd.f32 %v2607_v29, %v2585_v33  ;;  %v2703_v13 = vmul.f32 0.03125, %v2657_v3 }
 0x8b1   :  { %v7744_v60 = vsub.f32 %v7655_v58, %v2704_v28  ;;  %v2700_v17 = vsel %vm265_vm1, %v7739_v44, 0.0 }
 0x8b2   :  { %v7749_v21 = vsub.f32 %v7657_v50, %v2703_v13  ;;  %v2666_v47 = vpop.xlane.xlu1 %2665  ;;  %2701 = vadd.xlane.f32.xlu1 %v2700_v17  ;;  %v2697_v59 = vsel %vm265_vm1, %v7741_v14, 0.0 }
 0x8b3   :  { %v2706_v22 = vmul.f32 0.03125, %v2666_v47  ;;  %v2663_v16 = vpop.xlane.xlu0 %2662  ;;  %2698 = vadd.xlane.f32.xlu0 %v2697_v59  ;;  %v2736_v32 = vmul.f32 %v7744_v60, %v7744_v60 }
 0x8b4   :  { %v2705_v30 = vmul.f32 0.03125, %v2663_v16  ;;  %v2735_v12 = vmul.f32 %v7749_v21, %v7749_v21 }
 0x8b5   :  { %v7758_v34 = vsub.f32 %v7667_v62, %v2706_v22  ;;  %v2754_v43 = vsel %vm265_vm1, %v2736_v32, 0.0 }
 0x8b6   :  { %v7762_v23 = vsub.f32 %v7669_v8, %v2705_v30  ;;  %2755 = vadd.xlane.f32.xlu1 %v2754_v43  ;;  %v2751_v0 = vsel %vm265_vm1, %v2735_v12, 0.0 }
 0x8b7   :  { %2752 = vadd.xlane.f32.xlu0 %v2751_v0  ;;  %v2738_v1 = vmul.f32 %v7758_v34, %v7758_v34 }
 0x8b8   :  { %v2737_v31 = vmul.f32 %v7762_v23, %v7762_v23 }
 0x8b9   :  { %v2760_v9 = vsel %vm265_vm1, %v2738_v1, 0.0 }
 0x8ba   :  { %2761 = vadd.xlane.f32.xlu1 %v2760_v9  ;;  %v2757_v49 = vsel %vm265_vm1, %v2737_v31, 0.0 }
 0x8bb   :  { %2758 = vadd.xlane.f32.xlu0 %v2757_v49 }
 0x8e2   :  { %v2672_v46 = vpop.xlane.xlu1 %2671 }
 0x8e3   :  { %v2708_v48 = vmul.f32 0.03125, %v2672_v46  ;;  %v2669_v36 = vpop.xlane.xlu0 %2668 }
 0x8e4   :  { %v2707_v37 = vmul.f32 0.03125, %v2669_v36 }
 0x8e5   :  { %v7772_v38 = vsub.f32 %v7679_v54, %v2708_v48 }
 0x8e6   :  { %v7775_v7 = vsub.f32 %v7681_v2, %v2707_v37 }
 0x8e7   :  { %v2740_v19 = vmul.f32 %v7772_v38, %v7772_v38 }
 0x8e8   :  { %v2739_v5 = vmul.f32 %v7775_v7, %v7775_v7 }
 0x8e9   :  { %v2766_v39 = vsel %vm265_vm1, %v2740_v19, 0.0 }
 0x8ea   :  { %2767 = vadd.xlane.f32.xlu1 %v2766_v39  ;;  %v2763_v42 = vsel %vm265_vm1, %v2739_v5, 0.0 }
 0x8eb   :  { %v2678_v18 = vpop.xlane.xlu1 %2677  ;;  %2764 = vadd.xlane.f32.xlu0 %v2763_v42 }
 0x8ec   :  { %v2710_v52 = vmul.f32 0.03125, %v2678_v18  ;;  %v2675_v20 = vpop.xlane.xlu0 %2674 }
 0x8ed   :  { %v2709_v55 = vmul.f32 0.03125, %v2675_v20 }
 0x8ee   :  { %v7784_v15 = vsub.f32 %v7691_v24, %v2710_v52 }
 0x8ef   :  { %v7787_v61 = vsub.f32 %v7693_v40, %v2709_v55 }
 0x8f0   :  { %v2684_v10 = vpop.xlane.xlu1 %2683  ;;  %v2742_v57 = vmul.f32 %v7784_v15, %v7784_v15 }
 0x8f1   :  { %v2712_v27 = vmul.f32 0.03125, %v2684_v10  ;;  %v2681_v53 = vpop.xlane.xlu0 %2680  ;;  %v2741_v11 = vmul.f32 %v7787_v61, %v7787_v61 }
 0x8f2   :  { %v2711_v25 = vmul.f32 0.03125, %v2681_v53  ;;  %v2772_v56 = vsel %vm265_vm1, %v2742_v57, 0.0 }
 0x8f3   :  { %v7795_v4 = vsub.f32 %v7703_v41, %v2712_v27  ;;  %2773 = vadd.xlane.f32.xlu1 %v2772_v56  ;;  %v2769_v33 = vsel %vm265_vm1, %v2741_v11, 0.0 }
 0x8f4   :  { %v7799_v29 = vsub.f32 %v7705_v6, %v2711_v25  ;;  %2770 = vadd.xlane.f32.xlu0 %v2769_v33 }
 0x8f5   :  { %v2744_v63 = vmul.f32 %v7795_v4, %v7795_v4 }
 0x8f6   :  { %v2690_v28 = vpop.xlane.xlu1 %2689  ;;  %v2743_v3 = vmul.f32 %v7799_v29, %v7799_v29 }
 0x8f7   :  { %v2714_v13 = vmul.f32 0.03125, %v2690_v28  ;;  %v2687_v17 = vpop.xlane.xlu0 %2686  ;;  %v2778_v47 = vsel %vm265_vm1, %v2744_v63, 0.0 }
 0x8f8   :  { %v2713_v59 = vmul.f32 0.03125, %v2687_v17  ;;  %2779 = vadd.xlane.f32.xlu1 %v2778_v47  ;;  %v2775_v22 = vsel %vm265_vm1, %v2743_v3, 0.0 }
 0x8f9   :  { %v7808_v16 = vsub.f32 %v7715_v26, %v2714_v13  ;;  %2776 = vadd.xlane.f32.xlu0 %v2775_v22 }
 0x8fa   :  { %v7811_v32 = vsub.f32 %v7717_v45, %v2713_v59 }
 0x8fb   :  { %v2746_v30 = vmul.f32 %v7808_v16, %v7808_v16 }
 0x8fc   :  { %v2745_v12 = vmul.f32 %v7811_v32, %v7811_v32 }
 0x8fd   :  { %v2784_v43 = vsel %vm265_vm1, %v2746_v30, 0.0 }
 0x8fe   :  { %2785 = vadd.xlane.f32.xlu1 %v2784_v43  ;;  %v2781_v0 = vsel %vm265_vm1, %v2745_v12, 0.0 }
 0x8ff   :  { %2782 = vadd.xlane.f32.xlu0 %v2781_v0  ;;  %v7847_v0 = vld [vmem:[%s8672_s2 + $0xc] ss:$0 sm:$0xff] }
 0x937   :  { %v2696_v1 = vpop.xlane.xlu1 %2695 }
 0x938   :  { %v2716_v31 = vmul.f32 0.03125, %v2696_v1  ;;  %v2693_v9 = vpop.xlane.xlu0 %2692 }
 0x939   :  { %v2715_v49 = vmul.f32 0.03125, %v2693_v9 }
 0x93a   :  { %v7820_v46 = vsub.f32 %v7727_v35, %v2716_v31 }
 0x93b   :  { %v7823_v48 = vsub.f32 %v7729_v51, %v2715_v49  ;;  %v7854_v49 = vld [vmem:[%s8672_s2 + $0xd] ss:$0 sm:$0xff] }
 0x93c   :  { %v2748_v36 = vmul.f32 %v7820_v46, %v7820_v46 }
 0x93d   :  { %v2747_v37 = vmul.f32 %v7823_v48, %v7823_v48 }
 0x93e   :  { %v2790_v19 = vsel %vm265_vm1, %v2748_v36, 0.0 }
 0x93f   :  { %2791 = vadd.xlane.f32.xlu1 %v2790_v19  ;;  %v2702_v5 = vpop.xlane.xlu1 %2701  ;;  %v2787_v39 = vsel %vm265_vm1, %v2747_v37, 0.0 }
 0x940   :  { %v2718_v42 = vmul.f32 0.03125, %v2702_v5  ;;  %2788 = vadd.xlane.f32.xlu0 %v2787_v39  ;;  %v2699_v18 = vpop.xlane.xlu0 %2698 }
 0x941   :  { %v2717_v52 = vmul.f32 0.03125, %v2699_v18 }
 0x942   :  { %v7832_v20 = vsub.f32 %v7739_v44, %v2718_v42  ;;  %v5591_v42 = vld [vmem:[%s8670_s1 + $0x188] sm:$0xff] }
 0x943   :  { %v7835_v55 = vsub.f32 %v7741_v14, %v2717_v52  ;;  %v2756_v25 = vpop.xlane.xlu1 %2755 }
 0x944   :  { %v2750_v10 = vmul.f32 %v7832_v20, %v7832_v20  ;;  %v2753_v11 = vpop.xlane.xlu0 %2752  ;;  %v2800_v63 = vmul.f32 0.03125, %v2756_v25 }
 0x945   :  { %v2749_v57 = vmul.f32 %v7835_v55, %v7835_v55  ;;  %v2799_v56 = vmul.f32 0.03125, %v2753_v11 }
 0x946   :  { %v2796_v27 = vsel %vm265_vm1, %v2750_v10, 0.0  ;;  %v2816_v17 = vadd.f32 1e-05, %v2800_v63 }
 0x947   :  { %2797 = vadd.xlane.f32.xlu1 %v2796_v27  ;;  %v2793_v53 = vsel %vm265_vm1, %v2749_v57, 0.0  ;;  %v2815_v28 = vadd.f32 1e-05, %v2799_v56  ;;  %v2762_v13 = vpop.xlane.xlu1 %2761 }
 0x948   :  { %2794 = vadd.xlane.f32.xlu0 %v2793_v53  ;;  %v2759_v33 = vpop.xlane.xlu0 %2758  ;;  %v2802_v47 = vmul.f32 0.03125, %v2762_v13 }
 0x949   :  { %v2801_v3 = vmul.f32 0.03125, %v2759_v33  ;;  %6637 = vrsqrt.f32 %v2815_v28 }
 0x94a   :  { %6639 = vrsqrt.f32 %v2816_v17  ;;  %v2818_v22 = vadd.f32 1e-05, %v2802_v47 }
 0x94b   :  { %v2817_v59 = vadd.f32 1e-05, %v2801_v3 }
 0x94d   :  { %6641 = vrsqrt.f32 %v2817_v59 }
 0x94e   :  { %6643 = vrsqrt.f32 %v2818_v22 }
 0x953   :  { %v6638_v30 = vpop.eup %6637 }
 0x954   :  { %v2847_v12 = vmul.f32 %v6638_v30, %v7749_v21  ;;  %v6640_v43 = vpop.eup %6639 }
 0x955   :  { %v2848_v9 = vmul.f32 %v6640_v43, %v7744_v60  ;;  %v5590_v60 = vld [vmem:[%s8670_s1 + $0x180] sm:$0xff] }
 0x956   :  { %v2867_v31 = vmul.f32 %v7847_v0, %v2847_v12  ;;  %v6430_v18 = vpack.c.bf16 %v5591_v42, %v5590_v60 }
 0x957   :  { %v6642_v1 = vpop.eup %6641  ;;  %v2868_v19 = vmul.f32 %v7847_v0, %v2848_v9 }
 0x958   :  { %v2849_v36 = vmul.f32 %v6642_v1, %v7762_v23  ;;  %v6644_v37 = vpop.eup %6643  ;;  %v2887_v21 = vadd.f32 %v7854_v49, %v2867_v31  ;;  %6431 = vmatprep.subr.bf16.mxu0 %v6430_v18 }
 0x959   :  { %v2850_v39 = vmul.f32 %v6644_v37, %v7758_v34  ;;  %v2888_v52 = vadd.f32 %v7854_v49, %v2868_v19  ;;  %6433 = vmatpush3.bf16.msra.mxu0 %v6430_v18 }
 0x95a   :  { %v2869_v5 = vmul.f32 %v7847_v0, %v2849_v36 }
 0x95b   :  { %v2870_v53 = vmul.f32 %v7847_v0, %v2850_v39 }
 0x95c   :  { %v2889_v27 = vadd.f32 %v7854_v49, %v2869_v5 }
 0x95d   :  { %v2890_v56 = vadd.f32 %v7854_v49, %v2870_v53 }
 0x975   :  { %2903 = vxpose.xlu0.b32.start [1/2] (short) (narrow) %v2887_v21, 32 }
 0x977   :  { %v2768_v23 = vpop.xlane.xlu1 %2767 }
 0x978   :  { %v2804_v10 = vmul.f32 0.03125, %v2768_v23  ;;  %v2765_v57 = vpop.xlane.xlu0 %2764 }
 0x979   :  { %v2803_v34 = vmul.f32 0.03125, %v2765_v57  ;;  %2904 = vxpose.xlu0.b32.end [2/2] (short) (narrow) %v2888_v52, 32 }
 0x97a   :  { %v2820_v11 = vadd.f32 1e-05, %v2804_v10  ;;  %2935 = vxpose.xlu1.b32.start [1/2] (short) (narrow) %v2889_v27, 32 }
 0x97b   :  { %v2819_v25 = vadd.f32 1e-05, %v2803_v34 }
 0x97c   :  { %6645 = vrsqrt.f32 %v2820_v11 }
 0x97d   :  { %6647 = vrsqrt.f32 %v2819_v25 }
 0x97e   :  { %2936 = vxpose.xlu1.b32.end [2/2] (short) (narrow) %v2890_v56, 32 }
 0x980   :  { %v2774_v33 = vpop.xlane.xlu1 %2773 }
 0x981   :  { %v2806_v63 = vmul.f32 0.03125, %v2774_v33  ;;  %v2771_v28 = vpop.xlane.xlu0 %2770 }
 0x982   :  { %v2805_v3 = vmul.f32 0.03125, %v2771_v28 }
 0x983   :  { %v2822_v13 = vadd.f32 1e-05, %v2806_v63 }
 0x984   :  { %v2821_v17 = vadd.f32 1e-05, %v2805_v3 }
 0x985   :  { %6649 = vrsqrt.f32 %v2822_v13  ;;  %v2780_v47 = vpop.xlane.xlu1 %2779 }
 0x986   :  { %v6646_v59 = vpop.eup %6645  ;;  %6651 = vrsqrt.f32 %v2821_v17  ;;  %v2808_v22 = vmul.f32 0.03125, %v2780_v47  ;;  %v2777_v30 = vpop.xlane.xlu0 %2776 }
 0x987   :  { %v6648_v12 = vpop.eup %6647  ;;  %v2807_v43 = vmul.f32 0.03125, %v2777_v30  ;;  %v2852_v9 = vmul.f32 %v6646_v59, %v7772_v38 }
 0x988   :  { %v2824_v1 = vadd.f32 1e-05, %v2808_v22  ;;  %v2851_v31 = vmul.f32 %v6648_v12, %v7775_v7 }
 0x989   :  { %v2823_v36 = vadd.f32 1e-05, %v2807_v43  ;;  %v2872_v60 = vmul.f32 %v7847_v0, %v2852_v9 }
 0x98a   :  { %6653 = vrsqrt.f32 %v2824_v1  ;;  %v2871_v37 = vmul.f32 %v7847_v0, %v2851_v31 }
 0x98b   :  { %6655 = vrsqrt.f32 %v2823_v36  ;;  %v2786_v21 = vpop.xlane.xlu1 %2785  ;;  %v2892_v38 = vadd.f32 %v7854_v49, %v2872_v60 }
 0x98c   :  { %v2810_v19 = vmul.f32 0.03125, %v2786_v21  ;;  %v2783_v5 = vpop.xlane.xlu0 %2782  ;;  %v2891_v39 = vadd.f32 %v7854_v49, %v2871_v37 }
 0x98d   :  { %v2809_v42 = vmul.f32 0.03125, %v2783_v5 }
 0x98e   :  { %v2826_v18 = vadd.f32 1e-05, %v2810_v19  ;;  %2967 = vxpose.xlu0.b32.start [1/2] (short) (narrow) %v2891_v39, 32 }
 0x98f   :  { %v6650_v23 = vpop.eup %6649  ;;  %v2825_v52 = vadd.f32 1e-05, %v2809_v42 }
 0x990   :  { %v6652_v7 = vpop.eup %6651  ;;  %6657 = vrsqrt.f32 %v2826_v18  ;;  %v2854_v57 = vmul.f32 %v6650_v23, %v7784_v15 }
 0x991   :  { %6659 = vrsqrt.f32 %v2825_v52  ;;  %v2853_v10 = vmul.f32 %v6652_v7, %v7787_v61 }
 0x992   :  { %2968 = vxpose.xlu0.b32.end [2/2] (short) (narrow) %v2892_v38, 32  ;;  %v2874_v25 = vmul.f32 %v7847_v0, %v2854_v57 }
 0x993   :  { %v2873_v27 = vmul.f32 %v7847_v0, %v2853_v10 }
 0x994   :  { %v6654_v53 = vpop.eup %6653  ;;  %v2894_v61 = vadd.f32 %v7854_v49, %v2874_v25 }
 0x995   :  { %v6656_v34 = vpop.eup %6655  ;;  %v2893_v11 = vadd.f32 %v7854_v49, %v2873_v27  ;;  %v2856_v33 = vmul.f32 %v6654_v53, %v7795_v4 }
 0x996   :  { %v2855_v56 = vmul.f32 %v6656_v34, %v7799_v29 }
 0x997   :  { %2999 = vxpose.xlu1.b32.start [1/2] (short) (narrow) %v2893_v11, 32  ;;  %v2876_v3 = vmul.f32 %v7847_v0, %v2856_v33 }
 0x998   :  { %v2875_v63 = vmul.f32 %v7847_v0, %v2855_v56 }
 0x999   :  { %v2896_v47 = vadd.f32 %v7854_v49, %v2876_v3 }
 0x99a   :  { %v6658_v28 = vpop.eup %6657  ;;  %v2895_v15 = vadd.f32 %v7854_v49, %v2875_v63 }
 0x99b   :  { %v6660_v13 = vpop.eup %6659  ;;  %3000 = vxpose.xlu1.b32.end [2/2] (short) (narrow) %v2894_v61, 32  ;;  %v2858_v4 = vmul.f32 %v6658_v28, %v7808_v16 }
 0x99c   :  { %3031 = vxpose.xlu0.b32.start [1/2] (short) (narrow) %v2895_v15, 32  ;;  %v2857_v17 = vmul.f32 %v6660_v13, %v7811_v32 }
 0x99d   :  { %v2878_v22 = vmul.f32 %v7847_v0, %v2858_v4 }
 0x99e   :  { %v2877_v29 = vmul.f32 %v7847_v0, %v2857_v17 }
 0x99f   :  { %v2898_v30 = vadd.f32 %v7854_v49, %v2878_v22 }
 0x9a0   :  { %3032 = vxpose.xlu0.b32.end [2/2] (short) (narrow) %v2896_v47, 32  ;;  %v2897_v59 = vadd.f32 %v7854_v49, %v2877_v29 }
 0x9a4   :  { %3063 = vxpose.xlu1.b32.start [1/2] (short) (narrow) %v2897_v59, 32 }
 0x9a8   :  { %3064 = vxpose.xlu1.b32.end [2/2] (short) (narrow) %v2898_v30, 32 }
 0x9cc   :  { %v2792_v12 = vpop.xlane.xlu1 %2791 }
 0x9cd   :  { %v2812_v43 = vmul.f32 0.03125, %v2792_v12  ;;  %v2789_v1 = vpop.xlane.xlu0 %2788 }
 0x9ce   :  { %v2811_v31 = vmul.f32 0.03125, %v2789_v1 }
 0x9cf   :  { %v2828_v32 = vadd.f32 1e-05, %v2812_v43 }
 0x9d0   :  { %v2827_v9 = vadd.f32 1e-05, %v2811_v31 }
 0x9d1   :  { %6661 = vrsqrt.f32 %v2828_v32  ;;  %v5592_v32 = vld [vmem:[%s8670_s1 + $0x1c0] sm:$0xff] }
 0x9d2   :  { %6663 = vrsqrt.f32 %v2827_v9  ;;  %v5593_v9 = vld [vmem:[%s8670_s1 + $0x1c8] sm:$0xff] }
 0x9d4   :  { %v2798_v36 = vpop.xlane.xlu1 %2797 }
 0x9d5   :  { %v2814_v37 = vmul.f32 0.03125, %v2798_v36  ;;  %v2795_v16 = vpop.xlane.xlu0 %2794  ;;  %v6434_v36 = vpack.c.bf16 %v5593_v9, %v5592_v32 }
 0x9d6   :  { %v2813_v21 = vmul.f32 0.03125, %v2795_v16  ;;  %v5595_v16 = vld [vmem:[%s8670_s1 + $0x1d8] sm:$0xff] }
 0x9d7   :  { %v2830_v19 = vadd.f32 1e-05, %v2814_v37  ;;  %6435 = vmatprep.subr.bf16.mxu1 %v6434_v36  ;;  %v5594_v37 = vld [vmem:[%s8670_s1 + $0x1d0] sm:$0xff] }
 0x9d8   :  { %v2829_v5 = vadd.f32 1e-05, %v2813_v21  ;;  %6437 = vmatpush3.bf16.msra.mxu1 %v6434_v36  ;;  %v6438_v21 = vpack.c.bf16 %v5595_v16, %v5594_v37 }
 0x9d9   :  { %6665 = vrsqrt.f32 %v2830_v19 }
 0x9da   :  { %6667 = vrsqrt.f32 %v2829_v5  ;;  %6439 = vmatprep.subr.bf16.mxu1 %v6438_v21 }
 0x9db   :  { %v6662_v39 = vpop.eup %6661 }
 0x9dc   :  { %v6664_v60 = vpop.eup %6663  ;;  %v2860_v18 = vmul.f32 %v6662_v39, %v7820_v46  ;;  %6441 = vmatpush3.bf16.msra.mxu1 %v6438_v21 }
 0x9dd   :  { %v2859_v42 = vmul.f32 %v6664_v60, %v7823_v48 }
 0x9de   :  { %v2880_v7 = vmul.f32 %v7847_v0, %v2860_v18 }
 0x9df   :  { %v2879_v23 = vmul.f32 %v7847_v0, %v2859_v42 }
 0x9e0   :  { %v2900_v57 = vadd.f32 %v7854_v49, %v2880_v7  ;;  %v7954_v7 = vld [vmem:[%s8672_s2 + $0xe] ss:$0 sm:$0xff] }
 0x9e1   :  { %v2899_v52 = vadd.f32 %v7854_v49, %v2879_v23 }
 0x9e3   :  { %v6666_v38 = vpop.eup %6665  ;;  %3095 = vxpose.xlu0.b32.start [1/2] (short) (narrow) %v2899_v52, 32 }
 0x9e4   :  { %v6668_v10 = vpop.eup %6667  ;;  %v2862_v53 = vmul.f32 %v6666_v38, %v7832_v20 }
 0x9e5   :  { %v2861_v27 = vmul.f32 %v6668_v10, %v7835_v55 }
 0x9e6   :  { %v2882_v34 = vmul.f32 %v7847_v0, %v2862_v53 }
 0x9e7   :  { %3096 = vxpose.xlu0.b32.end [2/2] (short) (narrow) %v2900_v57, 32  ;;  %v2881_v48 = vmul.f32 %v7847_v0, %v2861_v27 }
 0x9e8   :  { %v2902_v11 = vadd.f32 %v7854_v49, %v2882_v34 }
 0x9e9   :  { %v2901_v46 = vadd.f32 %v7854_v49, %v2881_v48 }
 0x9eb   :  { %3127 = vxpose.xlu1.b32.start [1/2] (short) (narrow) %v2901_v46, 32 }
 0x9ef   :  { %3128 = vxpose.xlu1.b32.end [2/2] (short) (narrow) %v2902_v11, 32 }
 0x9f5   :  { %v2919_v25 = vpop.trf.xlu0 }
 0x9f6   :  { %6195 = vmatprep.mubr.msk.f32.mxu0 %vm775_vm2, %v2919_v25 }
 0x9f9   :  { %v2920_v56 = vpop.trf.xlu0 }
 0x9fa   :  { %6196 = vmatmul.mubr.msk.f32.vlgmr.msra.gmra.mrb[52].mxu0 %vm775_vm2, %v2920_v56  ;;  %v2951_v55 = vpop.trf.xlu1 }
 0x9fd   :  { %v2921_v33 = vpop.trf.xlu0 }
 0x9fe   :  { %6198 = vmatprep.mubr.msk.f32.mxu0 %vm775_vm2, %v2921_v33  ;;  %v2952_v20 = vpop.trf.xlu1 }
 0xa01   :  { %v2922_v63 = vpop.trf.xlu0 }
 0xa02   :  { %6199 = vmatmul.mubr.msk.f32.gmra.mrb[54].mxu0 %vm775_vm2, %v2922_v63  ;;  %v2953_v61 = vpop.trf.xlu1 }
 0xa03   :  { %6201 = vmatprep.mubr.msk.f32.mxu0 %vm775_vm2, %v2951_v55 }
 0xa06   :  { %6202 = vmatmul.mubr.msk.f32.gmra.mrb[56].mxu0 %vm775_vm2, %v2952_v20  ;;  %v2954_v0 = vpop.trf.xlu1 }
 0xa07   :  { %6204 = vmatprep.mubr.msk.f32.mxu0 %vm775_vm2, %v2953_v61 }
 0xa0a   :  { %6205 = vmatmul.mubr.msk.f32.gmra.mrb[58].mxu0 %vm775_vm2, %v2954_v0 }
 0xa0e   :  { %v2983_v49 = vpop.trf.xlu0 }
 0xa0f   :  { %6207 = vmatprep.mubr.msk.f32.mxu0 %vm775_vm2, %v2983_v49 }
 0xa12   :  { %v2984_v28 = vpop.trf.xlu0 }
 0xa13   :  { %6208 = vmatmul.mubr.msk.f32.gmra.mrb[60].mxu0 %vm775_vm2, %v2984_v28 }
 0xa16   :  { %v2985_v15 = vpop.trf.xlu0 }
 0xa17   :  { %v3015_v3 = vpop.trf.xlu1  ;;  %6210 = vmatprep.mubr.msk.f32.mxu0 %vm775_vm2, %v2985_v15 }
 0xa1a   :  { %v2986_v13 = vpop.trf.xlu0 }
 0xa1b   :  { %v3016_v17 = vpop.trf.xlu1  ;;  %6211 = vmatmul.mubr.msk.f32.gmra.mrb[62].mxu0 %vm775_vm2, %v2986_v13 }
 0xa1c   :  { %6213 = vmatprep.mubr.msk.f32.mxu0 %vm775_vm2, %v3015_v3 }
 0xa1e   :  { %v3047_v47 = vpop.trf.xlu0 }
 0xa1f   :  { %v3017_v29 = vpop.trf.xlu1  ;;  %6214 = vmatmul.mubr.msk.f32.gmra.mrb[64].mxu0 %vm775_vm2, %v3016_v17 }
 0xa20   :  { %6216 = vmatprep.mubr.msk.f32.mxu0 %vm775_vm2, %v3017_v29 }
 0xa22   :  { %v3048_v4 = vpop.trf.xlu0 }
 0xa23   :  { %v3018_v59 = vpop.trf.xlu1 }
 0xa24   :  { %6217 = vmatmul.mubr.msk.f32.gmra.mrb[66].mxu0 %vm775_vm2, %v3018_v59 }
 0xa25   :  { %6219 = vmatprep.mubr.msk.f32.mxu0 %vm775_vm2, %v3047_v47 }
 0xa26   :  { %v3049_v22 = vpop.trf.xlu0 }
 0xa27   :  { %v3079_v30 = vpop.trf.xlu1 }
 0xa28   :  { %6220 = vmatmul.mubr.msk.f32.gmra.mrb[68].mxu0 %vm775_vm2, %v3048_v4 }
 0xa29   :  { %6222 = vmatprep.mubr.msk.f32.mxu0 %vm775_vm2, %v3049_v22 }
 0xa2a   :  { %v3050_v12 = vpop.trf.xlu0 }
 0xa2b   :  { %v3080_v43 = vpop.trf.xlu1 }
 0xa2c   :  { %6223 = vmatmul.mubr.msk.f32.gmra.mrb[70].mxu0 %vm775_vm2, %v3050_v12 }
 0xa2d   :  { %6225 = vmatprep.mubr.msk.f32.mxu0 %vm775_vm2, %v3079_v30 }
 0xa2f   :  { %v3081_v1 = vpop.trf.xlu1 }
 0xa30   :  { %6226 = vmatmul.mubr.msk.f32.gmra.mrb[72].mxu0 %vm775_vm2, %v3080_v43 }
 0xa31   :  { %6228 = vmatprep.mubr.msk.f32.mxu0 %vm775_vm2, %v3081_v1 }
 0xa33   :  { %v3082_v31 = vpop.trf.xlu1 }
 0xa34   :  { %6229 = vmatmul.mubr.msk.f32.gmra.mrb[74].mxu0 %vm775_vm2, %v3082_v31 }
 0xa63   :  { %v3111_v19 = vpop.trf.xlu0 }
 0xa64   :  { %6231 = vmatprep.mubr.msk.f32.mxu0 %vm775_vm2, %v3111_v19 }
 0xa67   :  { %v3112_v5 = vpop.trf.xlu0 }
 0xa68   :  { %6232 = vmatmul.mubr.msk.f32.gmra.mrb[76].mxu0 %vm775_vm2, %v3112_v5 }
 0xa6b   :  { %v3143_v39 = vpop.trf.xlu1  ;;  %v3113_v60 = vpop.trf.xlu0 }
 0xa6c   :  { %6234 = vmatprep.mubr.msk.f32.mxu0 %vm775_vm2, %v3113_v60 }
 0xa6f   :  { %v3144_v42 = vpop.trf.xlu1  ;;  %v3114_v18 = vpop.trf.xlu0 }
 0xa70   :  { %6235 = vmatmul.mubr.msk.f32.gmra.mrb[78].mxu0 %vm775_vm2, %v3114_v18 }
 0xa71   :  { %6237 = vmatprep.mubr.msk.f32.mxu0 %vm775_vm2, %v3143_v39 }
 0xa73   :  { %v3145_v23 = vpop.trf.xlu1 }
 0xa74   :  { %6238 = vmatmul.mubr.msk.f32.gmra.mrb[80].mxu0 %vm775_vm2, %v3144_v42 }
 0xa75   :  { %6240 = vmatprep.mubr.msk.f32.mxu0 %vm775_vm2, %v3145_v23 }
 0xa77   :  { %v3146_v52 = vpop.trf.xlu1 }
 0xa78   :  { %6241 = vmatmul.mubr.msk.f32.gmra.mrb[82].mxu0 %vm775_vm2, %v3146_v52 }
 0xacd   :  { %v6197_v38 = vpop.f32.mrb[52].mxu0 }
 0xace   :  { %v3331_v10 = vadd.f32 %v6197_v38, %v7954_v7  ;;  %v3325_v57 = vpop.f32.mrb[53].mxu0 }
 0xacf   :  { %v3326_v27 = vadd.f32 %v7954_v7, %v3325_v57 }
 0xad0   :  { %v3517_v53 = vmul.f32 0.70710677, %v3331_v10  ;;  %v3485_v61 = vmul.f32 0.5, %v3331_v10 }
 0xad1   :  { %v3516_v48 = vmul.f32 0.70710677, %v3326_v27  ;;  %v3484_v28 = vmul.f32 0.5, %v3326_v27 }
 0xad2   :  { %6669 = verf.f32 %v3517_v53 }
 0xad3   :  { %6671 = verf.f32 %v3516_v48 }
 0xad5   :  { %v6200_v46 = vpop.f32.mrb[54].mxu0 }
 0xad6   :  { %v3341_v34 = vadd.f32 %v6200_v46, %v7954_v7  ;;  %v3335_v11 = vpop.f32.mrb[55].mxu0 }
 0xad7   :  { %v3336_v25 = vadd.f32 %v7954_v7, %v3335_v11 }
 0xad8   :  { %v3519_v56 = vmul.f32 0.70710677, %v3341_v34  ;;  %v3487_v31 = vmul.f32 0.5, %v3341_v34 }
 0xad9   :  { %v3518_v55 = vmul.f32 0.70710677, %v3336_v25  ;;  %v6203_v33 = vpop.f32.mrb[56].mxu0  ;;  %v3486_v9 = vmul.f32 0.5, %v3336_v25 }
 0xada   :  { %6673 = verf.f32 %v3519_v56  ;;  %v3351_v20 = vadd.f32 %v6203_v33, %v7954_v7  ;;  %v3345_v63 = vpop.f32.mrb[57].mxu0 }
 0xadb   :  { %6675 = verf.f32 %v3518_v55  ;;  %v3346_v0 = vadd.f32 %v7954_v7, %v3345_v63 }
 0xadc   :  { %v6670_v49 = vpop.eup %6669  ;;  %v3521_v15 = vmul.f32 0.70710677, %v3351_v20  ;;  %v3489_v5 = vmul.f32 0.5, %v3351_v20 }
 0xadd   :  { %v6672_v3 = vpop.eup %6671  ;;  %v3581_v13 = vadd.f32 1.0, %v6670_v49  ;;  %v3520_v17 = vmul.f32 0.70710677, %v3346_v0  ;;  %v6206_v47 = vpop.f32.mrb[58].mxu0  ;;  %v3488_v23 = vmul.f32 0.5, %v3346_v0 }
 0xade   :  { %v3580_v29 = vadd.f32 1.0, %v6672_v3  ;;  %6677 = verf.f32 %v3521_v15  ;;  %v3361_v4 = vadd.f32 %v6206_v47, %v7954_v7  ;;  %v3355_v59 = vpop.f32.mrb[59].mxu0 }
 0xadf   :  { %v3613_v22 = vmul.f32 %v3581_v13, %v3485_v61  ;;  %6679 = verf.f32 %v3520_v17  ;;  %v3356_v30 = vadd.f32 %v7954_v7, %v3355_v59 }
 0xae0   :  { %v3612_v12 = vmul.f32 %v3580_v29, %v3484_v28  ;;  %v3523_v43 = vmul.f32 0.70710677, %v3361_v4  ;;  %v3491_v46 = vmul.f32 0.5, %v3361_v4 }
 0xae1   :  { %v3522_v1 = vmul.f32 0.70710677, %v3356_v30  ;;  %v3490_v25 = vmul.f32 0.5, %v3356_v30 }
 0xae2   :  { %6681 = verf.f32 %v3523_v43  ;;  %6251 = vmatprep.mubr.msk.f32.mxu1 %vm265_vm1, %v3612_v12 }
 0xae3   :  { %6683 = verf.f32 %v3522_v1  ;;  %6252 = vmatmul.mubr.msk.f32.vlgmr.msra.gmra.mrb[60].mxu1 %vm265_vm1, %v3613_v22 }
 0xae4   :  { %v6674_v32 = vpop.eup %6673 }
 0xae5   :  { %v6676_v36 = vpop.eup %6675  ;;  %v3583_v37 = vadd.f32 1.0, %v6674_v32 }
 0xae6   :  { %v3582_v16 = vadd.f32 1.0, %v6676_v36  ;;  %v6209_v21 = vpop.f32.mrb[60].mxu0 }
 0xae7   :  { %v3615_v19 = vmul.f32 %v3583_v37, %v3487_v31  ;;  %v3371_v39 = vadd.f32 %v6209_v21, %v7954_v7  ;;  %v3365_v60 = vpop.f32.mrb[61].mxu0 }
 0xae8   :  { %v6678_v42 = vpop.eup %6677  ;;  %v3614_v18 = vmul.f32 %v3582_v16, %v3486_v9  ;;  %v3366_v52 = vadd.f32 %v7954_v7, %v3365_v60 }
 0xae9   :  { %v6680_v38 = vpop.eup %6679  ;;  %v3585_v10 = vadd.f32 1.0, %v6678_v42  ;;  %v3525_v57 = vmul.f32 0.70710677, %v3371_v39  ;;  %v3493_v29 = vmul.f32 0.5, %v3371_v39 }
 0xaea   :  { %v3584_v27 = vadd.f32 1.0, %v6680_v38  ;;  %v3524_v53 = vmul.f32 0.70710677, %v3366_v52  ;;  %6254 = vmatprep.mubr.msk.f32.mxu1 %vm265_vm1, %v3614_v18  ;;  %v3492_v22 = vmul.f32 0.5, %v3366_v52 }
 0xaeb   :  { %v3617_v48 = vmul.f32 %v3585_v10, %v3489_v5  ;;  %6685 = verf.f32 %v3525_v57  ;;  %6255 = vmatmul.mubr.msk.f32.gmra.mrb[62].mxu1 %vm265_vm1, %v3615_v19 }
 0xaec   :  { %v6682_v34 = vpop.eup %6681  ;;  %v3616_v11 = vmul.f32 %v3584_v27, %v3488_v23  ;;  %6687 = verf.f32 %v3524_v53 }
 0xaed   :  { %v6684_v56 = vpop.eup %6683  ;;  %v3587_v55 = vadd.f32 1.0, %v6682_v34 }
 0xaee   :  { %v3586_v33 = vadd.f32 1.0, %v6684_v56  ;;  %v6212_v20 = vpop.f32.mrb[62].mxu0  ;;  %6257 = vmatprep.mubr.msk.f32.mxu1 %vm265_vm1, %v3616_v11 }
 0xaef   :  { %v3619_v63 = vmul.f32 %v3587_v55, %v3491_v46  ;;  %v3381_v61 = vadd.f32 %v6212_v20, %v7954_v7  ;;  %v3375_v0 = vpop.f32.mrb[63].mxu0  ;;  %6258 = vmatmul.mubr.msk.f32.gmra.mrb[64].mxu1 %vm265_vm1, %v3617_v48 }
 0xaf0   :  { %v3618_v49 = vmul.f32 %v3586_v33, %v3490_v25  ;;  %v3376_v28 = vadd.f32 %v7954_v7, %v3375_v0 }
 0xaf1   :  { %v3527_v15 = vmul.f32 0.70710677, %v3381_v61  ;;  %v3495_v60 = vmul.f32 0.5, %v3381_v61 }
 0xaf2   :  { %v3526_v3 = vmul.f32 0.70710677, %v3376_v28  ;;  %v6215_v13 = vpop.f32.mrb[64].mxu0  ;;  %6260 = vmatprep.mubr.msk.f32.mxu1 %vm265_vm1, %v3618_v49  ;;  %v3494_v52 = vmul.f32 0.5, %v3376_v28 }
 0xaf3   :  { %6689 = verf.f32 %v3527_v15  ;;  %v3391_v17 = vadd.f32 %v6215_v13, %v7954_v7  ;;  %v3385_v47 = vpop.f32.mrb[65].mxu0  ;;  %6261 = vmatmul.mubr.msk.f32.gmra.mrb[66].mxu1 %vm265_vm1, %v3619_v63 }
 0xaf4   :  { %6691 = verf.f32 %v3526_v3  ;;  %v3386_v4 = vadd.f32 %v7954_v7, %v3385_v47 }
 0xaf5   :  { %v6686_v59 = vpop.eup %6685  ;;  %v3529_v30 = vmul.f32 0.70710677, %v3391_v17  ;;  %v3497_v11 = vmul.f32 0.5, %v3391_v17 }
 0xaf6   :  { %v6688_v12 = vpop.eup %6687  ;;  %v3589_v43 = vadd.f32 1.0, %v6686_v59  ;;  %v3528_v1 = vmul.f32 0.70710677, %v3386_v4  ;;  %v3496_v20 = vmul.f32 0.5, %v3386_v4 }
 0xaf7   :  { %v3588_v31 = vadd.f32 1.0, %v6688_v12  ;;  %6693 = verf.f32 %v3529_v30  ;;  %v6218_v32 = vpop.f32.mrb[66].mxu0 }
 0xaf8   :  { %v3621_v9 = vmul.f32 %v3589_v43, %v3493_v29  ;;  %6695 = verf.f32 %v3528_v1  ;;  %v3401_v36 = vadd.f32 %v6218_v32, %v7954_v7  ;;  %v3395_v37 = vpop.f32.mrb[67].mxu0 }
 0xaf9   :  { %v3620_v16 = vmul.f32 %v3588_v31, %v3492_v22  ;;  %v3396_v21 = vadd.f32 %v7954_v7, %v3395_v37 }
 0xafa   :  { %v3531_v19 = vmul.f32 0.70710677, %v3401_v36  ;;  %v3499_v4 = vmul.f32 0.5, %v3401_v36 }
 0xafb   :  { %v3530_v5 = vmul.f32 0.70710677, %v3396_v21  ;;  %v6221_v39 = vpop.f32.mrb[68].mxu0  ;;  %6263 = vmatprep.mubr.msk.f32.mxu1 %vm265_vm1, %v3620_v16  ;;  %v3498_v30 = vmul.f32 0.5, %v3396_v21 }
 0xafc   :  { %6697 = verf.f32 %v3531_v19  ;;  %v3411_v42 = vadd.f32 %v6221_v39, %v7954_v7  ;;  %v3405_v18 = vpop.f32.mrb[69].mxu0  ;;  %6264 = vmatmul.mubr.msk.f32.gmra.mrb[68].mxu1 %vm265_vm1, %v3621_v9 }
 0xafd   :  { %v6690_v23 = vpop.eup %6689  ;;  %6699 = verf.f32 %v3530_v5  ;;  %v3406_v38 = vadd.f32 %v7954_v7, %v3405_v18 }
 0xafe   :  { %v6692_v10 = vpop.eup %6691  ;;  %v3591_v57 = vadd.f32 1.0, %v6690_v23  ;;  %v3533_v27 = vmul.f32 0.70710677, %v3411_v42  ;;  %v3501_v19 = vmul.f32 0.5, %v3411_v42 }
 0xaff   :  { %v3590_v53 = vadd.f32 1.0, %v6692_v10  ;;  %v3532_v48 = vmul.f32 0.70710677, %v3406_v38  ;;  %v6224_v46 = vpop.f32.mrb[70].mxu0 }
 0xb00   :  { %v3623_v34 = vmul.f32 %v3591_v57, %v3495_v60  ;;  %6701 = verf.f32 %v3533_v27  ;;  %v3421_v25 = vadd.f32 %v6224_v46, %v7954_v7  ;;  %v3415_v56 = vpop.f32.mrb[71].mxu0  ;;  %v3500_v60 = vmul.f32 0.5, %v3406_v38 }
 0xb01   :  { %v6694_v55 = vpop.eup %6693  ;;  %v3622_v33 = vmul.f32 %v3590_v53, %v3494_v52  ;;  %6703 = verf.f32 %v3532_v48  ;;  %v3416_v63 = vadd.f32 %v7954_v7, %v3415_v56 }
 0xb02   :  { %v6696_v61 = vpop.eup %6695  ;;  %v3593_v0 = vadd.f32 1.0, %v6694_v55  ;;  %v3535_v49 = vmul.f32 0.70710677, %v3421_v25  ;;  %v3503_v53 = vmul.f32 0.5, %v3421_v25 }
 0xb03   :  { %v3592_v28 = vadd.f32 1.0, %v6696_v61  ;;  %v3534_v15 = vmul.f32 0.70710677, %v3416_v63  ;;  %v6227_v3 = vpop.f32.mrb[72].mxu0  ;;  %6266 = vmatprep.mubr.msk.f32.mxu1 %vm265_vm1, %v3622_v33  ;;  %v3502_v46 = vmul.f32 0.5, %v3416_v63 }
 0xb04   :  { %v3625_v13 = vmul.f32 %v3593_v0, %v3497_v11  ;;  %6705 = verf.f32 %v3535_v49  ;;  %v3431_v17 = vadd.f32 %v6227_v3, %v7954_v7  ;;  %v3425_v47 = vpop.f32.mrb[73].mxu0  ;;  %6267 = vmatmul.mubr.msk.f32.gmra.mrb[70].mxu1 %vm265_vm1, %v3623_v34 }
 0xb05   :  { %v3624_v29 = vmul.f32 %v3592_v28, %v3496_v20  ;;  %6707 = verf.f32 %v3534_v15  ;;  %v3426_v59 = vadd.f32 %v7954_v7, %v3425_v47 }
 0xb06   :  { %v6698_v22 = vpop.eup %6697  ;;  %v3537_v12 = vmul.f32 0.70710677, %v3431_v17  ;;  %v3505_v55 = vmul.f32 0.5, %v3431_v17 }
 0xb07   :  { %v6700_v43 = vpop.eup %6699  ;;  %v3595_v1 = vadd.f32 1.0, %v6698_v22  ;;  %v3536_v31 = vmul.f32 0.70710677, %v3426_v59  ;;  %6269 = vmatprep.mubr.msk.f32.mxu1 %vm265_vm1, %v3624_v29  ;;  %v6230_v32 = vpop.f32.mrb[74].mxu0  ;;  %v3504_v61 = vmul.f32 0.5, %v3426_v59 }
 0xb08   :  { %v3594_v9 = vadd.f32 1.0, %v6700_v43  ;;  %6709 = verf.f32 %v3537_v12  ;;  %6270 = vmatmul.mubr.msk.f32.gmra.mrb[72].mxu1 %vm265_vm1, %v3625_v13  ;;  %v3441_v37 = vadd.f32 %v6230_v32, %v7954_v7  ;;  %v3435_v16 = vpop.f32.mrb[75].mxu0 }
 0xb09   :  { %v3627_v36 = vmul.f32 %v3595_v1, %v3499_v4  ;;  %6711 = verf.f32 %v3536_v31  ;;  %v3436_v5 = vadd.f32 %v7954_v7, %v3435_v16 }
 0xb0a   :  { %v6702_v21 = vpop.eup %6701  ;;  %v3626_v39 = vmul.f32 %v3594_v9, %v3498_v30  ;;  %v3539_v18 = vmul.f32 0.70710677, %v3441_v37  ;;  %v3507_v15 = vmul.f32 0.5, %v3441_v37 }
 0xb0b   :  { %v6704_v23 = vpop.eup %6703  ;;  %v3597_v52 = vadd.f32 1.0, %v6702_v21  ;;  %v3538_v10 = vmul.f32 0.70710677, %v3436_v5  ;;  %v3506_v13 = vmul.f32 0.5, %v3436_v5 }
 0xb0c   :  { %v3596_v57 = vadd.f32 1.0, %v6704_v23  ;;  %6713 = verf.f32 %v3539_v18  ;;  %6272 = vmatprep.mubr.msk.f32.mxu1 %vm265_vm1, %v3626_v39 }
 0xb0d   :  { %v3629_v27 = vmul.f32 %v3597_v52, %v3501_v19  ;;  %6715 = verf.f32 %v3538_v10  ;;  %6273 = vmatmul.mubr.msk.f32.gmra.mrb[74].mxu1 %vm265_vm1, %v3627_v36 }
 0xb0e   :  { %v6706_v42 = vpop.eup %6705  ;;  %v3628_v48 = vmul.f32 %v3596_v57, %v3500_v60 }
 0xb0f   :  { %v6708_v34 = vpop.eup %6707  ;;  %v3599_v11 = vadd.f32 1.0, %v6706_v42 }
 0xb10   :  { %v3598_v56 = vadd.f32 1.0, %v6708_v34  ;;  %6275 = vmatprep.mubr.msk.f32.mxu1 %vm265_vm1, %v3628_v48 }
 0xb11   :  { %v3631_v38 = vmul.f32 %v3599_v11, %v3503_v53  ;;  %6276 = vmatmul.mubr.msk.f32.gmra.mrb[76].mxu1 %vm265_vm1, %v3629_v27 }
 0xb12   :  { %v6710_v33 = vpop.eup %6709  ;;  %v3630_v20 = vmul.f32 %v3598_v56, %v3502_v46 }
 0xb13   :  { %v6712_v0 = vpop.eup %6711  ;;  %v3601_v25 = vadd.f32 1.0, %v6710_v33 }
 0xb14   :  { %v3600_v49 = vadd.f32 1.0, %v6712_v0  ;;  %6278 = vmatprep.mubr.msk.f32.mxu1 %vm265_vm1, %v3630_v20 }
 0xb15   :  { %v3633_v28 = vmul.f32 %v3601_v25, %v3505_v55  ;;  %6279 = vmatmul.mubr.msk.f32.gmra.mrb[78].mxu1 %vm265_vm1, %v3631_v38 }
 0xb16   :  { %v6714_v63 = vpop.eup %6713  ;;  %v3632_v3 = vmul.f32 %v3600_v49, %v3504_v61 }
 0xb17   :  { %v6716_v47 = vpop.eup %6715  ;;  %v3603_v29 = vadd.f32 1.0, %v6714_v63 }
 0xb18   :  { %v3602_v17 = vadd.f32 1.0, %v6716_v47  ;;  %6281 = vmatprep.mubr.msk.f32.mxu1 %vm265_vm1, %v3632_v3 }
 0xb19   :  { %v3635_v4 = vmul.f32 %v3603_v29, %v3507_v15  ;;  %6282 = vmatmul.mubr.msk.f32.gmra.mrb[80].mxu1 %vm265_vm1, %v3633_v28 }
 0xb1a   :  { %v3634_v59 = vmul.f32 %v3602_v17, %v3506_v13 }
 0xb1c   :  { %6284 = vmatprep.mubr.msk.f32.mxu1 %vm265_vm1, %v3634_v59 }
 0xb1d   :  { %6285 = vmatmul.mubr.msk.f32.gmra.mrb[82].mxu1 %vm265_vm1, %v3635_v4 }
 0xb3b   :  { %v6233_v22 = vpop.f32.mrb[76].mxu0 }
 0xb3c   :  { %v3451_v30 = vadd.f32 %v6233_v22, %v7954_v7  ;;  %v3445_v12 = vpop.f32.mrb[77].mxu0 }
 0xb3d   :  { %v3446_v43 = vadd.f32 %v7954_v7, %v3445_v12 }
 0xb3e   :  { %v3541_v1 = vmul.f32 0.70710677, %v3451_v30  ;;  %v3509_v34 = vmul.f32 0.5, %v3451_v30 }
 0xb3f   :  { %v3540_v31 = vmul.f32 0.70710677, %v3446_v43  ;;  %v3508_v53 = vmul.f32 0.5, %v3446_v43 }
 0xb40   :  { %6717 = verf.f32 %v3541_v1 }
 0xb41   :  { %6719 = verf.f32 %v3540_v31 }
 0xb43   :  { %v6236_v32 = vpop.f32.mrb[78].mxu0 }
 0xb44   :  { %v3461_v9 = vadd.f32 %v6236_v32, %v7954_v7  ;;  %v3455_v37 = vpop.f32.mrb[79].mxu0 }
 0xb45   :  { %v3456_v16 = vadd.f32 %v7954_v7, %v3455_v37  ;;  %v8023_v37 = vld [vmem:[%s8672_s2 + $0xf] ss:$0 sm:$0xff] }
 0xb46   :  { %v3543_v36 = vmul.f32 0.70710677, %v3461_v9  ;;  %v3511_v28 = vmul.f32 0.5, %v3461_v9 }
 0xb47   :  { %v3542_v19 = vmul.f32 0.70710677, %v3456_v16  ;;  %v6239_v5 = vpop.f32.mrb[80].mxu0  ;;  %v3510_v25 = vmul.f32 0.5, %v3456_v16 }
 0xb48   :  { %6721 = verf.f32 %v3543_v36  ;;  %v3471_v21 = vadd.f32 %v6239_v5, %v7954_v7  ;;  %v3465_v39 = vpop.f32.mrb[81].mxu0 }
 0xb49   :  { %6723 = verf.f32 %v3542_v19  ;;  %v3466_v60 = vadd.f32 %v7954_v7, %v3465_v39 }
 0xb4a   :  { %v6718_v18 = vpop.eup %6717  ;;  %v3545_v23 = vmul.f32 0.70710677, %v3471_v21  ;;  %v3513_v17 = vmul.f32 0.5, %v3471_v21 }
 0xb4b   :  { %v6720_v52 = vpop.eup %6719  ;;  %v3605_v10 = vadd.f32 1.0, %v6718_v18  ;;  %v3544_v57 = vmul.f32 0.70710677, %v3466_v60  ;;  %v6242_v27 = vpop.f32.mrb[82].mxu0  ;;  %v3512_v47 = vmul.f32 0.5, %v3466_v60 }
 0xb4c   :  { %v3604_v42 = vadd.f32 1.0, %v6720_v52  ;;  %6725 = verf.f32 %v3545_v23  ;;  %v3481_v48 = vadd.f32 %v6242_v27, %v7954_v7  ;;  %v3475_v46 = vpop.f32.mrb[83].mxu0 }
 0xb4d   :  { %6727 = verf.f32 %v3544_v57  ;;  %v3476_v11 = vadd.f32 %v7954_v7, %v3475_v46  ;;  %v3637_v55 = vmul.f32 %v3605_v10, %v3509_v34 }
 0xb4e   :  { %v3636_v56 = vmul.f32 %v3604_v42, %v3508_v53  ;;  %v3547_v38 = vmul.f32 0.70710677, %v3481_v48  ;;  %v3515_v31 = vmul.f32 0.5, %v3481_v48 }
 0xb4f   :  { %v3546_v33 = vmul.f32 0.70710677, %v3476_v11  ;;  %v3514_v43 = vmul.f32 0.5, %v3476_v11 }
 0xb50   :  { %6729 = verf.f32 %v3547_v38  ;;  %6287 = vmatprep.mubr.msk.f32.mxu1 %vm265_vm1, %v3636_v56 }
 0xb51   :  { %6731 = verf.f32 %v3546_v33  ;;  %6288 = vmatmul.mubr.msk.f32.gmra.mrb[84].mxu1 %vm265_vm1, %v3637_v55 }
 0xb52   :  { %v6722_v20 = vpop.eup %6721 }
 0xb53   :  { %v6724_v61 = vpop.eup %6723  ;;  %v3607_v0 = vadd.f32 1.0, %v6722_v20 }
 0xb54   :  { %v3606_v49 = vadd.f32 1.0, %v6724_v61 }
 0xb55   :  { %v3639_v7 = vmul.f32 %v3607_v0, %v3511_v28 }
 0xb56   :  { %v6726_v15 = vpop.eup %6725  ;;  %v3638_v63 = vmul.f32 %v3606_v49, %v3510_v25 }
 0xb57   :  { %v6728_v3 = vpop.eup %6727  ;;  %v3609_v13 = vadd.f32 1.0, %v6726_v15 }
 0xb58   :  { %v3608_v29 = vadd.f32 1.0, %v6728_v3  ;;  %6290 = vmatprep.mubr.msk.f32.mxu1 %vm265_vm1, %v3638_v63 }
 0xb59   :  { %6291 = vmatmul.mubr.msk.f32.gmra.mrb[86].mxu1 %vm265_vm1, %v3639_v7  ;;  %v3641_v30 = vmul.f32 %v3609_v13, %v3513_v17 }
 0xb5a   :  { %v6730_v4 = vpop.eup %6729  ;;  %v3640_v59 = vmul.f32 %v3608_v29, %v3512_v47 }
 0xb5b   :  { %v6732_v22 = vpop.eup %6731  ;;  %v3611_v12 = vadd.f32 1.0, %v6730_v4 }
 0xb5c   :  { %v3610_v1 = vadd.f32 1.0, %v6732_v22  ;;  %6293 = vmatprep.mubr.msk.f32.mxu1 %vm265_vm1, %v3640_v59 }
 0xb5d   :  { %6294 = vmatmul.mubr.msk.f32.gmra.mrb[88].mxu1 %vm265_vm1, %v3641_v30  ;;  %v3643_v9 = vmul.f32 %v3611_v12, %v3515_v31 }
 0xb5e   :  { %v3642_v32 = vmul.f32 %v3610_v1, %v3514_v43 }
 0xb60   :  { %6296 = vmatprep.mubr.msk.f32.mxu1 %vm265_vm1, %v3642_v32 }
 0xb61   :  { %6297 = vmatmul.mubr.msk.f32.gmra.mrb[90].mxu1 %vm265_vm1, %v3643_v9 }
 0xbb6   :  { %v6253_v16 = vpop.f32.mrb[60].mxu1 }
 0xbb7   :  { %v3810_v36 = vpop.f32.mrb[61].mxu1  ;;  %v3816_v5 = vadd.f32 %v6253_v16, %v8023_v37 }
 0xbb8   :  { %v3811_v19 = vadd.f32 %v8023_v37, %v3810_v36 }
 0xbba   :  { %3969 = vxpose.xlu0.b32.start [1/4] (short) (narrow) %v3811_v19, 16 }
 0xbbe   :  { %3970 = vxpose.xlu0.b32.cont [2/4] (short) (narrow) %v3816_v5, 16  ;;  %v6256_v21 = vpop.f32.mrb[62].mxu1 }
 0xbbf   :  { %v3820_v39 = vpop.f32.mrb[63].mxu1  ;;  %v3826_v18 = vadd.f32 %v6256_v21, %v8023_v37 }
 0xbc0   :  { %v3821_v60 = vadd.f32 %v8023_v37, %v3820_v39 }
 0xbc2   :  { %v6259_v23 = vpop.f32.mrb[64].mxu1  ;;  %3971 = vxpose.xlu0.b32.cont [3/4] (short) (narrow) %v3821_v60, 16 }
 0xbc3   :  { %v3830_v52 = vpop.f32.mrb[65].mxu1  ;;  %v3836_v57 = vadd.f32 %v6259_v23, %v8023_v37 }
 0xbc4   :  { %v3831_v10 = vadd.f32 %v8023_v37, %v3830_v52 }
 0xbc6   :  { %4001 = vxpose.xlu1.b32.start [1/4] (short) (narrow) %v3831_v10, 16  ;;  %3972 = vxpose.xlu0.b32.end [4/4] (short) (narrow) %v3826_v18, 16  ;;  %v6262_v27 = vpop.f32.mrb[66].mxu1 }
 0xbc7   :  { %v3840_v53 = vpop.f32.mrb[67].mxu1  ;;  %v3846_v48 = vadd.f32 %v6262_v27, %v8023_v37 }
 0xbc8   :  { %v3841_v42 = vadd.f32 %v8023_v37, %v3840_v53 }
 0xbca   :  { %4002 = vxpose.xlu1.b32.cont [2/4] (short) (narrow) %v3836_v57, 16 }
 0xbce   :  { %4003 = vxpose.xlu1.b32.cont [3/4] (short) (narrow) %v3841_v42, 16 }
 0xbcf   :  { %v6265_v46 = vpop.f32.mrb[68].mxu1 }
 0xbd0   :  { %v3850_v34 = vpop.f32.mrb[69].mxu1  ;;  %v3856_v56 = vadd.f32 %v6265_v46, %v8023_v37 }
 0xbd1   :  { %v3851_v11 = vadd.f32 %v8023_v37, %v3850_v34 }
 0xbd2   :  { %4004 = vxpose.xlu1.b32.end [4/4] (short) (narrow) %v3846_v48, 16 }
 0xbd3   :  { %4033 = vxpose.xlu0.b32.start [1/4] (short) (narrow) %v3851_v11, 16  ;;  %v4225_v11 = vmul.f32 0.5, %v7657_v50  ;;  %v4229_v50 = vmul.f32 0.5, %v7681_v2  ;;  %v4230_v2 = vmul.f32 0.5, %v7679_v54 }
 0xbd7   :  { %4034 = vxpose.xlu0.b32.cont [2/4] (short) (narrow) %v3856_v56, 16  ;;  %v6268_v38 = vpop.f32.mrb[70].mxu1 }
 0xbd8   :  { %v3860_v55 = vpop.f32.mrb[71].mxu1  ;;  %v3866_v20 = vadd.f32 %v6268_v38, %v8023_v37 }
 0xbd9   :  { %v3861_v33 = vadd.f32 %v8023_v37, %v3860_v55 }
 0xbdb   :  { %v6271_v61 = vpop.f32.mrb[72].mxu1  ;;  %4035 = vxpose.xlu0.b32.cont [3/4] (short) (narrow) %v3861_v33, 16  ;;  %v4227_v33 = vmul.f32 0.5, %v7669_v8 }
 0xbdc   :  { %v3870_v0 = vpop.f32.mrb[73].mxu1  ;;  %v3876_v49 = vadd.f32 %v6271_v61, %v8023_v37  ;;  %v4226_v61 = vmul.f32 0.5, %v7655_v58 }
 0xbdd   :  { %v3871_v25 = vadd.f32 %v8023_v37, %v3870_v0 }
 0xbdf   :  { %4065 = vxpose.xlu1.b32.start [1/4] (short) (narrow) %v3871_v25, 16  ;;  %4036 = vxpose.xlu0.b32.end [4/4] (short) (narrow) %v3866_v20, 16 }
 0xbe0   :  { %v6274_v28 = vpop.f32.mrb[74].mxu1 }
 0xbe1   :  { %v3880_v15 = vpop.f32.mrb[75].mxu1  ;;  %v3886_v47 = vadd.f32 %v6274_v28, %v8023_v37  ;;  %v4228_v28 = vmul.f32 0.5, %v7667_v62 }
 0xbe2   :  { %v3881_v63 = vadd.f32 %v8023_v37, %v3880_v15 }
 0xbe3   :  { %4066 = vxpose.xlu1.b32.cont [2/4] (short) (narrow) %v3876_v49, 16 }
 0xbe4   :  { %v6277_v3 = vpop.f32.mrb[76].mxu1 }
 0xbe5   :  { %v3890_v7 = vpop.f32.mrb[77].mxu1  ;;  %v3896_v29 = vadd.f32 %v6277_v3, %v8023_v37 }
 0xbe6   :  { %v3891_v13 = vadd.f32 %v8023_v37, %v3890_v7  ;;  %v4231_v7 = vmul.f32 0.5, %v7693_v40 }
 0xbe7   :  { %4067 = vxpose.xlu1.b32.cont [3/4] (short) (narrow) %v3881_v63, 16 }
 0xbe8   :  { %4097 = vxpose.xlu0.b32.start [1/4] (short) (narrow) %v3891_v13, 16  ;;  %v6280_v17 = vpop.f32.mrb[78].mxu1 }
 0xbe9   :  { %v3900_v4 = vpop.f32.mrb[79].mxu1  ;;  %v3906_v43 = vadd.f32 %v6280_v17, %v8023_v37 }
 0xbea   :  { %v3901_v59 = vadd.f32 %v8023_v37, %v3900_v4  ;;  %v4233_v4 = vmul.f32 0.5, %v7705_v6  ;;  %v4235_v6 = vmul.f32 0.5, %v7717_v45  ;;  %v4236_v45 = vmul.f32 0.5, %v7715_v26 }
 0xbeb   :  { %4068 = vxpose.xlu1.b32.end [4/4] (short) (narrow) %v3886_v47, 16 }
 0xbec   :  { %4098 = vxpose.xlu0.b32.cont [2/4] (short) (narrow) %v3896_v29, 16  ;;  %v6283_v22 = vpop.f32.mrb[80].mxu1 }
 0xbed   :  { %v3910_v30 = vpop.f32.mrb[81].mxu1  ;;  %v3916_v1 = vadd.f32 %v6283_v22, %v8023_v37  ;;  %v4232_v22 = vmul.f32 0.5, %v7691_v24 }
 0xbee   :  { %v3911_v12 = vadd.f32 %v8023_v37, %v3910_v30 }
 0xbf0   :  { %4129 = vxpose.xlu1.b32.start [1/4] (short) (narrow) %v3911_v12, 16  ;;  %4099 = vxpose.xlu0.b32.cont [3/4] (short) (narrow) %v3901_v59, 16  ;;  %v6286_v31 = vpop.f32.mrb[82].mxu1 }
 0xbf1   :  { %v3920_v32 = vpop.f32.mrb[83].mxu1  ;;  %v3926_v16 = vadd.f32 %v6286_v31, %v8023_v37  ;;  %v4234_v31 = vmul.f32 0.5, %v7703_v41 }
 0xbf2   :  { %v3921_v9 = vadd.f32 %v8023_v37, %v3920_v32 }
 0xbf4   :  { %4130 = vxpose.xlu1.b32.cont [2/4] (short) (narrow) %v3916_v1, 16  ;;  %4100 = vxpose.xlu0.b32.end [4/4] (short) (narrow) %v3906_v43, 16 }
 0xbf8   :  { %4131 = vxpose.xlu1.b32.cont [3/4] (short) (narrow) %v3921_v9, 16 }
 0xbfc   :  { %4132 = vxpose.xlu1.b32.end [4/4] (short) (narrow) %v3926_v16, 16 }
 0xc24   :  { %v6289_v36 = vpop.f32.mrb[84].mxu1 }
 0xc25   :  { %v3930_v19 = vpop.f32.mrb[85].mxu1  ;;  %v3936_v21 = vadd.f32 %v6289_v36, %v8023_v37 }
 0xc26   :  { %v3931_v5 = vadd.f32 %v8023_v37, %v3930_v19 }
 0xc28   :  { %4161 = vxpose.xlu0.b32.start [1/4] (short) (narrow) %v3931_v5, 16 }
 0xc2c   :  { %4162 = vxpose.xlu0.b32.cont [2/4] (short) (narrow) %v3936_v21, 16  ;;  %v6292_v39 = vpop.f32.mrb[86].mxu1 }
 0xc2d   :  { %v3940_v60 = vpop.f32.mrb[87].mxu1  ;;  %v3946_v10 = vadd.f32 %v6292_v39, %v8023_v37 }
 0xc2e   :  { %v3941_v18 = vadd.f32 %v8023_v37, %v3940_v60  ;;  %v4237_v60 = vmul.f32 0.5, %v7729_v51 }
 0xc30   :  { %v6295_v23 = vpop.f32.mrb[88].mxu1  ;;  %4163 = vxpose.xlu0.b32.cont [3/4] (short) (narrow) %v3941_v18, 16 }
 0xc31   :  { %v3950_v52 = vpop.f32.mrb[89].mxu1  ;;  %v3956_v42 = vadd.f32 %v6295_v23, %v8023_v37 }
 0xc32   :  { %v3951_v57 = vadd.f32 %v8023_v37, %v3950_v52  ;;  %v4238_v52 = vmul.f32 0.5, %v7727_v35 }
 0xc34   :  { %v6298_v27 = vpop.f32.mrb[90].mxu1  ;;  %4193 = vxpose.xlu1.b32.start [1/4] (short) (narrow) %v3951_v57, 16  ;;  %4164 = vxpose.xlu0.b32.end [4/4] (short) (narrow) %v3946_v10, 16 }
 0xc35   :  { %v3960_v53 = vpop.f32.mrb[91].mxu1  ;;  %v3966_v46 = vadd.f32 %v6298_v27, %v8023_v37 }
 0xc36   :  { %v3961_v48 = vadd.f32 %v8023_v37, %v3960_v53  ;;  %v4239_v53 = vmul.f32 0.5, %v7741_v14 }
 0xc38   :  { %4194 = vxpose.xlu1.b32.cont [2/4] (short) (narrow) %v3956_v42, 16 }
 0xc3a   :  { %v3985_v34 = vpop.trf.xlu0 }
 0xc3b   :  { %v8058_v55 = vadd.f32 %v4225_v11, %v3985_v34 }
 0xc3c   :  { %4195 = vxpose.xlu1.b32.cont [3/4] (short) (narrow) %v3961_v48, 16  ;;  %v4240_v48 = vmul.f32 0.5, %v7739_v44 }
 0xc3d   :  { %v4257_v25 = vsel %vm265_vm1, %v8058_v55, 0.0 }
 0xc3e   :  { %v3986_v56 = vpop.trf.xlu0 }
 0xc3f   :  { %v8066_v37 = vadd.f32 %v4226_v61, %v3986_v56 }
 0xc40   :  { %4196 = vxpose.xlu1.b32.end [4/4] (short) (narrow) %v3966_v46, 16 }
 0xc41   :  { %v4260_v13 = vsel %vm265_vm1, %v8066_v37, 0.0 }
 0xc46   :  { %v4017_v38 = vpop.trf.xlu1 }
 0xc47   :  { %v8062_v0 = vadd.f32 %v4227_v33, %v4017_v38 }
 0xc49   :  { %v4263_v8 = vsel %vm265_vm1, %v8062_v0, 0.0 }
 0xc4a   :  { %v4018_v49 = vpop.trf.xlu1 }
 0xc4b   :  { %v8074_v3 = vadd.f32 %v4228_v28, %v4018_v49 }
 0xc4d   :  { %v4266_v40 = vsel %vm265_vm1, %v8074_v3, 0.0 }
 0xc53   :  { %v4049_v20 = vpop.trf.xlu0 }
 0xc54   :  { %v8070_v15 = vadd.f32 %v4229_v50, %v4049_v20 }
 0xc56   :  { %v4269_v62 = vsel %vm265_vm1, %v8070_v15, 0.0 }
 0xc57   :  { %v4050_v63 = vpop.trf.xlu0 }
 0xc58   :  { %v8084_v17 = vadd.f32 %v4230_v2, %v4050_v63 }
 0xc5a   :  { %v4272_v43 = vsel %vm265_vm1, %v8084_v17, 0.0 }
 0xc5f   :  { %v4081_v58 = vpop.trf.xlu1 }
 0xc60   :  { %v8080_v47 = vadd.f32 %v4231_v7, %v4081_v58 }
 0xc61   :  { %4258 = vadd.xlane.f32.xlu0 %v4257_v25 }
 0xc62   :  { %v4275_v54 = vsel %vm265_vm1, %v8080_v47, 0.0 }
 0xc63   :  { %v4082_v59 = vpop.trf.xlu1 }
 0xc64   :  { %v8094_v12 = vadd.f32 %v4232_v22, %v4082_v59 }
 0xc65   :  { %4264 = vadd.xlane.f32.xlu0 %v4263_v8 }
 0xc66   :  { %v4278_v36 = vsel %vm265_vm1, %v8094_v12, 0.0 }
 0xc67   :  { %4261 = vadd.xlane.f32.xlu1 %v4260_v13 }
 0xc68   :  { %v4113_v29 = vpop.trf.xlu0 }
 0xc69   :  { %4270 = vadd.xlane.f32.xlu0 %v4269_v62  ;;  %v8090_v30 = vadd.f32 %v4233_v4, %v4113_v29 }
 0xc6b   :  { %4267 = vadd.xlane.f32.xlu1 %v4266_v40  ;;  %v4281_v24 = vsel %vm265_vm1, %v8090_v30, 0.0 }
 0xc6c   :  { %v4114_v1 = vpop.trf.xlu0 }
 0xc6d   :  { %4276 = vadd.xlane.f32.xlu0 %v4275_v54  ;;  %v8104_v16 = vadd.f32 %v4234_v31, %v4114_v1 }
 0xc6f   :  { %4273 = vadd.xlane.f32.xlu1 %v4272_v43  ;;  %v4284_v21 = vsel %vm265_vm1, %v8104_v16, 0.0 }
 0xc70   :  { %v4145_v32 = vpop.trf.xlu1 }
 0xc71   :  { %v8102_v9 = vadd.f32 %v4235_v6, %v4145_v32  ;;  %4282 = vadd.xlane.f32.xlu0 %v4281_v24 }
 0xc73   :  { %4279 = vadd.xlane.f32.xlu1 %v4278_v36  ;;  %v4287_v19 = vsel %vm265_vm1, %v8102_v9, 0.0 }
 0xc74   :  { %v4146_v5 = vpop.trf.xlu1 }
 0xc75   :  { %4288 = vadd.xlane.f32.xlu0 %v4287_v19  ;;  %v8111_v41 = vadd.f32 %v4236_v45, %v4146_v5 }
 0xc77   :  { %4285 = vadd.xlane.f32.xlu1 %v4284_v21  ;;  %v4290_v39 = vsel %vm265_vm1, %v8111_v41, 0.0 }
 0xc7b   :  { %4291 = vadd.xlane.f32.xlu1 %v4290_v39 }
 0xca8   :  { %v4177_v18 = vpop.trf.xlu0 }
 0xca9   :  { %v8118_v23 = vadd.f32 %v4237_v60, %v4177_v18 }
 0xcab   :  { %v4293_v26 = vsel %vm265_vm1, %v8118_v23, 0.0 }
 0xcac   :  { %4294 = vadd.xlane.f32.xlu0 %v4293_v26  ;;  %v4178_v10 = vpop.trf.xlu0 }
 0xcad   :  { %v8123_v57 = vadd.f32 %v4238_v52, %v4178_v10 }
 0xcaf   :  { %v4296_v27 = vsel %vm265_vm1, %v8123_v57, 0.0 }
 0xcb0   :  { %4297 = vadd.xlane.f32.xlu1 %v4296_v27 }
 0xcb4   :  { %v4209_v42 = vpop.trf.xlu1 }
 0xcb5   :  { %v8128_v51 = vadd.f32 %v4239_v53, %v4209_v42 }
 0xcb7   :  { %v4299_v46 = vsel %vm265_vm1, %v8128_v51, 0.0 }
 0xcb8   :  { %v4210_v34 = vpop.trf.xlu1  ;;  %4300 = vadd.xlane.f32.xlu0 %v4299_v46 }
 0xcb9   :  { %v8133_v35 = vadd.f32 %v4240_v48, %v4210_v34 }
 0xcbb   :  { %v4302_v11 = vsel %vm265_vm1, %v8133_v35, 0.0 }
 0xcbc   :  { %4303 = vadd.xlane.f32.xlu1 %v4302_v11 }
 0xcee   :  { %v4259_v56 = vpop.xlane.xlu0 %4258 }
 0xcef   :  { %v4305_v38 = vmul.f32 0.03125, %v4259_v56 }
 0xcf1   :  { %v8138_v14 = vsub.f32 %v8058_v55, %v4305_v38 }
 0xcf2   :  { %v4265_v33 = vpop.xlane.xlu0 %4264 }
 0xcf3   :  { %v4307_v20 = vmul.f32 0.03125, %v4265_v33  ;;  %v4337_v44 = vmul.f32 %v8138_v14, %v8138_v14 }
 0xcf4   :  { %v4262_v61 = vpop.xlane.xlu1 %4261 }
 0xcf5   :  { %v8143_v25 = vsub.f32 %v8062_v0, %v4307_v20  ;;  %v4306_v49 = vmul.f32 0.03125, %v4262_v61  ;;  %v4353_v50 = vsel %vm265_vm1, %v4337_v44, 0.0 }
 0xcf6   :  { %4354 = vadd.xlane.f32.xlu0 %v4353_v50  ;;  %v4271_v28 = vpop.xlane.xlu0 %4270 }
 0xcf7   :  { %v8147_v8 = vsub.f32 %v8066_v37, %v4306_v49  ;;  %v4309_v63 = vmul.f32 0.03125, %v4271_v28  ;;  %v4339_v58 = vmul.f32 %v8143_v25, %v8143_v25 }
 0xcf8   :  { %v4268_v7 = vpop.xlane.xlu1 %4267 }
 0xcf9   :  { %v8152_v13 = vsub.f32 %v8070_v15, %v4309_v63  ;;  %v4308_v2 = vmul.f32 0.03125, %v4268_v7  ;;  %v4359_v62 = vsel %vm265_vm1, %v4339_v58, 0.0  ;;  %v4338_v29 = vmul.f32 %v8147_v8, %v8147_v8 }
 0xcfa   :  { %4360 = vadd.xlane.f32.xlu0 %v4359_v62  ;;  %v4277_v4 = vpop.xlane.xlu0 %4276  ;;  %v5597_v62 = vld [vmem:[%s8670_s1 + $0x208] sm:$0xff] }
 0xcfb   :  { %v8158_v40 = vsub.f32 %v8074_v3, %v4308_v2  ;;  %v4311_v59 = vmul.f32 0.03125, %v4277_v4  ;;  %v4356_v22 = vsel %vm265_vm1, %v4338_v29, 0.0  ;;  %v4341_v54 = vmul.f32 %v8152_v13, %v8152_v13  ;;  %v5596_v2 = vld [vmem:[%s8670_s1 + $0x200] sm:$0xff]  ;;  %v5598_v4 = vld [vmem:[%s8670_s1 + $0x210] sm:$0xff] }
 0xcfc   :  { %v4274_v43 = vpop.xlane.xlu1 %4273  ;;  %4357 = vadd.xlane.f32.xlu1 %v4356_v22  ;;  %v6442_v29 = vpack.c.bf16 %v5597_v62, %v5596_v2 }
 0xcfd   :  { %v8164_v1 = vsub.f32 %v8080_v47, %v4311_v59  ;;  %v4310_v6 = vmul.f32 0.03125, %v4274_v43  ;;  %v4365_v31 = vsel %vm265_vm1, %v4341_v54, 0.0  ;;  %v4340_v32 = vmul.f32 %v8158_v40, %v8158_v40  ;;  %v5599_v59 = vld [vmem:[%s8670_s1 + $0x218] sm:$0xff] }
 0xcfe   :  { %4366 = vadd.xlane.f32.xlu0 %v4365_v31  ;;  %v4283_v24 = vpop.xlane.xlu0 %4282  ;;  %6443 = vmatprep.subr.bf16.mxu0 %v6442_v29  ;;  %v6446_v22 = vpack.c.bf16 %v5599_v59, %v5598_v4 }
 0xcff   :  { %v8170_v36 = vsub.f32 %v8084_v17, %v4310_v6  ;;  %v4313_v19 = vmul.f32 0.03125, %v4283_v24  ;;  %v4362_v45 = vsel %vm265_vm1, %v4340_v32, 0.0  ;;  %v4343_v5 = vmul.f32 %v8164_v1, %v8164_v1  ;;  %6445 = vmatpush3.bf16.msra.mxu0 %v6442_v29 }
 0xd00   :  { %v4280_v21 = vpop.xlane.xlu1 %4279  ;;  %4363 = vadd.xlane.f32.xlu1 %v4362_v45  ;;  %6447 = vmatprep.subr.bf16.mxu0 %v6446_v22 }
 0xd01   :  { %v8176_v39 = vsub.f32 %v8090_v30, %v4313_v19  ;;  %v4312_v60 = vmul.f32 0.03125, %v4280_v21  ;;  %v4371_v18 = vsel %vm265_vm1, %v4343_v5, 0.0  ;;  %v4342_v26 = vmul.f32 %v8170_v36, %v8170_v36 }
 0xd02   :  { %4372 = vadd.xlane.f32.xlu0 %v4371_v18  ;;  %v4289_v52 = vpop.xlane.xlu0 %4288 }
 0xd03   :  { %v8182_v10 = vsub.f32 %v8094_v12, %v4312_v60  ;;  %v4315_v27 = vmul.f32 0.03125, %v4289_v52  ;;  %v4368_v53 = vsel %vm265_vm1, %v4342_v26, 0.0  ;;  %v4345_v42 = vmul.f32 %v8176_v39, %v8176_v39  ;;  %6449 = vmatpush3.bf16.msra.mxu0 %v6446_v22 }
 0xd04   :  { %v4286_v48 = vpop.xlane.xlu1 %4285  ;;  %4369 = vadd.xlane.f32.xlu1 %v4368_v53 }
 0xd05   :  { %v8188_v46 = vsub.f32 %v8102_v9, %v4315_v27  ;;  %v4314_v34 = vmul.f32 0.03125, %v4286_v48  ;;  %v4377_v11 = vsel %vm265_vm1, %v4345_v42, 0.0  ;;  %v4344_v56 = vmul.f32 %v8182_v10, %v8182_v10 }
 0xd06   :  { %4378 = vadd.xlane.f32.xlu0 %v4377_v11 }
 0xd07   :  { %v8194_v38 = vsub.f32 %v8104_v16, %v4314_v34  ;;  %v4374_v33 = vsel %vm265_vm1, %v4344_v56, 0.0  ;;  %v4347_v20 = vmul.f32 %v8188_v46, %v8188_v46 }
 0xd08   :  { %v4292_v44 = vpop.xlane.xlu1 %4291  ;;  %4375 = vadd.xlane.f32.xlu1 %v4374_v33 }
 0xd09   :  { %v4316_v61 = vmul.f32 0.03125, %v4292_v44  ;;  %v4383_v49 = vsel %vm265_vm1, %v4347_v20, 0.0  ;;  %v4346_v50 = vmul.f32 %v8194_v38, %v8194_v38 }
 0xd0a   :  { %4384 = vadd.xlane.f32.xlu0 %v4383_v49 }
 0xd0b   :  { %v8203_v28 = vsub.f32 %v8111_v41, %v4316_v61  ;;  %v4380_v63 = vsel %vm265_vm1, %v4346_v50, 0.0 }
 0xd0c   :  { %4381 = vadd.xlane.f32.xlu1 %v4380_v63 }
 0xd0d   :  { %v4348_v58 = vmul.f32 %v8203_v28, %v8203_v28 }
 0xd0f   :  { %v4386_v7 = vsel %vm265_vm1, %v4348_v58, 0.0 }
 0xd10   :  { %4387 = vadd.xlane.f32.xlu1 %v4386_v7 }
 0xd39   :  { %v4295_v54 = vpop.xlane.xlu0 %4294 }
 0xd3a   :  { %v4317_v43 = vmul.f32 0.03125, %v4295_v54 }
 0xd3c   :  { %v8222_v6 = vsub.f32 %v8118_v23, %v4317_v43 }
 0xd3d   :  { %v4298_v31 = vpop.xlane.xlu1 %4297 }
 0xd3e   :  { %v4318_v32 = vmul.f32 0.03125, %v4298_v31  ;;  %v4349_v24 = vmul.f32 %v8222_v6, %v8222_v6 }
 0xd40   :  { %v8227_v19 = vsub.f32 %v8123_v57, %v4318_v32  ;;  %v4389_v45 = vsel %vm265_vm1, %v4349_v24, 0.0  ;;  %v8248_v32 = vld [vmem:[%s8672_s2 + $0x10] ss:$0 sm:$0xff] }
 0xd41   :  { %4390 = vadd.xlane.f32.xlu0 %v4389_v45 }
 0xd42   :  { %v4350_v5 = vmul.f32 %v8227_v19, %v8227_v19 }
 0xd44   :  { %v4392_v21 = vsel %vm265_vm1, %v4350_v5, 0.0 }
 0xd45   :  { %4393 = vadd.xlane.f32.xlu1 %v4392_v21  ;;  %v4301_v60 = vpop.xlane.xlu0 %4300 }
 0xd46   :  { %v4319_v18 = vmul.f32 0.03125, %v4301_v60  ;;  %v8254_v60 = vld [vmem:[%s8672_s2 + $0x11] ss:$0 sm:$0xff] }
 0xd48   :  { %v8234_v26 = vsub.f32 %v8128_v51, %v4319_v18 }
 0xd49   :  { %v4304_v52 = vpop.xlane.xlu1 %4303 }
 0xd4a   :  { %v4320_v27 = vmul.f32 0.03125, %v4304_v52  ;;  %v4351_v53 = vmul.f32 %v8234_v26, %v8234_v26 }
 0xd4c   :  { %v8239_v42 = vsub.f32 %v8133_v35, %v4320_v27  ;;  %v4395_v48 = vsel %vm265_vm1, %v4351_v53, 0.0 }
 0xd4d   :  { %4396 = vadd.xlane.f32.xlu0 %v4395_v48 }
 0xd4e   :  { %v4352_v34 = vmul.f32 %v8239_v42, %v8239_v42 }
 0xd50   :  { %v4398_v11 = vsel %vm265_vm1, %v4352_v34, 0.0 }
 0xd51   :  { %4399 = vadd.xlane.f32.xlu1 %v4398_v11 }
 0xd83   :  { %v4355_v56 = vpop.xlane.xlu0 %4354 }
 0xd84   :  { %v4401_v33 = vmul.f32 0.03125, %v4355_v56 }
 0xd86   :  { %v4417_v20 = vadd.f32 1e-05, %v4401_v33 }
 0xd87   :  { %v4361_v44 = vpop.xlane.xlu0 %4360 }
 0xd88   :  { %6733 = vrsqrt.f32 %v4417_v20  ;;  %v4403_v61 = vmul.f32 0.03125, %v4361_v44 }
 0xd89   :  { %v4358_v49 = vpop.xlane.xlu1 %4357 }
 0xd8a   :  { %v4419_v50 = vadd.f32 1e-05, %v4403_v61  ;;  %v4402_v63 = vmul.f32 0.03125, %v4358_v49 }
 0xd8b   :  { %v4367_v58 = vpop.xlane.xlu0 %4366 }
 0xd8c   :  { %6735 = vrsqrt.f32 %v4419_v50  ;;  %v4418_v7 = vadd.f32 1e-05, %v4402_v63  ;;  %v4405_v2 = vmul.f32 0.03125, %v4367_v58 }
 0xd8d   :  { %v4364_v62 = vpop.xlane.xlu1 %4363 }
 0xd8e   :  { %6737 = vrsqrt.f32 %v4418_v7  ;;  %v4421_v29 = vadd.f32 1e-05, %v4405_v2  ;;  %v4404_v4 = vmul.f32 0.03125, %v4364_v62 }
 0xd8f   :  { %v4373_v59 = vpop.xlane.xlu0 %4372 }
 0xd90   :  { %6739 = vrsqrt.f32 %v4421_v29  ;;  %v4420_v22 = vadd.f32 1e-05, %v4404_v4  ;;  %v4407_v54 = vmul.f32 0.03125, %v4373_v59 }
 0xd91   :  { %v4370_v43 = vpop.xlane.xlu1 %4369 }
 0xd92   :  { %v6734_v31 = vpop.eup %6733  ;;  %6741 = vrsqrt.f32 %v4420_v22  ;;  %v4423_v24 = vadd.f32 1e-05, %v4407_v54  ;;  %v4406_v45 = vmul.f32 0.03125, %v4370_v43 }
 0xd93   :  { %v4379_v5 = vpop.xlane.xlu0 %4378  ;;  %v4449_v21 = vmul.f32 %v6734_v31, %v8138_v14 }
 0xd94   :  { %6743 = vrsqrt.f32 %v4423_v24  ;;  %v4422_v18 = vadd.f32 1e-05, %v4406_v45  ;;  %v4409_v52 = vmul.f32 0.03125, %v4379_v5 }
 0xd95   :  { %v4376_v27 = vpop.xlane.xlu1 %4375  ;;  %v4469_v53 = vmul.f32 %v8248_v32, %v4449_v21 }
 0xd96   :  { %v6736_v48 = vpop.eup %6735  ;;  %6745 = vrsqrt.f32 %v4422_v18  ;;  %v4425_v34 = vadd.f32 1e-05, %v4409_v52  ;;  %v4408_v11 = vmul.f32 0.03125, %v4376_v27 }
 0xd97   :  { %v4385_v56 = vpop.xlane.xlu0 %4384  ;;  %v4489_v33 = vadd.f32 %v8254_v60, %v4469_v53  ;;  %v4451_v14 = vmul.f32 %v6736_v48, %v8143_v25 }
 0xd98   :  { %v6738_v20 = vpop.eup %6737  ;;  %6747 = vrsqrt.f32 %v4425_v34  ;;  %v4424_v44 = vadd.f32 1e-05, %v4408_v11  ;;  %v4411_v61 = vmul.f32 0.03125, %v4385_v56 }
 0xd99   :  { %v4450_v49 = vmul.f32 %v6738_v20, %v8147_v8  ;;  %v4382_v50 = vpop.xlane.xlu1 %4381  ;;  %6307 = vmatprep.mubr.msk.f32.mxu0 %vm265_vm1, %v4489_v33  ;;  %v4471_v2 = vmul.f32 %v8248_v32, %v4451_v14 }
 0xd9a   :  { %v6740_v63 = vpop.eup %6739  ;;  %6749 = vrsqrt.f32 %v4424_v44  ;;  %v4427_v58 = vadd.f32 1e-05, %v4411_v61  ;;  %v4410_v7 = vmul.f32 0.03125, %v4382_v50 }
 0xd9b   :  { %v4470_v62 = vmul.f32 %v8248_v32, %v4450_v49  ;;  %v4453_v29 = vmul.f32 %v6740_v63, %v8152_v13  ;;  %v4491_v31 = vadd.f32 %v8254_v60, %v4471_v2 }
 0xd9c   :  { %v6742_v25 = vpop.eup %6741  ;;  %6751 = vrsqrt.f32 %v4427_v58  ;;  %v4426_v4 = vadd.f32 1e-05, %v4410_v7 }
 0xd9d   :  { %v4490_v59 = vadd.f32 %v8254_v60, %v4470_v62  ;;  %v4388_v22 = vpop.xlane.xlu1 %4387  ;;  %v4452_v8 = vmul.f32 %v6742_v25, %v8158_v40  ;;  %v4473_v24 = vmul.f32 %v8248_v32, %v4453_v29 }
 0xd9e   :  { %v6744_v54 = vpop.eup %6743  ;;  %6753 = vrsqrt.f32 %v4426_v4  ;;  %v4412_v43 = vmul.f32 0.03125, %v4388_v22 }
 0xd9f   :  { %6308 = vmatmul.mubr.msk.f32.vlgmr.msra.gmra.mrb[84].mxu0 %vm265_vm1, %v4490_v59  ;;  %v4472_v45 = vmul.f32 %v8248_v32, %v4452_v8  ;;  %v4455_v13 = vmul.f32 %v6744_v54, %v8164_v1  ;;  %v4493_v27 = vadd.f32 %v8254_v60, %v4473_v24 }
 0xda0   :  { %v6746_v5 = vpop.eup %6745  ;;  %v4428_v21 = vadd.f32 1e-05, %v4412_v43  ;;  %6310 = vmatprep.mubr.msk.f32.mxu0 %vm265_vm1, %v4491_v31 }
 0xda1   :  { %v4492_v18 = vadd.f32 %v8254_v60, %v4472_v45  ;;  %v4454_v40 = vmul.f32 %v6746_v5, %v8170_v36  ;;  %v4475_v53 = vmul.f32 %v8248_v32, %v4455_v13 }
 0xda2   :  { %v6748_v52 = vpop.eup %6747  ;;  %6755 = vrsqrt.f32 %v4428_v21 }
 0xda3   :  { %6311 = vmatmul.mubr.msk.f32.gmra.mrb[86].mxu0 %vm265_vm1, %v4492_v18  ;;  %v4474_v48 = vmul.f32 %v8248_v32, %v4454_v40  ;;  %v4457_v1 = vmul.f32 %v6748_v52, %v8176_v39  ;;  %v4495_v33 = vadd.f32 %v8254_v60, %v4475_v53 }
 0xda4   :  { %v6750_v34 = vpop.eup %6749  ;;  %6313 = vmatprep.mubr.msk.f32.mxu0 %vm265_vm1, %v4493_v27 }
 0xda5   :  { %v4494_v11 = vadd.f32 %v8254_v60, %v4474_v48  ;;  %v4456_v56 = vmul.f32 %v6750_v34, %v8182_v10  ;;  %v4477_v14 = vmul.f32 %v8248_v32, %v4457_v1 }
 0xda6   :  { %v6752_v36 = vpop.eup %6751 }
 0xda7   :  { %6314 = vmatmul.mubr.msk.f32.gmra.mrb[88].mxu0 %vm265_vm1, %v4494_v11  ;;  %v4476_v20 = vmul.f32 %v8248_v32, %v4456_v56  ;;  %v4459_v44 = vmul.f32 %v6752_v36, %v8188_v46  ;;  %v4497_v10 = vadd.f32 %v8254_v60, %v4477_v14 }
 0xda8   :  { %v6754_v61 = vpop.eup %6753  ;;  %6316 = vmatprep.mubr.msk.f32.mxu0 %vm265_vm1, %v4495_v33  ;;  %v5600_v33 = vld [vmem:[%s8670_s1 + $0x240] sm:$0xff] }
 0xda9   :  { %v4496_v39 = vadd.f32 %v8254_v60, %v4476_v20  ;;  %v4458_v49 = vmul.f32 %v6754_v61, %v8194_v38  ;;  %v4479_v50 = vmul.f32 %v8248_v32, %v4459_v44  ;;  %v5604_v20 = vld [vmem:[%s8670_s1 + $0x260] sm:$0xff]  ;;  %v5605_v44 = vld [vmem:[%s8670_s1 + $0x268] sm:$0xff] }
 0xdaa   :  { %v6458_v61 = vpack.c.bf16 %v5605_v44, %v5604_v20 }
 0xdab   :  { %6317 = vmatmul.mubr.msk.f32.gmra.mrb[90].mxu0 %vm265_vm1, %v4496_v39  ;;  %v4478_v63 = vmul.f32 %v8248_v32, %v4458_v49  ;;  %v4499_v2 = vadd.f32 %v8254_v60, %v4479_v50  ;;  %v5606_v39 = vld [vmem:[%s8670_s1 + $0x270] sm:$0xff]  ;;  %v5607_v49 = vld [vmem:[%s8670_s1 + $0x278] sm:$0xff] }
 0xdac   :  { %v6756_v58 = vpop.eup %6755  ;;  %6319 = vmatprep.mubr.msk.f32.mxu0 %vm265_vm1, %v4497_v10  ;;  %v6462_v10 = vpack.c.bf16 %v5607_v49, %v5606_v39  ;;  %v8346_v50 = vld [vmem:[%s8672_s2 + $0x12] ss:$0 sm:$0xff] }
 0xdad   :  { %v4498_v46 = vadd.f32 %v8254_v60, %v4478_v63  ;;  %v4460_v7 = vmul.f32 %v6756_v58, %v8203_v28 }
 0xdaf   :  { %6320 = vmatmul.mubr.msk.f32.gmra.mrb[92].mxu0 %vm265_vm1, %v4498_v46  ;;  %v4480_v38 = vmul.f32 %v8248_v32, %v4460_v7 }
 0xdb0   :  { %6322 = vmatprep.mubr.msk.f32.mxu0 %vm265_vm1, %v4499_v2 }
 0xdb1   :  { %v4500_v62 = vadd.f32 %v8254_v60, %v4480_v38 }
 0xdb3   :  { %6323 = vmatmul.mubr.msk.f32.gmra.mrb[94].mxu0 %vm265_vm1, %v4500_v62 }
 0xdce   :  { %v4391_v29 = vpop.xlane.xlu0 %4390 }
 0xdcf   :  { %v4413_v25 = vmul.f32 0.03125, %v4391_v29 }
 0xdd1   :  { %v4429_v4 = vadd.f32 1e-05, %v4413_v25 }
 0xdd2   :  { %v4394_v59 = vpop.xlane.xlu1 %4393 }
 0xdd3   :  { %6757 = vrsqrt.f32 %v4429_v4  ;;  %v4414_v22 = vmul.f32 0.03125, %v4394_v59 }
 0xdd5   :  { %v4430_v8 = vadd.f32 1e-05, %v4414_v22 }
 0xdd7   :  { %6759 = vrsqrt.f32 %v4430_v8 }
 0xdda   :  { %v4397_v28 = vpop.xlane.xlu0 %4396 }
 0xddb   :  { %v4415_v54 = vmul.f32 0.03125, %v4397_v28 }
 0xddd   :  { %v6758_v43 = vpop.eup %6757  ;;  %v4431_v31 = vadd.f32 1e-05, %v4415_v54 }
 0xdde   :  { %v4400_v24 = vpop.xlane.xlu1 %4399  ;;  %v4461_v45 = vmul.f32 %v6758_v43, %v8222_v6 }
 0xddf   :  { %6761 = vrsqrt.f32 %v4431_v31  ;;  %v4416_v13 = vmul.f32 0.03125, %v4400_v24 }
 0xde0   :  { %v4481_v5 = vmul.f32 %v8248_v32, %v4461_v45 }
 0xde1   :  { %v6760_v21 = vpop.eup %6759  ;;  %v4432_v18 = vadd.f32 1e-05, %v4416_v13 }
 0xde2   :  { %v4501_v40 = vadd.f32 %v8254_v60, %v4481_v5  ;;  %v4462_v52 = vmul.f32 %v6760_v21, %v8227_v19 }
 0xde3   :  { %6763 = vrsqrt.f32 %v4432_v18 }
 0xde4   :  { %6325 = vmatprep.mubr.msk.f32.mxu0 %vm265_vm1, %v4501_v40  ;;  %v4482_v27 = vmul.f32 %v8248_v32, %v4462_v52 }
 0xde6   :  { %v4502_v53 = vadd.f32 %v8254_v60, %v4482_v27 }
 0xde8   :  { %6326 = vmatmul.mubr.msk.f32.gmra.mrb[96].mxu0 %vm265_vm1, %v4502_v53 }
 0xde9   :  { %v6762_v6 = vpop.eup %6761 }
 0xdea   :  { %v4463_v48 = vmul.f32 %v6762_v6, %v8234_v26  ;;  %v5601_v26 = vld [vmem:[%s8670_s1 + $0x248] sm:$0xff] }
 0xdeb   :  { %v6450_v14 = vpack.c.bf16 %v5601_v26, %v5600_v33 }
 0xdec   :  { %v4483_v1 = vmul.f32 %v8248_v32, %v4463_v48 }
 0xded   :  { %v6764_v34 = vpop.eup %6763  ;;  %6451 = vmatprep.subr.bf16.mxu1 %v6450_v14 }
 0xdee   :  { %v4503_v11 = vadd.f32 %v8254_v60, %v4483_v1  ;;  %v4464_v56 = vmul.f32 %v6764_v34, %v8239_v42  ;;  %6453 = vmatpush3.bf16.msra.mxu1 %v6450_v14  ;;  %v5602_v42 = vld [vmem:[%s8670_s1 + $0x250] sm:$0xff] }
 0xdf0   :  { %6328 = vmatprep.mubr.msk.f32.mxu0 %vm265_vm1, %v4503_v11  ;;  %v4484_v19 = vmul.f32 %v8248_v32, %v4464_v56  ;;  %v5603_v32 = vld [vmem:[%s8670_s1 + $0x258] sm:$0xff] }
 0xdf2   :  { %v4504_v36 = vadd.f32 %v8254_v60, %v4484_v19  ;;  %v6454_v60 = vpack.c.bf16 %v5603_v32, %v5602_v42 }
 0xdf4   :  { %6329 = vmatmul.mubr.msk.f32.gmra.mrb[98].mxu0 %vm265_vm1, %v4504_v36  ;;  %6455 = vmatprep.subr.bf16.mxu1 %v6454_v60 }
 0xdf5   :  { %6457 = vmatpush3.bf16.msra.mxu1 %v6454_v60 }
 0xdf6   :  { %6459 = vmatprep.subr.bf16.mxu1 %v6458_v61 }
 0xdf9   :  { %6461 = vmatpush3.bf16.msra.mxu1 %v6458_v61 }
 0xdfa   :  { %6463 = vmatprep.subr.bf16.mxu1 %v6462_v10 }
 0xdfd   :  { %6465 = vmatpush3.bf16.msra.mxu1 %v6462_v10 }
 0xe72   :  { %v6309_v63 = vpop.f32.mrb[84].mxu0 }
 0xe73   :  { %v4629_v58 = vadd.f32 %v6309_v63, %v8346_v50  ;;  %v4623_v46 = vpop.f32.mrb[85].mxu0 }
 0xe74   :  { %v4624_v7 = vadd.f32 %v8346_v50, %v4623_v46 }
 0xe75   :  { %v4719_v2 = vmul.f32 0.70710677, %v4629_v58  ;;  %v4703_v56 = vmul.f32 0.5, %v4629_v58 }
 0xe76   :  { %v4718_v38 = vmul.f32 0.70710677, %v4624_v7  ;;  %v6312_v62 = vpop.f32.mrb[86].mxu0  ;;  %v4702_v48 = vmul.f32 0.5, %v4624_v7 }
 0xe77   :  { %6765 = verf.f32 %v4719_v2  ;;  %v4639_v29 = vadd.f32 %v6312_v62, %v8346_v50  ;;  %v4633_v25 = vpop.f32.mrb[87].mxu0 }
 0xe78   :  { %6767 = verf.f32 %v4718_v38  ;;  %v4634_v4 = vadd.f32 %v8346_v50, %v4633_v25 }
 0xe79   :  { %v4721_v59 = vmul.f32 0.70710677, %v4639_v29  ;;  %v4705_v10 = vmul.f32 0.5, %v4639_v29 }
 0xe7a   :  { %v4720_v22 = vmul.f32 0.70710677, %v4634_v4  ;;  %v6315_v8 = vpop.f32.mrb[88].mxu0  ;;  %v4704_v44 = vmul.f32 0.5, %v4634_v4 }
 0xe7b   :  { %6769 = verf.f32 %v4721_v59  ;;  %v4649_v28 = vadd.f32 %v6315_v8, %v8346_v50  ;;  %v4643_v54 = vpop.f32.mrb[89].mxu0 }
 0xe7c   :  { %6771 = verf.f32 %v4720_v22  ;;  %v4644_v43 = vadd.f32 %v8346_v50, %v4643_v54 }
 0xe7d   :  { %v4723_v31 = vmul.f32 0.70710677, %v4649_v28  ;;  %v4707_v22 = vmul.f32 0.5, %v4649_v28 }
 0xe7e   :  { %v4722_v24 = vmul.f32 0.70710677, %v4644_v43  ;;  %v6318_v45 = vpop.f32.mrb[90].mxu0  ;;  %v4706_v4 = vmul.f32 0.5, %v4644_v43 }
 0xe7f   :  { %6773 = verf.f32 %v4723_v31  ;;  %v4659_v13 = vadd.f32 %v6318_v45, %v8346_v50  ;;  %v4653_v5 = vpop.f32.mrb[91].mxu0 }
 0xe80   :  { %6775 = verf.f32 %v4722_v24  ;;  %v4654_v21 = vadd.f32 %v8346_v50, %v4653_v5 }
 0xe81   :  { %v6766_v18 = vpop.eup %6765  ;;  %v4725_v40 = vmul.f32 0.70710677, %v4659_v13 }
 0xe82   :  { %v6768_v52 = vpop.eup %6767  ;;  %v4751_v27 = vadd.f32 1.0, %v6766_v18  ;;  %v4724_v53 = vmul.f32 0.70710677, %v4654_v21  ;;  %v6321_v6 = vpop.f32.mrb[92].mxu0  ;;  %v4708_v45 = vmul.f32 0.5, %v4654_v21  ;;  %v4709_v18 = vmul.f32 0.5, %v4659_v13 }
 0xe83   :  { %v4750_v1 = vadd.f32 1.0, %v6768_v52  ;;  %6777 = verf.f32 %v4725_v40  ;;  %v4669_v34 = vadd.f32 %v6321_v6, %v8346_v50  ;;  %v4663_v11 = vpop.f32.mrb[93].mxu0 }
 0xe84   :  { %6779 = verf.f32 %v4724_v53  ;;  %v4664_v19 = vadd.f32 %v8346_v50, %v4663_v11  ;;  %v4767_v42 = vmul.f32 %v4751_v27, %v4703_v56 }
 0xe85   :  { %v6770_v36 = vpop.eup %6769  ;;  %v4766_v33 = vmul.f32 %v4750_v1, %v4702_v48  ;;  %v4727_v26 = vmul.f32 0.70710677, %v4669_v34  ;;  %v4711_v48 = vmul.f32 0.5, %v4669_v34 }
 0xe86   :  { %v6772_v14 = vpop.eup %6771  ;;  %v4753_v32 = vadd.f32 1.0, %v6770_v36  ;;  %v4726_v60 = vmul.f32 0.70710677, %v4664_v19  ;;  %v6324_v20 = vpop.f32.mrb[94].mxu0  ;;  %v4710_v53 = vmul.f32 0.5, %v4664_v19 }
 0xe87   :  { %v4752_v61 = vadd.f32 1.0, %v6772_v14  ;;  %6781 = verf.f32 %v4727_v26  ;;  %v4679_v39 = vadd.f32 %v6324_v20, %v8346_v50  ;;  %v4673_v49 = vpop.f32.mrb[95].mxu0  ;;  %6347 = vmatprep.mubr.msk.f32.mxu1 %vm2399_vm3, %v4766_v33 }
 0xe88   :  { %6783 = verf.f32 %v4726_v60  ;;  %v4674_v63 = vadd.f32 %v8346_v50, %v4673_v49  ;;  %6348 = vmatmul.mubr.msk.f32.vlgmr.msra.gmra.mrb[92].mxu1 %vm2399_vm3, %v4767_v42  ;;  %v4769_v38 = vmul.f32 %v4753_v32, %v4705_v10 }
 0xe89   :  { %v6774_v58 = vpop.eup %6773  ;;  %v4768_v46 = vmul.f32 %v4752_v61, %v4704_v44  ;;  %v4729_v7 = vmul.f32 0.70710677, %v4679_v39  ;;  %v4713_v26 = vmul.f32 0.5, %v4679_v39 }
 0xe8a   :  { %v6776_v2 = vpop.eup %6775  ;;  %v4755_v62 = vadd.f32 1.0, %v6774_v58  ;;  %v4728_v25 = vmul.f32 0.70710677, %v4674_v63  ;;  %v4712_v13 = vmul.f32 0.5, %v4674_v63 }
 0xe8b   :  { %v4754_v59 = vadd.f32 1.0, %v6776_v2  ;;  %6785 = verf.f32 %v4729_v7  ;;  %6350 = vmatprep.mubr.msk.f32.mxu1 %vm2399_vm3, %v4768_v46 }
 0xe8c   :  { %6787 = verf.f32 %v4728_v25  ;;  %6351 = vmatmul.mubr.msk.f32.gmra.mrb[94].mxu1 %vm2399_vm3, %v4769_v38  ;;  %v4771_v31 = vmul.f32 %v4755_v62, %v4707_v22 }
 0xe8d   :  { %v6778_v29 = vpop.eup %6777  ;;  %v4770_v8 = vmul.f32 %v4754_v59, %v4706_v4 }
 0xe8e   :  { %v6780_v54 = vpop.eup %6779  ;;  %v4757_v24 = vadd.f32 1.0, %v6778_v29 }
 0xe8f   :  { %v4756_v5 = vadd.f32 1.0, %v6780_v54  ;;  %6353 = vmatprep.mubr.msk.f32.mxu1 %vm2399_vm3, %v4770_v8 }
 0xe90   :  { %6354 = vmatmul.mubr.msk.f32.gmra.mrb[96].mxu1 %vm2399_vm3, %v4771_v31  ;;  %v4773_v27 = vmul.f32 %v4757_v24, %v4709_v18 }
 0xe91   :  { %v6782_v43 = vpop.eup %6781  ;;  %v4772_v40 = vmul.f32 %v4756_v5, %v4708_v45  ;;  %v8383_v5 = vld [vmem:[%s8672_s2 + $0x13] ss:$0 sm:$0xff] }
 0xe92   :  { %v6784_v52 = vpop.eup %6783  ;;  %v4759_v28 = vadd.f32 1.0, %v6782_v43 }
 0xe93   :  { %v4758_v6 = vadd.f32 1.0, %v6784_v52  ;;  %6356 = vmatprep.mubr.msk.f32.mxu1 %vm2399_vm3, %v4772_v40  ;;  %v4980_v40 = vmul.f32 0.5, %v8066_v37 }
 0xe94   :  { %6357 = vmatmul.mubr.msk.f32.gmra.mrb[98].mxu1 %vm2399_vm3, %v4773_v27  ;;  %v4775_v56 = vmul.f32 %v4759_v28, %v4711_v48  ;;  %v4979_v28 = vmul.f32 0.5, %v8058_v55 }
 0xe95   :  { %v6786_v1 = vpop.eup %6785  ;;  %v4774_v21 = vmul.f32 %v4758_v6, %v4710_v53 }
 0xe96   :  { %v6788_v11 = vpop.eup %6787  ;;  %v4761_v36 = vadd.f32 1.0, %v6786_v1 }
 0xe97   :  { %v4760_v33 = vadd.f32 1.0, %v6788_v11  ;;  %6359 = vmatprep.mubr.msk.f32.mxu1 %vm2399_vm3, %v4774_v21  ;;  %v4982_v21 = vmul.f32 0.5, %v8074_v3 }
 0xe98   :  { %6360 = vmatmul.mubr.msk.f32.gmra.mrb[100].mxu1 %vm2399_vm3, %v4775_v56  ;;  %v4777_v19 = vmul.f32 %v4761_v36, %v4713_v26  ;;  %v4981_v36 = vmul.f32 0.5, %v8062_v0 }
 0xe99   :  { %v4776_v14 = vmul.f32 %v4760_v33, %v4712_v13 }
 0xe9b   :  { %6362 = vmatprep.mubr.msk.f32.mxu1 %vm2399_vm3, %v4776_v14  ;;  %v4984_v14 = vmul.f32 0.5, %v8084_v17 }
 0xe9c   :  { %6363 = vmatmul.mubr.msk.f32.gmra.mrb[102].mxu1 %vm2399_vm3, %v4777_v19 }
 0xebb   :  { %v6327_v34 = vpop.f32.mrb[96].mxu0 }
 0xebc   :  { %v4689_v42 = vadd.f32 %v6327_v34, %v8346_v50  ;;  %v4683_v32 = vpop.f32.mrb[97].mxu0 }
 0xebd   :  { %v4684_v60 = vadd.f32 %v8346_v50, %v4683_v32 }
 0xebe   :  { %v4731_v20 = vmul.f32 0.70710677, %v4689_v42  ;;  %v4715_v25 = vmul.f32 0.5, %v4689_v42  ;;  %v4983_v42 = vmul.f32 0.5, %v8070_v15 }
 0xebf   :  { %v4730_v44 = vmul.f32 0.70710677, %v4684_v60  ;;  %v4714_v38 = vmul.f32 0.5, %v4684_v60 }
 0xec0   :  { %6789 = verf.f32 %v4731_v20 }
 0xec1   :  { %6791 = verf.f32 %v4730_v44 }
 0xec7   :  { %v6330_v61 = vpop.f32.mrb[98].mxu0 }
 0xec8   :  { %v4699_v39 = vadd.f32 %v6330_v61, %v8346_v50  ;;  %v4693_v49 = vpop.f32.mrb[99].mxu0  ;;  %v4986_v61 = vmul.f32 0.5, %v8094_v12 }
 0xec9   :  { %v4694_v10 = vadd.f32 %v8346_v50, %v4693_v49 }
 0xeca   :  { %v6790_v63 = vpop.eup %6789  ;;  %v4733_v58 = vmul.f32 0.70710677, %v4699_v39  ;;  %v4717_v31 = vmul.f32 0.5, %v4699_v39 }
 0xecb   :  { %v6792_v46 = vpop.eup %6791  ;;  %v4763_v7 = vadd.f32 1.0, %v6790_v63  ;;  %v4732_v2 = vmul.f32 0.70710677, %v4694_v10  ;;  %v4716_v50 = vmul.f32 0.5, %v4694_v10  ;;  %v4985_v10 = vmul.f32 0.5, %v8080_v47 }
 0xecc   :  { %v4762_v62 = vadd.f32 1.0, %v6792_v46  ;;  %6793 = verf.f32 %v4733_v58 }
 0xecd   :  { %6795 = verf.f32 %v4732_v2  ;;  %v4779_v59 = vmul.f32 %v4763_v7, %v4715_v25  ;;  %v4988_v2 = vmul.f32 0.5, %v8104_v16  ;;  %v4987_v25 = vmul.f32 0.5, %v8090_v30 }
 0xece   :  { %v4778_v4 = vmul.f32 %v4762_v62, %v4714_v38 }
 0xed0   :  { %6365 = vmatprep.mubr.msk.f32.mxu1 %vm2399_vm3, %v4778_v4 }
 0xed1   :  { %6366 = vmatmul.mubr.msk.f32.gmra.mrb[104].mxu1 %vm2399_vm3, %v4779_v59 }
 0xed6   :  { %v6794_v22 = vpop.eup %6793 }
 0xed7   :  { %v6796_v29 = vpop.eup %6795  ;;  %v4765_v8 = vadd.f32 1.0, %v6794_v22 }
 0xed8   :  { %v4764_v54 = vadd.f32 1.0, %v6796_v29 }
 0xed9   :  { %v4781_v45 = vmul.f32 %v4765_v8, %v4717_v31  ;;  %v4990_v8 = vmul.f32 0.5, %v8111_v41  ;;  %v4989_v31 = vmul.f32 0.5, %v8102_v9 }
 0xeda   :  { %v4780_v24 = vmul.f32 %v4764_v54, %v4716_v50 }
 0xedc   :  { %6368 = vmatprep.mubr.msk.f32.mxu1 %vm2399_vm3, %v4780_v24 }
 0xedd   :  { %6369 = vmatmul.mubr.msk.f32.gmra.mrb[106].mxu1 %vm2399_vm3, %v4781_v45 }
 0xf5b   :  { %v6349_v18 = vpop.f32.mrb[92].mxu1 }
 0xf5c   :  { %v4906_v43 = vadd.f32 %v6349_v18, %v8383_v5  ;;  %v4900_v52 = vpop.f32.mrb[93].mxu1 }
 0xf5d   :  { %v4901_v27 = vadd.f32 %v8383_v5, %v4900_v52  ;;  %v4992_v52 = vmul.f32 0.5, %v8123_v57 }
 0xf5e   :  { %v8389_v53 = vadd.f32 %v4980_v40, %v4906_v43 }
 0xf5f   :  { %v8391_v6 = vadd.f32 %v4979_v28, %v4901_v27  ;;  %v6352_v48 = vpop.f32.mrb[94].mxu1 }
 0xf60   :  { %v4916_v1 = vadd.f32 %v6352_v48, %v8383_v5  ;;  %v4910_v11 = vpop.f32.mrb[95].mxu1  ;;  %v5016_v56 = vsel %vm265_vm1, %v8389_v53, 0.0  ;;  %v4991_v48 = vmul.f32 0.5, %v8118_v23 }
 0xf61   :  { %v4911_v37 = vadd.f32 %v8383_v5, %v4910_v11  ;;  %5017 = vadd.xlane.f32.xlu1 %v5016_v56  ;;  %v5013_v55 = vsel %vm265_vm1, %v8391_v6, 0.0 }
 0xf62   :  { %v8401_v13 = vadd.f32 %v4982_v21, %v4916_v1  ;;  %5014 = vadd.xlane.f32.xlu0 %v5013_v55 }
 0xf63   :  { %v8403_v33 = vadd.f32 %v4981_v36, %v4911_v37  ;;  %v6355_v26 = vpop.f32.mrb[96].mxu1  ;;  %v4994_v36 = vmul.f32 0.5, %v8133_v35 }
 0xf64   :  { %v4926_v3 = vadd.f32 %v6355_v26, %v8383_v5  ;;  %v4920_v19 = vpop.f32.mrb[97].mxu1  ;;  %v5022_v34 = vsel %vm265_vm1, %v8401_v13, 0.0  ;;  %v4993_v26 = vmul.f32 0.5, %v8128_v51 }
 0xf65   :  { %v4921_v0 = vadd.f32 %v8383_v5, %v4920_v19  ;;  %5023 = vadd.xlane.f32.xlu1 %v5022_v34  ;;  %v5019_v32 = vsel %vm265_vm1, %v8403_v33, 0.0 }
 0xf66   :  { %v8413_v60 = vadd.f32 %v4984_v14, %v4926_v3  ;;  %5020 = vadd.xlane.f32.xlu0 %v5019_v32 }
 0xf67   :  { %v8415_v20 = vadd.f32 %v4983_v42, %v4921_v0  ;;  %v6358_v44 = vpop.f32.mrb[98].mxu1 }
 0xf68   :  { %v4936_v17 = vadd.f32 %v6358_v44, %v8383_v5  ;;  %v4930_v39 = vpop.f32.mrb[99].mxu1  ;;  %v5028_v49 = vsel %vm265_vm1, %v8413_v60, 0.0 }
 0xf69   :  { %v4931_v15 = vadd.f32 %v8383_v5, %v4930_v39  ;;  %5029 = vadd.xlane.f32.xlu1 %v5028_v49  ;;  %v5025_v63 = vsel %vm265_vm1, %v8415_v20, 0.0 }
 0xf6a   :  { %v8425_v58 = vadd.f32 %v4986_v61, %v4936_v17  ;;  %5026 = vadd.xlane.f32.xlu0 %v5025_v63 }
 0xf6b   :  { %v8427_v46 = vadd.f32 %v4985_v10, %v4931_v15  ;;  %v6361_v7 = vpop.f32.mrb[100].mxu1 }
 0xf6c   :  { %v4946_v12 = vadd.f32 %v6361_v7, %v8383_v5  ;;  %v4940_v38 = vpop.f32.mrb[101].mxu1  ;;  %v5034_v62 = vsel %vm265_vm1, %v8425_v58, 0.0 }
 0xf6d   :  { %v4941_v47 = vadd.f32 %v8383_v5, %v4940_v38  ;;  %5035 = vadd.xlane.f32.xlu1 %v5034_v62  ;;  %v5031_v4 = vsel %vm265_vm1, %v8427_v46, 0.0 }
 0xf6e   :  { %v8437_v59 = vadd.f32 %v4988_v2, %v4946_v12  ;;  %5032 = vadd.xlane.f32.xlu0 %v5031_v4 }
 0xf6f   :  { %v8439_v22 = vadd.f32 %v4987_v25, %v4941_v47  ;;  %v6364_v29 = vpop.f32.mrb[102].mxu1 }
 0xf70   :  { %v4956_v16 = vadd.f32 %v6364_v29, %v8383_v5  ;;  %v4950_v50 = vpop.f32.mrb[103].mxu1  ;;  %v5040_v54 = vsel %vm265_vm1, %v8437_v59, 0.0 }
 0xf71   :  { %v4951_v30 = vadd.f32 %v8383_v5, %v4950_v50  ;;  %5041 = vadd.xlane.f32.xlu1 %v5040_v54  ;;  %v5037_v24 = vsel %vm265_vm1, %v8439_v22, 0.0 }
 0xf72   :  { %v8449_v45 = vadd.f32 %v4990_v8, %v4956_v16  ;;  %5038 = vadd.xlane.f32.xlu0 %v5037_v24 }
 0xf73   :  { %v8451_v18 = vadd.f32 %v4989_v31, %v4951_v30 }
 0xf74   :  { %v5046_v41 = vsel %vm265_vm1, %v8449_v45, 0.0 }
 0xf75   :  { %5047 = vadd.xlane.f32.xlu1 %v5046_v41  ;;  %v5043_v43 = vsel %vm265_vm1, %v8451_v18, 0.0 }
 0xf76   :  { %5044 = vadd.xlane.f32.xlu0 %v5043_v43 }
 0xfa4   :  { %v6367_v40 = vpop.f32.mrb[104].mxu1 }
 0xfa5   :  { %v4966_v9 = vadd.f32 %v6367_v40, %v8383_v5  ;;  %v4960_v27 = vpop.f32.mrb[105].mxu1 }
 0xfa6   :  { %v4961_v28 = vadd.f32 %v8383_v5, %v4960_v27 }
 0xfa7   :  { %v8461_v1 = vadd.f32 %v4992_v52, %v4966_v9 }
 0xfa8   :  { %v8463_v21 = vadd.f32 %v4991_v48, %v4961_v28 }
 0xfa9   :  { %v5052_v11 = vsel %vm265_vm1, %v8461_v1, 0.0 }
 0xfaa   :  { %5053 = vadd.xlane.f32.xlu1 %v5052_v11  ;;  %v5049_v56 = vsel %vm265_vm1, %v8463_v21, 0.0 }
 0xfab   :  { %5050 = vadd.xlane.f32.xlu0 %v5049_v56 }
 0xfb0   :  { %v6370_v37 = vpop.f32.mrb[106].mxu1 }
 0xfb1   :  { %v4976_v57 = vadd.f32 %v6370_v37, %v8383_v5  ;;  %v4970_v55 = vpop.f32.mrb[107].mxu1 }
 0xfb2   :  { %v4971_v23 = vadd.f32 %v8383_v5, %v4970_v55 }
 0xfb3   :  { %v8473_v3 = vadd.f32 %v4994_v36, %v4976_v57 }
 0xfb4   :  { %v8475_v14 = vadd.f32 %v4993_v26, %v4971_v23 }
 0xfb5   :  { %v5058_v19 = vsel %vm265_vm1, %v8473_v3, 0.0 }
 0xfb6   :  { %5059 = vadd.xlane.f32.xlu1 %v5058_v19  ;;  %v5055_v34 = vsel %vm265_vm1, %v8475_v14, 0.0 }
 0xfb7   :  { %5056 = vadd.xlane.f32.xlu0 %v5055_v34 }
 0xfee   :  { %v5018_v0 = vpop.xlane.xlu1 %5017 }
 0xfef   :  { %v5062_v42 = vmul.f32 0.03125, %v5018_v0  ;;  %v5015_v35 = vpop.xlane.xlu0 %5014 }
 0xff0   :  { %v5061_v32 = vmul.f32 0.03125, %v5015_v35 }
 0xff1   :  { %v8482_v5 = vsub.f32 %v8389_v53, %v5062_v42 }
 0xff2   :  { %v8485_v51 = vsub.f32 %v8391_v6, %v5061_v32  ;;  %v5024_v44 = vpop.xlane.xlu1 %5023 }
 0xff3   :  { %v5064_v17 = vmul.f32 0.03125, %v5024_v44  ;;  %v5021_v61 = vpop.xlane.xlu0 %5020  ;;  %v5094_v39 = vmul.f32 %v8482_v5, %v8482_v5 }
 0xff4   :  { %v5063_v49 = vmul.f32 0.03125, %v5021_v61  ;;  %v5093_v15 = vmul.f32 %v8485_v51, %v8485_v51 }
 0xff5   :  { %v8492_v10 = vsub.f32 %v8401_v13, %v5064_v17  ;;  %v5112_v63 = vsel %vm265_vm1, %v5094_v39, 0.0 }
 0xff6   :  { %v8496_v53 = vsub.f32 %v8403_v33, %v5063_v49  ;;  %v5030_v6 = vpop.xlane.xlu1 %5029  ;;  %5113 = vadd.xlane.f32.xlu1 %v5112_v63  ;;  %v5109_v7 = vsel %vm265_vm1, %v5093_v15, 0.0 }
 0xff7   :  { %v5066_v12 = vmul.f32 0.03125, %v5030_v6  ;;  %5110 = vadd.xlane.f32.xlu0 %v5109_v7  ;;  %v5027_v2 = vpop.xlane.xlu0 %5026  ;;  %v5096_v38 = vmul.f32 %v8492_v10, %v8492_v10 }
 0xff8   :  { %v5065_v62 = vmul.f32 0.03125, %v5027_v2  ;;  %v5095_v13 = vmul.f32 %v8496_v53, %v8496_v53 }
 0xff9   :  { %v8504_v47 = vsub.f32 %v8413_v60, %v5066_v12  ;;  %v5118_v33 = vsel %vm265_vm1, %v5096_v38, 0.0 }
 0xffa   :  { %v8508_v25 = vsub.f32 %v8415_v20, %v5065_v62  ;;  %v5036_v4 = vpop.xlane.xlu1 %5035  ;;  %5119 = vadd.xlane.f32.xlu1 %v5118_v33  ;;  %v5115_v29 = vsel %vm265_vm1, %v5095_v13, 0.0  ;;  %v5716_v33 = vld [vmem:[%s8670_s1 + $0x50] sm:$0xff] }
 0xffb   :  { %v5068_v16 = vmul.f32 0.03125, %v5036_v4  ;;  %5116 = vadd.xlane.f32.xlu0 %v5115_v29  ;;  %v5033_v8 = vpop.xlane.xlu0 %5032  ;;  %v5098_v50 = vmul.f32 %v8504_v47, %v8504_v47  ;;  %v6829_v4 = vmov 0.0|0.0  }
 0xffc   :  { %v5067_v54 = vmul.f32 0.03125, %v5033_v8  ;;  %v5097_v60 = vmul.f32 %v8508_v25, %v8508_v25  ;;  %6466 = vmatprep.subr.bf16.mxu0 %v6829_v4  ;;  %v6831_v8 = vmov 0.0  }
 0xffd   :  { %v8516_v30 = vsub.f32 %v8425_v58, %v5068_v16  ;;  %v5124_v20 = vsel %vm265_vm1, %v5098_v50, 0.0  ;;  %v5717_v16 = vld [vmem:[%s8670_s1 + $0x58] sm:$0xff]  ;;  %6379 = vmatprep.mubr.msk.f32.mxu0 %vm6830_vm4, %v6831_v8 }
 0xffe   :  { %v8520_v31 = vsub.f32 %v8427_v46, %v5067_v54  ;;  %v5042_v24 = vpop.xlane.xlu1 %5041  ;;  %5125 = vadd.xlane.f32.xlu1 %v5124_v20  ;;  %v5121_v41 = vsel %vm265_vm1, %v5097_v60, 0.0  ;;  %v6470_v50 = vpack.c.bf16 %v5717_v16, %v5716_v33 }
 0xfff   :  { %v5070_v43 = vmul.f32 0.03125, %v5042_v24  ;;  %5122 = vadd.xlane.f32.xlu0 %v5121_v41  ;;  %v5039_v40 = vpop.xlane.xlu0 %5038  ;;  %v5100_v9 = vmul.f32 %v8516_v30, %v8516_v30 }
0x1000   :  { %v5069_v52 = vmul.f32 0.03125, %v5039_v40  ;;  %v5099_v58 = vmul.f32 %v8520_v31, %v8520_v31 }
0x1001   :  { %v8528_v27 = vsub.f32 %v8437_v59, %v5070_v43  ;;  %v5130_v46 = vsel %vm265_vm1, %v5100_v9, 0.0 }
0x1002   :  { %v8532_v28 = vsub.f32 %v8439_v22, %v5069_v52  ;;  %v5048_v48 = vpop.xlane.xlu1 %5047  ;;  %5131 = vadd.xlane.f32.xlu1 %v5130_v46  ;;  %v5127_v11 = vsel %vm265_vm1, %v5099_v58, 0.0 }
0x1003   :  { %v5072_v56 = vmul.f32 0.03125, %v5048_v48  ;;  %5128 = vadd.xlane.f32.xlu0 %v5127_v11  ;;  %v5045_v37 = vpop.xlane.xlu0 %5044  ;;  %v5102_v57 = vmul.f32 %v8528_v27, %v8528_v27 }
0x1004   :  { %v5071_v36 = vmul.f32 0.03125, %v5045_v37  ;;  %v5101_v59 = vmul.f32 %v8532_v28, %v8532_v28 }
0x1005   :  { %v8540_v55 = vsub.f32 %v8449_v45, %v5072_v56  ;;  %v5136_v22 = vsel %vm265_vm1, %v5102_v57, 0.0 }
0x1006   :  { %v8544_v23 = vsub.f32 %v8451_v18, %v5071_v36  ;;  %5137 = vadd.xlane.f32.xlu1 %v5136_v22  ;;  %v5133_v26 = vsel %vm265_vm1, %v5101_v59, 0.0 }
0x1007   :  { %5134 = vadd.xlane.f32.xlu0 %v5133_v26  ;;  %v5104_v19 = vmul.f32 %v8540_v55, %v8540_v55 }
0x1008   :  { %v5103_v34 = vmul.f32 %v8544_v23, %v8544_v23 }
0x1009   :  { %v5142_v0 = vsel %vm265_vm1, %v5104_v19, 0.0 }
0x100a   :  { %5143 = vadd.xlane.f32.xlu1 %v5142_v0  ;;  %v5139_v45 = vsel %vm265_vm1, %v5103_v34, 0.0 }
0x100b   :  { %5140 = vadd.xlane.f32.xlu0 %v5139_v45 }
0x1037   :  { %v5054_v42 = vpop.xlane.xlu1 %5053 }
0x1038   :  { %v5074_v35 = vmul.f32 0.03125, %v5054_v42  ;;  %v5051_v18 = vpop.xlane.xlu0 %5050 }
0x1039   :  { %v5073_v32 = vmul.f32 0.03125, %v5051_v18 }
0x103a   :  { %v8554_v44 = vsub.f32 %v8461_v1, %v5074_v35 }
0x103b   :  { %v8557_v17 = vsub.f32 %v8463_v21, %v5073_v32 }
0x103c   :  { %v5106_v61 = vmul.f32 %v8554_v44, %v8554_v44 }
0x103d   :  { %v5105_v39 = vmul.f32 %v8557_v17, %v8557_v17 }
0x103e   :  { %v5148_v49 = vsel %vm265_vm1, %v5106_v61, 0.0 }
0x103f   :  { %5149 = vadd.xlane.f32.xlu1 %v5148_v49  ;;  %v5145_v15 = vsel %vm265_vm1, %v5105_v39, 0.0 }
0x1040   :  { %5146 = vadd.xlane.f32.xlu0 %v5145_v15 }
0x1043   :  { %v5060_v63 = vpop.xlane.xlu1 %5059 }
0x1044   :  { %v5076_v6 = vmul.f32 0.03125, %v5060_v63  ;;  %v5057_v7 = vpop.xlane.xlu0 %5056 }
0x1045   :  { %v5075_v1 = vmul.f32 0.03125, %v5057_v7 }
0x1046   :  { %v8566_v12 = vsub.f32 %v8473_v3, %v5076_v6  ;;  %v5714_v3 = vld [vmem:[%s8670_s1 + $0x40] sm:$0xff] }
0x1047   :  { %v8569_v21 = vsub.f32 %v8475_v14, %v5075_v1  ;;  %v5715_v14 = vld [vmem:[%s8670_s1 + $0x48] sm:$0xff] }
0x1048   :  { %v5108_v2 = vmul.f32 %v8566_v12, %v8566_v12  ;;  %v6467_v29 = vpack.c.bf16 %v5715_v14, %v5714_v3 }
0x1049   :  { %v5107_v38 = vmul.f32 %v8569_v21, %v8569_v21 }
0x104a   :  { %v5154_v62 = vsel %vm265_vm1, %v5108_v2, 0.0  ;;  %6468 = vmatpush3.bf16.msra.mxu0 %v6467_v29 }
0x104b   :  { %5155 = vadd.xlane.f32.xlu1 %v5154_v62  ;;  %v5151_v13 = vsel %vm265_vm1, %v5107_v38, 0.0  ;;  %6469 = vmatprep.subr.bf16.mxu0 %v6829_v4 }
0x104c   :  { %5152 = vadd.xlane.f32.xlu0 %v5151_v13 }
0x104e   :  { %6471 = vmatpush3.bf16.msra.mxu0 %v6470_v50 }
0x1083   :  { %v5114_v54 = vpop.xlane.xlu1 %5113 }
0x1084   :  { %v5111_v60 = vpop.xlane.xlu0 %5110  ;;  %v5158_v52 = vmul.f32 0.03125, %v5114_v54 }
0x1085   :  { %v5157_v58 = vmul.f32 0.03125, %v5111_v60 }
0x1086   :  { %v5174_v37 = vadd.f32 1e-05, %v5158_v52 }
0x1087   :  { %v5120_v20 = vpop.xlane.xlu1 %5119  ;;  %v5173_v36 = vadd.f32 1e-05, %v5157_v58 }
0x1088   :  { %v5117_v24 = vpop.xlane.xlu0 %5116  ;;  %v5160_v48 = vmul.f32 0.03125, %v5120_v20  ;;  %6797 = vrsqrt.f32 %v5174_v37 }
0x1089   :  { %v5159_v56 = vmul.f32 0.03125, %v5117_v24  ;;  %6799 = vrsqrt.f32 %v5173_v36 }
0x108a   :  { %v5176_v22 = vadd.f32 1e-05, %v5160_v48 }
0x108b   :  { %v5126_v41 = vpop.xlane.xlu1 %5125  ;;  %v5175_v19 = vadd.f32 1e-05, %v5159_v56 }
0x108c   :  { %v5123_v43 = vpop.xlane.xlu0 %5122  ;;  %v5162_v57 = vmul.f32 0.03125, %v5126_v41  ;;  %6801 = vrsqrt.f32 %v5176_v22 }
0x108d   :  { %v5161_v59 = vmul.f32 0.03125, %v5123_v43  ;;  %6803 = vrsqrt.f32 %v5175_v19 }
0x108e   :  { %v5178_v45 = vadd.f32 1e-05, %v5162_v57 }
0x108f   :  { %v5132_v40 = vpop.xlane.xlu1 %5131  ;;  %v5177_v18 = vadd.f32 1e-05, %v5161_v59 }
0x1090   :  { %v5129_v9 = vpop.xlane.xlu0 %5128  ;;  %v5164_v26 = vmul.f32 0.03125, %v5132_v40  ;;  %6805 = vrsqrt.f32 %v5178_v45  ;;  %v8597_v40 = vld [vmem:[%s8672_s2 + $0x1] ss:$0 sm:$0xff] }
0x1091   :  { %v5163_v34 = vmul.f32 0.03125, %v5129_v9  ;;  %6807 = vrsqrt.f32 %v5177_v18 }
0x1092   :  { %v5180_v61 = vadd.f32 1e-05, %v5164_v26  ;;  %v6798_v2 = vpop.eup %6797 }
0x1093   :  { %v5138_v46 = vpop.xlane.xlu1 %5137  ;;  %v5179_v49 = vadd.f32 1e-05, %v5163_v34  ;;  %v6800_v38 = vpop.eup %6799  ;;  %v5206_v20 = vmul.f32 %v6798_v2, %v8482_v5 }
0x1094   :  { %v5135_v11 = vpop.xlane.xlu0 %5134  ;;  %v5166_v42 = vmul.f32 0.03125, %v5138_v46  ;;  %6809 = vrsqrt.f32 %v5180_v61  ;;  %v5205_v9 = vmul.f32 %v6800_v38, %v8485_v51 }
0x1095   :  { %v5165_v32 = vmul.f32 0.03125, %v5135_v11  ;;  %6811 = vrsqrt.f32 %v5179_v49 }
0x1096   :  { %v5182_v63 = vadd.f32 1e-05, %v5166_v42  ;;  %v6802_v62 = vpop.eup %6801 }
0x1097   :  { %v5144_v0 = vpop.xlane.xlu1 %5143  ;;  %v5181_v6 = vadd.f32 1e-05, %v5165_v32  ;;  %v6804_v13 = vpop.eup %6803  ;;  %v5208_v8 = vmul.f32 %v6802_v62, %v8492_v10 }
0x1098   :  { %v5141_v35 = vpop.xlane.xlu0 %5140  ;;  %v5168_v39 = vmul.f32 0.03125, %v5144_v0  ;;  %6813 = vrsqrt.f32 %v5182_v63  ;;  %v5207_v54 = vmul.f32 %v6804_v13, %v8496_v53 }
0x1099   :  { %v5167_v15 = vmul.f32 0.03125, %v5141_v35  ;;  %6815 = vrsqrt.f32 %v5181_v6  ;;  %v5228_v5 = vmul.f32 %v8597_v40, %v5208_v8 }
0x109a   :  { %v5184_v7 = vadd.f32 1e-05, %v5168_v39  ;;  %v6806_v3 = vpop.eup %6805  ;;  %v5227_v48 = vmul.f32 %v8597_v40, %v5207_v54 }
0x109b   :  { %v5183_v1 = vadd.f32 1e-05, %v5167_v15  ;;  %v6808_v14 = vpop.eup %6807  ;;  %v5210_v24 = vmul.f32 %v6806_v3, %v8504_v47 }
0x109c   :  { %6817 = vrsqrt.f32 %v5184_v7  ;;  %v5209_v41 = vmul.f32 %v6808_v14, %v8508_v25 }
0x109d   :  { %6819 = vrsqrt.f32 %v5183_v1 }
0x109e   :  { %v6810_v33 = vpop.eup %6809  ;;  %v5229_v37 = vmul.f32 %v8597_v40, %v5209_v41 }
0x109f   :  { %v6812_v4 = vpop.eup %6811  ;;  %v5212_v10 = vmul.f32 %v6810_v33, %v8516_v30  ;;  %v5226_v30 = vmul.f32 %v8597_v40, %v5206_v20 }
0x10a0   :  { %v5211_v52 = vmul.f32 %v6812_v4, %v8520_v31  ;;  %v5230_v31 = vmul.f32 %v8597_v40, %v5210_v24 }
0x10a1   :  { %v5232_v36 = vmul.f32 %v8597_v40, %v5212_v10 }
0x10a2   :  { %v6814_v29 = vpop.eup %6813 }
0x10a3   :  { %v6816_v16 = vpop.eup %6815  ;;  %v5214_v47 = vmul.f32 %v6814_v29, %v8528_v27  ;;  %v8614_v27 = vld [vmem:[%s8672_s2 + $0x2] ss:$0 sm:$0xff] }
0x10a4   :  { %v5213_v25 = vmul.f32 %v6816_v16, %v8532_v28  ;;  %v5225_v28 = vmul.f32 %v8597_v40, %v5205_v9  ;;  %v5248_v22 = vadd.f32 %v8614_v27, %v5228_v5  ;;  %v5247_v26 = vadd.f32 %v8614_v27, %v5227_v48 }
0x10a5   :  { %v5246_v0 = vadd.f32 %v8614_v27, %v5226_v30  ;;  %v5250_v45 = vadd.f32 %v8614_v27, %v5230_v31  ;;  %v5249_v42 = vadd.f32 %v8614_v27, %v5229_v37  ;;  %v5252_v18 = vadd.f32 %v8614_v27, %v5232_v36 }
0x10a6   :  { %v6818_v50 = vpop.eup %6817  ;;  %v5233_v59 = vmul.f32 %v8597_v40, %v5213_v25  ;;  %v5245_v35 = vadd.f32 %v8614_v27, %v5225_v28  ;;  %v5271_v49 = vsel %vm265_vm1, %v5248_v22, 0.0  ;;  %v5270_v15 = vsel %vm265_vm1, %v5247_v26, 0.0 }
0x10a7   :  { %v6820_v60 = vpop.eup %6819  ;;  %v5216_v11 = vmul.f32 %v6818_v50, %v8540_v55  ;;  %v5231_v55 = vmul.f32 %v8597_v40, %v5211_v52  ;;  %v5262_v7 = vsel %vm265_vm1, %v5246_v0, 0.0  ;;  %v5280_v1 = vsel %vm265_vm1, %v5250_v45, 0.0 }
0x10a8   :  { %v5215_v56 = vmul.f32 %v6820_v60, %v8544_v23  ;;  %v5234_v23 = vmul.f32 %v8597_v40, %v5214_v47  ;;  %v5253_v39 = vadd.f32 %v8614_v27, %v5233_v59  ;;  %v5279_v2 = vsel %vm265_vm1, %v5249_v42, 0.0 }
0x10a9   :  { %v5236_v19 = vmul.f32 %v8597_v40, %v5216_v11  ;;  %v5251_v32 = vadd.f32 %v8614_v27, %v5231_v55  ;;  %v5261_v62 = vsel %vm265_vm1, %v5245_v35, 0.0  ;;  %v5289_v13 = vsel %vm265_vm1, %v5252_v18, 0.0 }
0x10aa   :  { %v5235_v34 = vmul.f32 %v8597_v40, %v5215_v56  ;;  %v5254_v61 = vadd.f32 %v8614_v27, %v5234_v23  ;;  %v5272_v4 = vadd.f32 %v5271_v49, %v5270_v15  ;;  %v5297_v16 = vsel %vm265_vm1, %v5253_v39, 0.0 }
0x10ab   :  { %v5256_v63 = vadd.f32 %v8614_v27, %v5236_v19  ;;  %v5288_v3 = vsel %vm265_vm1, %v5251_v32, 0.0  ;;  %v5281_v54 = vadd.f32 %v5280_v1, %v5279_v2 }
0x10ac   :  { %v5255_v6 = vadd.f32 %v8614_v27, %v5235_v34  ;;  %v5298_v29 = vsel %vm265_vm1, %v5254_v61, 0.0  ;;  %v5290_v9 = vadd.f32 %v5289_v13, %v5288_v3  ;;  %v5273_v5 = vrot.slane %v5272_v4, 4 }
0x10ad   :  { %v5307_v60 = vsel %vm265_vm1, %v5256_v63, 0.0 }
0x10ae   :  { %v5306_v20 = vsel %vm265_vm1, %v5255_v6, 0.0  ;;  %v5291_v56 = vrot.slane %v5290_v9, 4  ;;  %v5274_v31 = vadd.f32 %v5273_v5, %v5272_v4 }
0x10af   :  { %v5308_v47 = vadd.f32 %v5307_v60, %v5306_v20 }
0x10b0   :  { %v5292_v55 = vadd.f32 %v5291_v56, %v5290_v9  ;;  %v5275_v22 = vrot.slane %v5274_v31, 2 }
0x10b1   :  { %v5309_v37 = vrot.slane %v5308_v47, 4 }
0x10b2   :  { %v5293_v35 = vrot.slane %v5292_v55, 2  ;;  %v5276_v49 = vadd.f32 %v5275_v22, %v5274_v31 }
0x10b3   :  { %v5310_v26 = vadd.f32 %v5309_v37, %v5308_v47 }
0x10b5   :  { %v5311_v63 = vrot.slane %v5310_v26, 2 }
0x10cc   :  { %v5150_v43 = vpop.xlane.xlu1 %5149 }
0x10cd   :  { %v5170_v53 = vmul.f32 0.03125, %v5150_v43  ;;  %v5147_v58 = vpop.xlane.xlu0 %5146  ;;  %v5263_v43 = vadd.f32 %v5262_v7, %v5261_v62 }
0x10ce   :  { %v5169_v46 = vmul.f32 0.03125, %v5147_v58 }
0x10cf   :  { %v5186_v51 = vadd.f32 1e-05, %v5170_v53  ;;  %v5299_v53 = vadd.f32 %v5298_v29, %v5297_v16  ;;  %v5264_v11 = vrot.slane %v5263_v43, 4 }
0x10d0   :  { %v5185_v57 = vadd.f32 1e-05, %v5169_v46  ;;  %v5282_v46 = vrot.slane %v5281_v54, 4 }
0x10d1   :  { %6821 = vrsqrt.f32 %v5186_v51  ;;  %v5300_v30 = vrot.slane %v5299_v53, 4  ;;  %v5265_v36 = vadd.f32 %v5264_v11, %v5263_v43 }
0x10d2   :  { %6823 = vrsqrt.f32 %v5185_v57  ;;  %v5283_v57 = vadd.f32 %v5282_v46, %v5281_v54 }
0x10d3   :  { %v5301_v59 = vadd.f32 %v5300_v30, %v5299_v53  ;;  %v5266_v42 = vrot.slane %v5265_v36, 2 }
0x10d4   :  { %v5284_v0 = vrot.slane %v5283_v57, 2 }
0x10d5   :  { %v5302_v61 = vrot.slane %v5301_v59, 2  ;;  %v5267_v2 = vadd.f32 %v5266_v42, %v5265_v36 }
0x10d6   :  { %v5285_v6 = vadd.f32 %v5284_v0, %v5283_v57 }
0x10d7   :  { %v5303_v3 = vadd.f32 %v5302_v61, %v5301_v59  ;;  %v5268_v16 = vrot.slane %v5267_v2, 1  ;;  %v5718_v59 = vld [vmem:[%s8672_s2 + $0x3] ss:$0 sm:$0xff] }
0x10d8   :  { %v5156_v38 = vpop.xlane.xlu1 %5155 }
0x10d9   :  { %v5172_v14 = vmul.f32 0.03125, %v5156_v38  ;;  %v5153_v33 = vpop.xlane.xlu0 %5152  ;;  %v5294_v38 = vadd.f32 %v5293_v35, %v5292_v55  ;;  %v5269_v43 = vadd.f32 %v5268_v16, %v5267_v2 }
0x10da   :  { %v5171_v8 = vmul.f32 0.03125, %v5153_v33  ;;  %v5312_v33 = vadd.f32 %v5311_v63, %v5310_v26 }
0x10db   :  { %v6822_v50 = vpop.eup %6821  ;;  %v5188_v24 = vadd.f32 1e-05, %v5172_v14 }
0x10dc   :  { %v6824_v41 = vpop.eup %6823  ;;  %v5218_v10 = vmul.f32 %v6822_v50, %v8554_v44  ;;  %v5187_v52 = vadd.f32 1e-05, %v5171_v8  ;;  %v5295_v50 = vrot.slane %v5294_v38, 1  ;;  %v5313_v60 = vrot.slane %v5312_v33, 1 }
0x10dd   :  { %v5217_v58 = vmul.f32 %v6824_v41, %v8557_v17  ;;  %6825 = vrsqrt.f32 %v5188_v24 }
0x10de   :  { %v5238_v25 = vmul.f32 %v8597_v40, %v5218_v10  ;;  %6827 = vrsqrt.f32 %v5187_v52  ;;  %v5314_v53 = vadd.f32 %v5313_v60, %v5312_v33 }
0x10df   :  { %v5237_v48 = vmul.f32 %v8597_v40, %v5217_v58 }
0x10e0   :  { %v5258_v51 = vadd.f32 %v8614_v27, %v5238_v25  ;;  %v5334_v25 = vmul.f32 0.0625, %v5269_v43 }
0x10e1   :  { %v5257_v44 = vadd.f32 %v8614_v27, %v5237_v48 }
0x10e2   :  { %v5316_v17 = vsel %vm265_vm1, %v5258_v51, 0.0  ;;  %v5339_v51 = vmul.f32 0.0625, %v5314_v53 }
0x10e3   :  { %v5315_v28 = vsel %vm265_vm1, %v5257_v44, 0.0 }
0x10e4   :  { %v5317_v23 = vadd.f32 %v5316_v17, %v5315_v28 }
0x10e6   :  { %v5318_v19 = vrot.slane %v5317_v23, 4 }
0x10e7   :  { %v6826_v34 = vpop.eup %6825 }
0x10e8   :  { %v6828_v45 = vpop.eup %6827  ;;  %v5220_v18 = vmul.f32 %v6826_v34, %v8566_v12  ;;  %v5319_v32 = vadd.f32 %v5318_v19, %v5317_v23  ;;  %v5277_v12 = vrot.slane %v5276_v49, 1 }
0x10e9   :  { %v5219_v39 = vmul.f32 %v6828_v45, %v8569_v21  ;;  %v5286_v21 = vrot.slane %v5285_v6, 1 }
0x10ea   :  { %v5240_v15 = vmul.f32 %v8597_v40, %v5220_v18  ;;  %v5320_v1 = vrot.slane %v5319_v32, 2  ;;  %v5278_v54 = vadd.f32 %v5277_v12, %v5276_v49 }
0x10eb   :  { %v5239_v7 = vmul.f32 %v8597_v40, %v5219_v39  ;;  %v5304_v40 = vrot.slane %v5303_v3, 1  ;;  %v5287_v24 = vadd.f32 %v5286_v21, %v5285_v6 }
0x10ec   :  { %v5260_v62 = vadd.f32 %v8614_v27, %v5240_v15  ;;  %v5321_v29 = vadd.f32 %v5320_v1, %v5319_v32  ;;  %v5335_v52 = vmul.f32 0.0625, %v5278_v54 }
0x10ed   :  { %v5259_v13 = vadd.f32 %v8614_v27, %v5239_v7  ;;  %v5296_v27 = vadd.f32 %v5295_v50, %v5294_v38  ;;  %v5305_v10 = vadd.f32 %v5304_v40, %v5303_v3  ;;  %v5336_v47 = vmul.f32 0.0625, %v5287_v24 }
0x10ee   :  { %v5325_v14 = vsel %vm265_vm1, %v5260_v62, 0.0  ;;  %v5322_v41 = vrot.slane %v5321_v29, 1  ;;  %v5361_v30 = vsel %vm5360_vm5, %v5335_v52, %v5334_v25 }
0x10ef   :  { %v5324_v4 = vsel %vm265_vm1, %v5259_v13, 0.0  ;;  %v5337_v48 = vmul.f32 0.0625, %v5296_v27  ;;  %v5338_v11 = vmul.f32 0.0625, %v5305_v10  ;;  %v5363_v31 = vsel %vm5362_vm6, %v5336_v47, %v5361_v30 }
0x10f0   :  { %v5326_v8 = vadd.f32 %v5325_v14, %v5324_v4  ;;  %v5323_v5 = vadd.f32 %v5322_v41, %v5321_v29 }
0x10f1   :  { %v5365_v17 = vsel %vm5364_vm7, %v5337_v48, %v5363_v31 }
0x10f2   :  { %v5327_v20 = vrot.slane %v5326_v8, 4  ;;  %v5340_v44 = vmul.f32 0.0625, %v5323_v5  ;;  %v5367_v57 = vsel %vm5366_vm8, %v5338_v11, %v5365_v17 }
0x10f3   :  { %v5369_v36 = vsel %vm5368_vm9, %v5339_v51, %v5367_v57 }
0x10f4   :  { %v5328_v9 = vadd.f32 %v5327_v20, %v5326_v8  ;;  %v5371_v55 = vsel %vm5370_vm10, %v5340_v44, %v5369_v36 }
0x10f6   :  { %v5329_v58 = vrot.slane %v5328_v9, 2 }
0x10f8   :  { %v5330_v46 = vadd.f32 %v5329_v58, %v5328_v9 }
0x10fa   :  { %v5331_v56 = vrot.slane %v5330_v46, 1 }
0x10fc   :  { %v5332_v37 = vadd.f32 %v5331_v56, %v5330_v46 }
0x10fe   :  { %v5341_v28 = vmul.f32 0.0625, %v5332_v37 }
0x1100   :  { %v5373_v23 = vsel %vm5372_vm11, %v5341_v28, %v5371_v55 }
0x1101   :  { %6380 = vmatmul.mubr.msk.f32.vlgmr.msra.gmra.mrb[100].mxu0 %vm265_vm1, %v5373_v23 }
0x11d4   :  { %v5442_v22 = vpop.f32.mrb[100].mxu0 }
0x11d5   :  { %v5443_v26 = vadd.f32 %v5718_v59, %v5442_v22  ;;  %v6381_v19 = vpop.f32.mrb[101].mxu0 }
0x11d7   :  { %5446 = vst [vmem:[%s8673_s3] sm:$0xff] %v5443_v26 }

</bundles_post_ra>
